<compile_context>
chip_gen: v6e
topology: v6e:2x2x1
jax: 0.10.0
libtpu: 0.0.40
codegen_flags: <defaults>
</compile_context>

<pallas_src>
import math

import jax
import jax.numpy as jnp
from jax.experimental import pallas as pl
from jax.experimental.pallas import tpu as pltpu

# ----------------------------- KAN spline constants ---------------------------
GRID_SIZE = 5
SPLINE_ORDER = 3
GRID_RANGE = (-1.0, 1.0)
NUM_COEFF = GRID_SIZE + SPLINE_ORDER      # 8 B-spline basis functions per input
NUM_FUNCS = NUM_COEFF + 1                 # + SiLU base branch
LANE = 128                                # lane-alignment target for feature dims


def _round_up(v, m):
    return ((v + m - 1) // m) * m


def _make_knots():
    h = (GRID_RANGE[1] - GRID_RANGE[0]) / GRID_SIZE
    return [GRID_RANGE[0] + (i - SPLINE_ORDER) * h
            for i in range(GRID_SIZE + 2 * SPLINE_ORDER + 1)]


KNOTS = _make_knots()  # 12 uniform knots, shared across all input features


def _silu_eup(x):
    # x * sigmoid(x); sigmoid via tanh identity -> single EUP op, no VALU divide.
    return x * (0.5 * jnp.tanh(0.5 * x) + 0.5)


def _silu_exact(x):
    # reference formulation (mathematically identical).
    return x * (1.0 / (1.0 + jnp.exp(-x)))


def _bspline_bases(x):
    """Cox-de Boor recursion (efficient-KAN), VPU-trimmed:
    - (x - knot_j) computed once for all 12 knots, reused across levels
    - right branch sign folded into a negative Python reciprocal constant
    - degree-0 bases from 12 `x >= g_j` compares (band_j = ge_j & ~ge_{j+1})
    """
    g = KNOTS
    d = [x - gj for gj in g]                          # 12 subs, reused
    ge = [x >= gj for gj in g]                        # 12 compares
    bases = [jnp.where(ge[j] & (~ge[j + 1]), 1.0, 0.0).astype(jnp.float32)
             for j in range(len(g) - 1)]
    for k in range(1, SPLINE_ORDER + 1):
        nxt = []
        for j in range(len(bases) - 1):
            inv_l = 1.0 / (g[j + k] - g[j])            # Python float constant
            neg_inv_r = -1.0 / (g[j + k + 1] - g[j + 1])
            nxt.append(d[j] * inv_l * bases[j]
                       + d[j + k + 1] * neg_inv_r * bases[j + 1])
        bases = nxt
    assert len(bases) == NUM_COEFF
    return bases


# ------------------------------- Pallas kernel --------------------------------
def _make_kernel(num_layers):
    """Whole network in one kernel; one MXU matmul per KANLinear layer.
    All feature dims are pre-padded to 128 lanes, so the slab concat is pure
    vreg placement and every dot is lane-aligned."""
    def kernel(*refs):
        h_ref = refs[0]
        layer_refs = refs[1:1 + 2 * num_layers]
        o_ref = refs[1 + 2 * num_layers]

        h = h_ref[...]
        for layer in range(num_layers):
            w = layer_refs[2 * layer][...]         # (9*D_pad_in, D_pad_out), BN folded
            shift = layer_refs[2 * layer + 1][...]  # (1, D_pad_out)
            slab = jnp.concatenate([_silu_eup(h)] + _bspline_bases(h), axis=1)
            h = jnp.dot(slab, w, preferred_element_type=jnp.float32) + shift
        o_ref[...] = h.astype(o_ref.dtype)
    return kernel


# ------------------------------- pallas_call wrapper ---------------------------
def _full_spec(shape):
    # whole-array block, identical for every grid step (fetched once, VMEM-resident)
    return pl.BlockSpec(shape, lambda i: (0,) * len(shape))


def kan_forward(t, x, context, t_w, t_b, layers_fused, dim_output, *, batch_tile=1024):
    """layers_fused: list of (w_fused (9*D_pad_in, D_pad_out), shift (1, D_pad_out)).
    batch_tile default 1024 amortizes per-step overhead on v5e/v6e (128 MiB VMEM);
    the working set (~tb*9*128 f32) stays well under v7x's 64 MiB at this config.
    """
    b = x.shape[0]
    d_in_pad = layers_fused[0][0].shape[0] // NUM_FUNCS
    d_out_pad = layers_fused[-1][0].shape[1]

    # Host-side packing: time embedding (K=1 Linear), concat, zero-pad to 128 lanes.
    t_emb = t @ t_w + t_b
    h0 = jnp.concatenate([x, context, t_emb], axis=1)
    h0 = jnp.pad(h0, ((0, 0), (0, d_in_pad - h0.shape[1]))).astype(jnp.float32)

    # Batch tiling: >= 2 grid steps when possible (v7x 2-TC split), rows mult. of 8.
    if b <= 8:
        tb = b
    else:
        tb = min(batch_tile, _round_up(pl.cdiv(b, 2), 8))
    grid = (pl.cdiv(b, tb),)

    def row_spec(d):
        return pl.BlockSpec((tb, d), lambda i: (i, 0))

    in_specs = [row_spec(d_in_pad)]
    args = [h0]
    for (w, sh) in layers_fused:
        in_specs += [_full_spec(w.shape), _full_spec(sh.shape)]
        args += [w, sh]

    out = pl.pallas_call(
        _make_kernel(len(layers_fused)),
        out_shape=jax.ShapeDtypeStruct((b, d_out_pad), jnp.float32),
        grid=grid,
        in_specs=in_specs,
        out_specs=row_spec(d_out_pad),
        compiler_params=pltpu.CompilerParams(dimension_semantics=("parallel",)),
    )(*args)
    return out[:, :dim_output]


# ------------------------------- parameter setup --------------------------------
def init_kan_linear_params(key, d_in, d_out):
    k1, k2 = jax.random.split(key)
    w_base = jax.random.normal(k1, (d_in, d_out), jnp.float32) / jnp.sqrt(jnp.float32(d_in))
    # spline_weight * spline_scaler already folded, stored as (C, D_in, D_out)
    w_spline = 0.1 * jax.random.normal(k2, (NUM_COEFF, d_in, d_out), jnp.float32)
    return w_base, w_spline


def bn_eval_affine(d, eps=1e-5):
    # fresh BatchNorm1d: gamma=1, beta=0, running_mean=0, running_var=1
    scale = jnp.full((1, d), 1.0 / math.sqrt(1.0 + eps), jnp.float32)
    shift = jnp.zeros((1, d), jnp.float32)
    return scale, shift


def identity_affine(d):
    return jnp.ones((1, d), jnp.float32), jnp.zeros((1, d), jnp.float32)


def fold_layer(w_base, w_spline, scale, shift, d_in_pad, d_out_pad):
    """Fold BN eval scale into the weights, zero-pad each block to (d_in_pad,
    d_out_pad), and stack row-blocks [base | c0 | ... | c7] (coefficient-major),
    matching the kernel's slab [SiLU(h) | B_0(h) | ...].  Padded input lanes are
    zero in h, and their spline-basis values (nonzero at x=0) hit zero weight rows,
    so they contribute exactly 0.
    NOTE: efficient-KAN's `.view(B,-1)` flatten is input-major/coeff-minor, so
    porting real PyTorch weights requires w_spline[c] = scaled_spline_weight[:, :, c].T.
    """
    d_in, d_out = w_base.shape
    wb = w_base * scale                      # (D_in, D_out)
    ws = w_spline * scale                    # (C, D_in, D_out)

    def pad_block(m):
        return jnp.pad(m, ((0, d_in_pad - d_in), (0, d_out_pad - d_out)))

    w_fused = jnp.concatenate(
        [pad_block(wb)] + [pad_block(ws[c]) for c in range(NUM_COEFF)], axis=0)
    shift_pad = jnp.pad(shift, ((0, 0), (0, d_out_pad - d_out)))
    return w_fused, shift_pad


def build_network(key, d_in_total, d_hidden, d_out, num_layers):
    """kan_block: [KANLinear+BN+Drop] x num_layers, then KANLinear(H, d_out)."""
    dims = ([(d_in_total, d_hidden)] + [(d_hidden, d_hidden)] * (num_layers - 1)
            + [(d_hidden, d_out)])
    keys = jax.random.split(key, len(dims))
    raw_layers, fused_layers = [], []
    for i, (di, do) in enumerate(dims):
        wb, ws = init_kan_linear_params(keys[i], di, do)
        if i < len(dims) - 1:
            sc, sh = bn_eval_affine(do)      # hidden KANLinear -> BatchNorm (eval)
        else:
            sc, sh = identity_affine(do)     # final KANLinear: no BN
        raw_layers.append((wb, ws, sc, sh))
        fused_layers.append(
            fold_layer(wb, ws, sc, sh, _round_up(di, LANE), _round_up(do, LANE)))
    return raw_layers, fused_layers


# ------------------------------ plain-JAX reference -----------------------------
def forward_ref(raw_layers, t_w, t_b, t, x, context):
    t_emb = t @ t_w + t_b
    h = jnp.concatenate([x, context, t_emb], axis=1)
    for (wb, ws, sc, sh) in raw_layers:
        acc = _silu_exact(h) @ wb
        bases = _bspline_bases(h)
        for c in range(NUM_COEFF):
            acc = acc + bases[c] @ ws[c]
        h = acc * sc + sh                    # BN eval affine; Dropout = identity
    return h


# ------------------------------------ main ---------------------------------------
if __name__ == "__main__":
    # config: dim_continuous=4, dim_context=3, dim_time_emb=8, dim_hidden=32,
    #         num_layers=2, dropout=0.1, time_embedding='Linear'
    B = 16
    DIM_CONT, DIM_CTX, DIM_TEMB, DIM_HID, NUM_LAYERS = 4, 3, 8, 32, 2
    D_IN_TOTAL = DIM_CONT + DIM_CTX + DIM_TEMB

    key = jax.random.PRNGKey(0)
    k_net, k_tw, k_tb, k_x, k_c, k_t = jax.random.split(key, 6)

    raw_layers, fused_layers = build_network(
        k_net, D_IN_TOTAL, DIM_HID, DIM_CONT, NUM_LAYERS)
    t_w = jax.random.normal(k_tw, (1, DIM_TEMB), jnp.float32)
    t_b = 0.01 * jax.random.normal(k_tb, (1, DIM_TEMB), jnp.float32)

    x = jax.random.normal(k_x, (B, DIM_CONT), jnp.float32)
    context = jax.random.normal(k_c, (B, DIM_CTX), jnp.float32)
    t = jax.random.uniform(k_t, (B, 1), jnp.float32)

    fwd = jax.jit(lambda t_, x_, c_: kan_forward(
        t_, x_, c_, t_w, t_b, fused_layers, DIM_CONT))
    out = jax.block_until_ready(fwd(t, x, context))

    ref = forward_ref(raw_layers, t_w, t_b, t, x, context)
    assert out.shape == (B, DIM_CONT)
    # tolerance covers EUP-tanh sigmoid vs exp/divide and padded-K accumulation order
    assert jnp.allclose(out, ref, atol=5e-4, rtol=5e-4), "Pallas kernel mismatch vs reference"

    print("KERNEL_OK")
</pallas_src>

<mosaic_0001>
module attributes {stable_mosaic.version = 11 : i64} {
  func.func @kernel(%arg0: i32, %arg1: memref<8x128xf32, #tpu.memory_space<vmem>>, %arg2: memref<1152x128xf32, #tpu.memory_space<vmem>>, %arg3: memref<1x128xf32, #tpu.memory_space<vmem>>, %arg4: memref<1152x128xf32, #tpu.memory_space<vmem>>, %arg5: memref<1x128xf32, #tpu.memory_space<vmem>>, %arg6: memref<1152x128xf32, #tpu.memory_space<vmem>>, %arg7: memref<1x128xf32, #tpu.memory_space<vmem>>, %arg8: memref<8x128xf32, #tpu.memory_space<vmem>>) attributes {dimension_semantics = [#tpu.dimension_semantics<parallel>], iteration_bounds = array<i64: 2>, scalar_prefetch = 0 : i64, scratch_operands = 0 : i64, tpu.core_type = #tpu.core_type<tc>, window_params = [{transform_indices = @transform_0, window_bounds = array<i64: 8, 128>}, {pipeline_mode = #tpu.pipeline_mode<synchronous>, transform_indices = @transform_1, window_bounds = array<i64: 1152, 128>}, {pipeline_mode = #tpu.pipeline_mode<synchronous>, transform_indices = @transform_2, window_bounds = array<i64: 1, 128>}, {pipeline_mode = #tpu.pipeline_mode<synchronous>, transform_indices = @transform_3, window_bounds = array<i64: 1152, 128>}, {pipeline_mode = #tpu.pipeline_mode<synchronous>, transform_indices = @transform_4, window_bounds = array<i64: 1, 128>}, {pipeline_mode = #tpu.pipeline_mode<synchronous>, transform_indices = @transform_5, window_bounds = array<i64: 1152, 128>}, {pipeline_mode = #tpu.pipeline_mode<synchronous>, transform_indices = @transform_6, window_bounds = array<i64: 1, 128>}, {transform_indices = @transform_7, window_bounds = array<i64: 8, 128>}]} {
    %c0 = arith.constant 0 : index
    %c0_0 = arith.constant 0 : index
    %0 = vector.load %arg1[%c0, %c0_0] : memref<8x128xf32, #tpu.memory_space<vmem>>, vector<8x128xf32>
    %c0_1 = arith.constant 0 : index
    %c0_2 = arith.constant 0 : index
    %1 = vector.load %arg2[%c0_1, %c0_2] : memref<1152x128xf32, #tpu.memory_space<vmem>>, vector<1152x128xf32>
    %c0_3 = arith.constant 0 : index
    %c0_4 = arith.constant 0 : index
    %2 = vector.load %arg3[%c0_3, %c0_4] : memref<1x128xf32, #tpu.memory_space<vmem>>, vector<1x128xf32>
    %cst = arith.constant 5.000000e-01 : f32
    %3 = vector.broadcast %cst : f32 to vector<8x128xf32>
    %4 = arith.mulf %3, %0 : vector<8x128xf32>
    %5 = math.tanh %4 : vector<8x128xf32>
    %cst_5 = arith.constant 5.000000e-01 : f32
    %6 = vector.broadcast %cst_5 : f32 to vector<8x128xf32>
    %7 = arith.mulf %6, %5 : vector<8x128xf32>
    %cst_6 = arith.constant 5.000000e-01 : f32
    %8 = vector.broadcast %cst_6 : f32 to vector<8x128xf32>
    %9 = arith.addf %7, %8 : vector<8x128xf32>
    %10 = arith.mulf %0, %9 : vector<8x128xf32>
    %cst_7 = arith.constant -2.200000e+00 : f32
    %11 = vector.broadcast %cst_7 : f32 to vector<8x128xf32>
    %12 = arith.subf %0, %11 : vector<8x128xf32>
    %cst_8 = arith.constant -1.800000e+00 : f32
    %13 = vector.broadcast %cst_8 : f32 to vector<8x128xf32>
    %14 = arith.subf %0, %13 : vector<8x128xf32>
    %cst_9 = arith.constant -1.400000e+00 : f32
    %15 = vector.broadcast %cst_9 : f32 to vector<8x128xf32>
    %16 = arith.subf %0, %15 : vector<8x128xf32>
    %cst_10 = arith.constant -1.000000e+00 : f32
    %17 = vector.broadcast %cst_10 : f32 to vector<8x128xf32>
    %18 = arith.subf %0, %17 : vector<8x128xf32>
    %cst_11 = arith.constant -6.000000e-01 : f32
    %19 = vector.broadcast %cst_11 : f32 to vector<8x128xf32>
    %20 = arith.subf %0, %19 : vector<8x128xf32>
    %cst_12 = arith.constant -2.000000e-01 : f32
    %21 = vector.broadcast %cst_12 : f32 to vector<8x128xf32>
    %22 = arith.subf %0, %21 : vector<8x128xf32>
    %cst_13 = arith.constant 2.000000e-01 : f32
    %23 = vector.broadcast %cst_13 : f32 to vector<8x128xf32>
    %24 = arith.subf %0, %23 : vector<8x128xf32>
    %cst_14 = arith.constant 6.000000e-01 : f32
    %25 = vector.broadcast %cst_14 : f32 to vector<8x128xf32>
    %26 = arith.subf %0, %25 : vector<8x128xf32>
    %cst_15 = arith.constant 1.000000e+00 : f32
    %27 = vector.broadcast %cst_15 : f32 to vector<8x128xf32>
    %28 = arith.subf %0, %27 : vector<8x128xf32>
    %cst_16 = arith.constant 1.400000e+00 : f32
    %29 = vector.broadcast %cst_16 : f32 to vector<8x128xf32>
    %30 = arith.subf %0, %29 : vector<8x128xf32>
    %cst_17 = arith.constant 1.800000e+00 : f32
    %31 = vector.broadcast %cst_17 : f32 to vector<8x128xf32>
    %32 = arith.subf %0, %31 : vector<8x128xf32>
    %cst_18 = arith.constant 2.200000e+00 : f32
    %33 = vector.broadcast %cst_18 : f32 to vector<8x128xf32>
    %34 = arith.subf %0, %33 : vector<8x128xf32>
    %cst_19 = arith.constant -2.200000e+00 : f32
    %35 = vector.broadcast %cst_19 : f32 to vector<8x128xf32>
    %36 = arith.cmpf oge, %0, %35 : vector<8x128xf32>
    %cst_20 = arith.constant -1.800000e+00 : f32
    %37 = vector.broadcast %cst_20 : f32 to vector<8x128xf32>
    %38 = arith.cmpf oge, %0, %37 : vector<8x128xf32>
    %cst_21 = arith.constant -1.400000e+00 : f32
    %39 = vector.broadcast %cst_21 : f32 to vector<8x128xf32>
    %40 = arith.cmpf oge, %0, %39 : vector<8x128xf32>
    %cst_22 = arith.constant -1.000000e+00 : f32
    %41 = vector.broadcast %cst_22 : f32 to vector<8x128xf32>
    %42 = arith.cmpf oge, %0, %41 : vector<8x128xf32>
    %cst_23 = arith.constant -6.000000e-01 : f32
    %43 = vector.broadcast %cst_23 : f32 to vector<8x128xf32>
    %44 = arith.cmpf oge, %0, %43 : vector<8x128xf32>
    %cst_24 = arith.constant -2.000000e-01 : f32
    %45 = vector.broadcast %cst_24 : f32 to vector<8x128xf32>
    %46 = arith.cmpf oge, %0, %45 : vector<8x128xf32>
    %cst_25 = arith.constant 2.000000e-01 : f32
    %47 = vector.broadcast %cst_25 : f32 to vector<8x128xf32>
    %48 = arith.cmpf oge, %0, %47 : vector<8x128xf32>
    %cst_26 = arith.constant 6.000000e-01 : f32
    %49 = vector.broadcast %cst_26 : f32 to vector<8x128xf32>
    %50 = arith.cmpf oge, %0, %49 : vector<8x128xf32>
    %cst_27 = arith.constant 1.000000e+00 : f32
    %51 = vector.broadcast %cst_27 : f32 to vector<8x128xf32>
    %52 = arith.cmpf oge, %0, %51 : vector<8x128xf32>
    %cst_28 = arith.constant 1.400000e+00 : f32
    %53 = vector.broadcast %cst_28 : f32 to vector<8x128xf32>
    %54 = arith.cmpf oge, %0, %53 : vector<8x128xf32>
    %cst_29 = arith.constant 1.800000e+00 : f32
    %55 = vector.broadcast %cst_29 : f32 to vector<8x128xf32>
    %56 = arith.cmpf oge, %0, %55 : vector<8x128xf32>
    %cst_30 = arith.constant 2.200000e+00 : f32
    %57 = vector.broadcast %cst_30 : f32 to vector<8x128xf32>
    %58 = arith.cmpf oge, %0, %57 : vector<8x128xf32>
    %cst_31 = arith.constant dense<true> : vector<8x128xi1>
    %59 = arith.xori %38, %cst_31 : vector<8x128xi1>
    %60 = arith.andi %36, %59 : vector<8x128xi1>
    %cst_32 = arith.constant 1.000000e+00 : f32
    %cst_33 = arith.constant 0.000000e+00 : f32
    %61 = vector.broadcast %cst_32 : f32 to vector<8x128xf32>
    %62 = vector.broadcast %cst_33 : f32 to vector<8x128xf32>
    %63 = arith.select %60, %61, %62 : vector<8x128xi1>, vector<8x128xf32>
    %cst_34 = arith.constant dense<true> : vector<8x128xi1>
    %64 = arith.xori %40, %cst_34 : vector<8x128xi1>
    %65 = arith.andi %38, %64 : vector<8x128xi1>
    %cst_35 = arith.constant 1.000000e+00 : f32
    %cst_36 = arith.constant 0.000000e+00 : f32
    %66 = vector.broadcast %cst_35 : f32 to vector<8x128xf32>
    %67 = vector.broadcast %cst_36 : f32 to vector<8x128xf32>
    %68 = arith.select %65, %66, %67 : vector<8x128xi1>, vector<8x128xf32>
    %cst_37 = arith.constant dense<true> : vector<8x128xi1>
    %69 = arith.xori %42, %cst_37 : vector<8x128xi1>
    %70 = arith.andi %40, %69 : vector<8x128xi1>
    %cst_38 = arith.constant 1.000000e+00 : f32
    %cst_39 = arith.constant 0.000000e+00 : f32
    %71 = vector.broadcast %cst_38 : f32 to vector<8x128xf32>
    %72 = vector.broadcast %cst_39 : f32 to vector<8x128xf32>
    %73 = arith.select %70, %71, %72 : vector<8x128xi1>, vector<8x128xf32>
    %cst_40 = arith.constant dense<true> : vector<8x128xi1>
    %74 = arith.xori %44, %cst_40 : vector<8x128xi1>
    %75 = arith.andi %42, %74 : vector<8x128xi1>
    %cst_41 = arith.constant 1.000000e+00 : f32
    %cst_42 = arith.constant 0.000000e+00 : f32
    %76 = vector.broadcast %cst_41 : f32 to vector<8x128xf32>
    %77 = vector.broadcast %cst_42 : f32 to vector<8x128xf32>
    %78 = arith.select %75, %76, %77 : vector<8x128xi1>, vector<8x128xf32>
    %cst_43 = arith.constant dense<true> : vector<8x128xi1>
    %79 = arith.xori %46, %cst_43 : vector<8x128xi1>
    %80 = arith.andi %44, %79 : vector<8x128xi1>
    %cst_44 = arith.constant 1.000000e+00 : f32
    %cst_45 = arith.constant 0.000000e+00 : f32
    %81 = vector.broadcast %cst_44 : f32 to vector<8x128xf32>
    %82 = vector.broadcast %cst_45 : f32 to vector<8x128xf32>
    %83 = arith.select %80, %81, %82 : vector<8x128xi1>, vector<8x128xf32>
    %cst_46 = arith.constant dense<true> : vector<8x128xi1>
    %84 = arith.xori %48, %cst_46 : vector<8x128xi1>
    %85 = arith.andi %46, %84 : vector<8x128xi1>
    %cst_47 = arith.constant 1.000000e+00 : f32
    %cst_48 = arith.constant 0.000000e+00 : f32
    %86 = vector.broadcast %cst_47 : f32 to vector<8x128xf32>
    %87 = vector.broadcast %cst_48 : f32 to vector<8x128xf32>
    %88 = arith.select %85, %86, %87 : vector<8x128xi1>, vector<8x128xf32>
    %cst_49 = arith.constant dense<true> : vector<8x128xi1>
    %89 = arith.xori %50, %cst_49 : vector<8x128xi1>
    %90 = arith.andi %48, %89 : vector<8x128xi1>
    %cst_50 = arith.constant 1.000000e+00 : f32
    %cst_51 = arith.constant 0.000000e+00 : f32
    %91 = vector.broadcast %cst_50 : f32 to vector<8x128xf32>
    %92 = vector.broadcast %cst_51 : f32 to vector<8x128xf32>
    %93 = arith.select %90, %91, %92 : vector<8x128xi1>, vector<8x128xf32>
    %cst_52 = arith.constant dense<true> : vector<8x128xi1>
    %94 = arith.xori %52, %cst_52 : vector<8x128xi1>
    %95 = arith.andi %50, %94 : vector<8x128xi1>
    %cst_53 = arith.constant 1.000000e+00 : f32
    %cst_54 = arith.constant 0.000000e+00 : f32
    %96 = vector.broadcast %cst_53 : f32 to vector<8x128xf32>
    %97 = vector.broadcast %cst_54 : f32 to vector<8x128xf32>
    %98 = arith.select %95, %96, %97 : vector<8x128xi1>, vector<8x128xf32>
    %cst_55 = arith.constant dense<true> : vector<8x128xi1>
    %99 = arith.xori %54, %cst_55 : vector<8x128xi1>
    %100 = arith.andi %52, %99 : vector<8x128xi1>
    %cst_56 = arith.constant 1.000000e+00 : f32
    %cst_57 = arith.constant 0.000000e+00 : f32
    %101 = vector.broadcast %cst_56 : f32 to vector<8x128xf32>
    %102 = vector.broadcast %cst_57 : f32 to vector<8x128xf32>
    %103 = arith.select %100, %101, %102 : vector<8x128xi1>, vector<8x128xf32>
    %cst_58 = arith.constant dense<true> : vector<8x128xi1>
    %104 = arith.xori %56, %cst_58 : vector<8x128xi1>
    %105 = arith.andi %54, %104 : vector<8x128xi1>
    %cst_59 = arith.constant 1.000000e+00 : f32
    %cst_60 = arith.constant 0.000000e+00 : f32
    %106 = vector.broadcast %cst_59 : f32 to vector<8x128xf32>
    %107 = vector.broadcast %cst_60 : f32 to vector<8x128xf32>
    %108 = arith.select %105, %106, %107 : vector<8x128xi1>, vector<8x128xf32>
    %cst_61 = arith.constant dense<true> : vector<8x128xi1>
    %109 = arith.xori %58, %cst_61 : vector<8x128xi1>
    %110 = arith.andi %56, %109 : vector<8x128xi1>
    %cst_62 = arith.constant 1.000000e+00 : f32
    %cst_63 = arith.constant 0.000000e+00 : f32
    %111 = vector.broadcast %cst_62 : f32 to vector<8x128xf32>
    %112 = vector.broadcast %cst_63 : f32 to vector<8x128xf32>
    %113 = arith.select %110, %111, %112 : vector<8x128xi1>, vector<8x128xf32>
    %cst_64 = arith.constant 2.500000e+00 : f32
    %114 = vector.broadcast %cst_64 : f32 to vector<8x128xf32>
    %115 = arith.mulf %12, %114 : vector<8x128xf32>
    %116 = arith.mulf %115, %63 : vector<8x128xf32>
    %cst_65 = arith.constant -2.500000e+00 : f32
    %117 = vector.broadcast %cst_65 : f32 to vector<8x128xf32>
    %118 = arith.mulf %16, %117 : vector<8x128xf32>
    %119 = arith.mulf %118, %68 : vector<8x128xf32>
    %120 = arith.addf %116, %119 : vector<8x128xf32>
    %cst_66 = arith.constant 2.500000e+00 : f32
    %121 = vector.broadcast %cst_66 : f32 to vector<8x128xf32>
    %122 = arith.mulf %14, %121 : vector<8x128xf32>
    %123 = arith.mulf %122, %68 : vector<8x128xf32>
    %cst_67 = arith.constant -2.500000e+00 : f32
    %124 = vector.broadcast %cst_67 : f32 to vector<8x128xf32>
    %125 = arith.mulf %18, %124 : vector<8x128xf32>
    %126 = arith.mulf %125, %73 : vector<8x128xf32>
    %127 = arith.addf %123, %126 : vector<8x128xf32>
    %cst_68 = arith.constant 2.500000e+00 : f32
    %128 = vector.broadcast %cst_68 : f32 to vector<8x128xf32>
    %129 = arith.mulf %16, %128 : vector<8x128xf32>
    %130 = arith.mulf %129, %73 : vector<8x128xf32>
    %cst_69 = arith.constant -2.500000e+00 : f32
    %131 = vector.broadcast %cst_69 : f32 to vector<8x128xf32>
    %132 = arith.mulf %20, %131 : vector<8x128xf32>
    %133 = arith.mulf %132, %78 : vector<8x128xf32>
    %134 = arith.addf %130, %133 : vector<8x128xf32>
    %cst_70 = arith.constant 2.500000e+00 : f32
    %135 = vector.broadcast %cst_70 : f32 to vector<8x128xf32>
    %136 = arith.mulf %18, %135 : vector<8x128xf32>
    %137 = arith.mulf %136, %78 : vector<8x128xf32>
    %cst_71 = arith.constant -2.500000e+00 : f32
    %138 = vector.broadcast %cst_71 : f32 to vector<8x128xf32>
    %139 = arith.mulf %22, %138 : vector<8x128xf32>
    %140 = arith.mulf %139, %83 : vector<8x128xf32>
    %141 = arith.addf %137, %140 : vector<8x128xf32>
    %cst_72 = arith.constant 2.500000e+00 : f32
    %142 = vector.broadcast %cst_72 : f32 to vector<8x128xf32>
    %143 = arith.mulf %20, %142 : vector<8x128xf32>
    %144 = arith.mulf %143, %83 : vector<8x128xf32>
    %cst_73 = arith.constant -2.500000e+00 : f32
    %145 = vector.broadcast %cst_73 : f32 to vector<8x128xf32>
    %146 = arith.mulf %24, %145 : vector<8x128xf32>
    %147 = arith.mulf %146, %88 : vector<8x128xf32>
    %148 = arith.addf %144, %147 : vector<8x128xf32>
    %cst_74 = arith.constant 2.500000e+00 : f32
    %149 = vector.broadcast %cst_74 : f32 to vector<8x128xf32>
    %150 = arith.mulf %22, %149 : vector<8x128xf32>
    %151 = arith.mulf %150, %88 : vector<8x128xf32>
    %cst_75 = arith.constant -2.500000e+00 : f32
    %152 = vector.broadcast %cst_75 : f32 to vector<8x128xf32>
    %153 = arith.mulf %26, %152 : vector<8x128xf32>
    %154 = arith.mulf %153, %93 : vector<8x128xf32>
    %155 = arith.addf %151, %154 : vector<8x128xf32>
    %cst_76 = arith.constant 2.500000e+00 : f32
    %156 = vector.broadcast %cst_76 : f32 to vector<8x128xf32>
    %157 = arith.mulf %24, %156 : vector<8x128xf32>
    %158 = arith.mulf %157, %93 : vector<8x128xf32>
    %cst_77 = arith.constant -2.500000e+00 : f32
    %159 = vector.broadcast %cst_77 : f32 to vector<8x128xf32>
    %160 = arith.mulf %28, %159 : vector<8x128xf32>
    %161 = arith.mulf %160, %98 : vector<8x128xf32>
    %162 = arith.addf %158, %161 : vector<8x128xf32>
    %cst_78 = arith.constant 2.500000e+00 : f32
    %163 = vector.broadcast %cst_78 : f32 to vector<8x128xf32>
    %164 = arith.mulf %26, %163 : vector<8x128xf32>
    %165 = arith.mulf %164, %98 : vector<8x128xf32>
    %cst_79 = arith.constant -2.500000e+00 : f32
    %166 = vector.broadcast %cst_79 : f32 to vector<8x128xf32>
    %167 = arith.mulf %30, %166 : vector<8x128xf32>
    %168 = arith.mulf %167, %103 : vector<8x128xf32>
    %169 = arith.addf %165, %168 : vector<8x128xf32>
    %cst_80 = arith.constant 2.500000e+00 : f32
    %170 = vector.broadcast %cst_80 : f32 to vector<8x128xf32>
    %171 = arith.mulf %28, %170 : vector<8x128xf32>
    %172 = arith.mulf %171, %103 : vector<8x128xf32>
    %cst_81 = arith.constant -2.500000e+00 : f32
    %173 = vector.broadcast %cst_81 : f32 to vector<8x128xf32>
    %174 = arith.mulf %32, %173 : vector<8x128xf32>
    %175 = arith.mulf %174, %108 : vector<8x128xf32>
    %176 = arith.addf %172, %175 : vector<8x128xf32>
    %cst_82 = arith.constant 2.500000e+00 : f32
    %177 = vector.broadcast %cst_82 : f32 to vector<8x128xf32>
    %178 = arith.mulf %30, %177 : vector<8x128xf32>
    %179 = arith.mulf %178, %108 : vector<8x128xf32>
    %cst_83 = arith.constant -2.500000e+00 : f32
    %180 = vector.broadcast %cst_83 : f32 to vector<8x128xf32>
    %181 = arith.mulf %34, %180 : vector<8x128xf32>
    %182 = arith.mulf %181, %113 : vector<8x128xf32>
    %183 = arith.addf %179, %182 : vector<8x128xf32>
    %cst_84 = arith.constant 1.250000e+00 : f32
    %184 = vector.broadcast %cst_84 : f32 to vector<8x128xf32>
    %185 = arith.mulf %12, %184 : vector<8x128xf32>
    %186 = arith.mulf %185, %120 : vector<8x128xf32>
    %cst_85 = arith.constant -1.250000e+00 : f32
    %187 = vector.broadcast %cst_85 : f32 to vector<8x128xf32>
    %188 = arith.mulf %18, %187 : vector<8x128xf32>
    %189 = arith.mulf %188, %127 : vector<8x128xf32>
    %190 = arith.addf %186, %189 : vector<8x128xf32>
    %cst_86 = arith.constant 1.250000e+00 : f32
    %191 = vector.broadcast %cst_86 : f32 to vector<8x128xf32>
    %192 = arith.mulf %14, %191 : vector<8x128xf32>
    %193 = arith.mulf %192, %127 : vector<8x128xf32>
    %cst_87 = arith.constant -1.250000e+00 : f32
    %194 = vector.broadcast %cst_87 : f32 to vector<8x128xf32>
    %195 = arith.mulf %20, %194 : vector<8x128xf32>
    %196 = arith.mulf %195, %134 : vector<8x128xf32>
    %197 = arith.addf %193, %196 : vector<8x128xf32>
    %cst_88 = arith.constant 1.250000e+00 : f32
    %198 = vector.broadcast %cst_88 : f32 to vector<8x128xf32>
    %199 = arith.mulf %16, %198 : vector<8x128xf32>
    %200 = arith.mulf %199, %134 : vector<8x128xf32>
    %cst_89 = arith.constant -1.250000e+00 : f32
    %201 = vector.broadcast %cst_89 : f32 to vector<8x128xf32>
    %202 = arith.mulf %22, %201 : vector<8x128xf32>
    %203 = arith.mulf %202, %141 : vector<8x128xf32>
    %204 = arith.addf %200, %203 : vector<8x128xf32>
    %cst_90 = arith.constant 1.250000e+00 : f32
    %205 = vector.broadcast %cst_90 : f32 to vector<8x128xf32>
    %206 = arith.mulf %18, %205 : vector<8x128xf32>
    %207 = arith.mulf %206, %141 : vector<8x128xf32>
    %cst_91 = arith.constant -1.250000e+00 : f32
    %208 = vector.broadcast %cst_91 : f32 to vector<8x128xf32>
    %209 = arith.mulf %24, %208 : vector<8x128xf32>
    %210 = arith.mulf %209, %148 : vector<8x128xf32>
    %211 = arith.addf %207, %210 : vector<8x128xf32>
    %cst_92 = arith.constant 1.250000e+00 : f32
    %212 = vector.broadcast %cst_92 : f32 to vector<8x128xf32>
    %213 = arith.mulf %20, %212 : vector<8x128xf32>
    %214 = arith.mulf %213, %148 : vector<8x128xf32>
    %cst_93 = arith.constant -1.250000e+00 : f32
    %215 = vector.broadcast %cst_93 : f32 to vector<8x128xf32>
    %216 = arith.mulf %26, %215 : vector<8x128xf32>
    %217 = arith.mulf %216, %155 : vector<8x128xf32>
    %218 = arith.addf %214, %217 : vector<8x128xf32>
    %cst_94 = arith.constant 1.250000e+00 : f32
    %219 = vector.broadcast %cst_94 : f32 to vector<8x128xf32>
    %220 = arith.mulf %22, %219 : vector<8x128xf32>
    %221 = arith.mulf %220, %155 : vector<8x128xf32>
    %cst_95 = arith.constant -1.250000e+00 : f32
    %222 = vector.broadcast %cst_95 : f32 to vector<8x128xf32>
    %223 = arith.mulf %28, %222 : vector<8x128xf32>
    %224 = arith.mulf %223, %162 : vector<8x128xf32>
    %225 = arith.addf %221, %224 : vector<8x128xf32>
    %cst_96 = arith.constant 1.250000e+00 : f32
    %226 = vector.broadcast %cst_96 : f32 to vector<8x128xf32>
    %227 = arith.mulf %24, %226 : vector<8x128xf32>
    %228 = arith.mulf %227, %162 : vector<8x128xf32>
    %cst_97 = arith.constant -1.250000e+00 : f32
    %229 = vector.broadcast %cst_97 : f32 to vector<8x128xf32>
    %230 = arith.mulf %30, %229 : vector<8x128xf32>
    %231 = arith.mulf %230, %169 : vector<8x128xf32>
    %232 = arith.addf %228, %231 : vector<8x128xf32>
    %cst_98 = arith.constant 1.250000e+00 : f32
    %233 = vector.broadcast %cst_98 : f32 to vector<8x128xf32>
    %234 = arith.mulf %26, %233 : vector<8x128xf32>
    %235 = arith.mulf %234, %169 : vector<8x128xf32>
    %cst_99 = arith.constant -1.250000e+00 : f32
    %236 = vector.broadcast %cst_99 : f32 to vector<8x128xf32>
    %237 = arith.mulf %32, %236 : vector<8x128xf32>
    %238 = arith.mulf %237, %176 : vector<8x128xf32>
    %239 = arith.addf %235, %238 : vector<8x128xf32>
    %cst_100 = arith.constant 1.250000e+00 : f32
    %240 = vector.broadcast %cst_100 : f32 to vector<8x128xf32>
    %241 = arith.mulf %28, %240 : vector<8x128xf32>
    %242 = arith.mulf %241, %176 : vector<8x128xf32>
    %cst_101 = arith.constant -1.250000e+00 : f32
    %243 = vector.broadcast %cst_101 : f32 to vector<8x128xf32>
    %244 = arith.mulf %34, %243 : vector<8x128xf32>
    %245 = arith.mulf %244, %183 : vector<8x128xf32>
    %246 = arith.addf %242, %245 : vector<8x128xf32>
    %cst_102 = arith.constant 0.833333313 : f32
    %247 = vector.broadcast %cst_102 : f32 to vector<8x128xf32>
    %248 = arith.mulf %12, %247 : vector<8x128xf32>
    %249 = arith.mulf %248, %190 : vector<8x128xf32>
    %cst_103 = arith.constant -0.833333313 : f32
    %250 = vector.broadcast %cst_103 : f32 to vector<8x128xf32>
    %251 = arith.mulf %20, %250 : vector<8x128xf32>
    %252 = arith.mulf %251, %197 : vector<8x128xf32>
    %253 = arith.addf %249, %252 : vector<8x128xf32>
    %cst_104 = arith.constant 0.833333313 : f32
    %254 = vector.broadcast %cst_104 : f32 to vector<8x128xf32>
    %255 = arith.mulf %14, %254 : vector<8x128xf32>
    %256 = arith.mulf %255, %197 : vector<8x128xf32>
    %cst_105 = arith.constant -0.833333313 : f32
    %257 = vector.broadcast %cst_105 : f32 to vector<8x128xf32>
    %258 = arith.mulf %22, %257 : vector<8x128xf32>
    %259 = arith.mulf %258, %204 : vector<8x128xf32>
    %260 = arith.addf %256, %259 : vector<8x128xf32>
    %cst_106 = arith.constant 0.833333313 : f32
    %261 = vector.broadcast %cst_106 : f32 to vector<8x128xf32>
    %262 = arith.mulf %16, %261 : vector<8x128xf32>
    %263 = arith.mulf %262, %204 : vector<8x128xf32>
    %cst_107 = arith.constant -0.833333313 : f32
    %264 = vector.broadcast %cst_107 : f32 to vector<8x128xf32>
    %265 = arith.mulf %24, %264 : vector<8x128xf32>
    %266 = arith.mulf %265, %211 : vector<8x128xf32>
    %267 = arith.addf %263, %266 : vector<8x128xf32>
    %cst_108 = arith.constant 0.833333313 : f32
    %268 = vector.broadcast %cst_108 : f32 to vector<8x128xf32>
    %269 = arith.mulf %18, %268 : vector<8x128xf32>
    %270 = arith.mulf %269, %211 : vector<8x128xf32>
    %cst_109 = arith.constant -0.833333313 : f32
    %271 = vector.broadcast %cst_109 : f32 to vector<8x128xf32>
    %272 = arith.mulf %26, %271 : vector<8x128xf32>
    %273 = arith.mulf %272, %218 : vector<8x128xf32>
    %274 = arith.addf %270, %273 : vector<8x128xf32>
    %cst_110 = arith.constant 0.833333313 : f32
    %275 = vector.broadcast %cst_110 : f32 to vector<8x128xf32>
    %276 = arith.mulf %20, %275 : vector<8x128xf32>
    %277 = arith.mulf %276, %218 : vector<8x128xf32>
    %cst_111 = arith.constant -0.833333313 : f32
    %278 = vector.broadcast %cst_111 : f32 to vector<8x128xf32>
    %279 = arith.mulf %28, %278 : vector<8x128xf32>
    %280 = arith.mulf %279, %225 : vector<8x128xf32>
    %281 = arith.addf %277, %280 : vector<8x128xf32>
    %cst_112 = arith.constant 0.833333313 : f32
    %282 = vector.broadcast %cst_112 : f32 to vector<8x128xf32>
    %283 = arith.mulf %22, %282 : vector<8x128xf32>
    %284 = arith.mulf %283, %225 : vector<8x128xf32>
    %cst_113 = arith.constant -0.833333313 : f32
    %285 = vector.broadcast %cst_113 : f32 to vector<8x128xf32>
    %286 = arith.mulf %30, %285 : vector<8x128xf32>
    %287 = arith.mulf %286, %232 : vector<8x128xf32>
    %288 = arith.addf %284, %287 : vector<8x128xf32>
    %cst_114 = arith.constant 0.833333313 : f32
    %289 = vector.broadcast %cst_114 : f32 to vector<8x128xf32>
    %290 = arith.mulf %24, %289 : vector<8x128xf32>
    %291 = arith.mulf %290, %232 : vector<8x128xf32>
    %cst_115 = arith.constant -0.833333313 : f32
    %292 = vector.broadcast %cst_115 : f32 to vector<8x128xf32>
    %293 = arith.mulf %32, %292 : vector<8x128xf32>
    %294 = arith.mulf %293, %239 : vector<8x128xf32>
    %295 = arith.addf %291, %294 : vector<8x128xf32>
    %cst_116 = arith.constant 0.833333313 : f32
    %296 = vector.broadcast %cst_116 : f32 to vector<8x128xf32>
    %297 = arith.mulf %26, %296 : vector<8x128xf32>
    %298 = arith.mulf %297, %239 : vector<8x128xf32>
    %cst_117 = arith.constant -0.833333313 : f32
    %299 = vector.broadcast %cst_117 : f32 to vector<8x128xf32>
    %300 = arith.mulf %34, %299 : vector<8x128xf32>
    %301 = arith.mulf %300, %246 : vector<8x128xf32>
    %302 = arith.addf %298, %301 : vector<8x128xf32>
    %303 = tpu.concatenate %10, %253, %260, %267, %274, %281, %288, %295, %302 in 1 : vector<8x128xf32>, vector<8x128xf32>, vector<8x128xf32>, vector<8x128xf32>, vector<8x128xf32>, vector<8x128xf32>, vector<8x128xf32>, vector<8x128xf32>, vector<8x128xf32> -> vector<8x1152xf32>
    %cst_118 = arith.constant dense<0.000000e+00> : vector<8x128xf32>
    %304 = tpu.matmul %303, %1, %cst_118 {dimension_numbers = #tpu.dot_dimension_numbers<[1], [0], [0], [1], [0, 0, 1, 1], [], []>} : vector<8x1152xf32>, vector<1152x128xf32>, vector<8x128xf32> -> vector<8x128xf32>
    %305 = vector.broadcast %2 : vector<1x128xf32> to vector<8x128xf32>
    %306 = arith.addf %304, %305 : vector<8x128xf32>
    %c0_119 = arith.constant 0 : index
    %c0_120 = arith.constant 0 : index
    %307 = vector.load %arg4[%c0_119, %c0_120] : memref<1152x128xf32, #tpu.memory_space<vmem>>, vector<1152x128xf32>
    %c0_121 = arith.constant 0 : index
    %c0_122 = arith.constant 0 : index
    %308 = vector.load %arg5[%c0_121, %c0_122] : memref<1x128xf32, #tpu.memory_space<vmem>>, vector<1x128xf32>
    %cst_123 = arith.constant 5.000000e-01 : f32
    %309 = vector.broadcast %cst_123 : f32 to vector<8x128xf32>
    %310 = arith.mulf %309, %306 : vector<8x128xf32>
    %311 = math.tanh %310 : vector<8x128xf32>
    %cst_124 = arith.constant 5.000000e-01 : f32
    %312 = vector.broadcast %cst_124 : f32 to vector<8x128xf32>
    %313 = arith.mulf %312, %311 : vector<8x128xf32>
    %cst_125 = arith.constant 5.000000e-01 : f32
    %314 = vector.broadcast %cst_125 : f32 to vector<8x128xf32>
    %315 = arith.addf %313, %314 : vector<8x128xf32>
    %316 = arith.mulf %306, %315 : vector<8x128xf32>
    %cst_126 = arith.constant -2.200000e+00 : f32
    %317 = vector.broadcast %cst_126 : f32 to vector<8x128xf32>
    %318 = arith.subf %306, %317 : vector<8x128xf32>
    %cst_127 = arith.constant -1.800000e+00 : f32
    %319 = vector.broadcast %cst_127 : f32 to vector<8x128xf32>
    %320 = arith.subf %306, %319 : vector<8x128xf32>
    %cst_128 = arith.constant -1.400000e+00 : f32
    %321 = vector.broadcast %cst_128 : f32 to vector<8x128xf32>
    %322 = arith.subf %306, %321 : vector<8x128xf32>
    %cst_129 = arith.constant -1.000000e+00 : f32
    %323 = vector.broadcast %cst_129 : f32 to vector<8x128xf32>
    %324 = arith.subf %306, %323 : vector<8x128xf32>
    %cst_130 = arith.constant -6.000000e-01 : f32
    %325 = vector.broadcast %cst_130 : f32 to vector<8x128xf32>
    %326 = arith.subf %306, %325 : vector<8x128xf32>
    %cst_131 = arith.constant -2.000000e-01 : f32
    %327 = vector.broadcast %cst_131 : f32 to vector<8x128xf32>
    %328 = arith.subf %306, %327 : vector<8x128xf32>
    %cst_132 = arith.constant 2.000000e-01 : f32
    %329 = vector.broadcast %cst_132 : f32 to vector<8x128xf32>
    %330 = arith.subf %306, %329 : vector<8x128xf32>
    %cst_133 = arith.constant 6.000000e-01 : f32
    %331 = vector.broadcast %cst_133 : f32 to vector<8x128xf32>
    %332 = arith.subf %306, %331 : vector<8x128xf32>
    %cst_134 = arith.constant 1.000000e+00 : f32
    %333 = vector.broadcast %cst_134 : f32 to vector<8x128xf32>
    %334 = arith.subf %306, %333 : vector<8x128xf32>
    %cst_135 = arith.constant 1.400000e+00 : f32
    %335 = vector.broadcast %cst_135 : f32 to vector<8x128xf32>
    %336 = arith.subf %306, %335 : vector<8x128xf32>
    %cst_136 = arith.constant 1.800000e+00 : f32
    %337 = vector.broadcast %cst_136 : f32 to vector<8x128xf32>
    %338 = arith.subf %306, %337 : vector<8x128xf32>
    %cst_137 = arith.constant 2.200000e+00 : f32
    %339 = vector.broadcast %cst_137 : f32 to vector<8x128xf32>
    %340 = arith.subf %306, %339 : vector<8x128xf32>
    %cst_138 = arith.constant -2.200000e+00 : f32
    %341 = vector.broadcast %cst_138 : f32 to vector<8x128xf32>
    %342 = arith.cmpf oge, %306, %341 : vector<8x128xf32>
    %cst_139 = arith.constant -1.800000e+00 : f32
    %343 = vector.broadcast %cst_139 : f32 to vector<8x128xf32>
    %344 = arith.cmpf oge, %306, %343 : vector<8x128xf32>
    %cst_140 = arith.constant -1.400000e+00 : f32
    %345 = vector.broadcast %cst_140 : f32 to vector<8x128xf32>
    %346 = arith.cmpf oge, %306, %345 : vector<8x128xf32>
    %cst_141 = arith.constant -1.000000e+00 : f32
    %347 = vector.broadcast %cst_141 : f32 to vector<8x128xf32>
    %348 = arith.cmpf oge, %306, %347 : vector<8x128xf32>
    %cst_142 = arith.constant -6.000000e-01 : f32
    %349 = vector.broadcast %cst_142 : f32 to vector<8x128xf32>
    %350 = arith.cmpf oge, %306, %349 : vector<8x128xf32>
    %cst_143 = arith.constant -2.000000e-01 : f32
    %351 = vector.broadcast %cst_143 : f32 to vector<8x128xf32>
    %352 = arith.cmpf oge, %306, %351 : vector<8x128xf32>
    %cst_144 = arith.constant 2.000000e-01 : f32
    %353 = vector.broadcast %cst_144 : f32 to vector<8x128xf32>
    %354 = arith.cmpf oge, %306, %353 : vector<8x128xf32>
    %cst_145 = arith.constant 6.000000e-01 : f32
    %355 = vector.broadcast %cst_145 : f32 to vector<8x128xf32>
    %356 = arith.cmpf oge, %306, %355 : vector<8x128xf32>
    %cst_146 = arith.constant 1.000000e+00 : f32
    %357 = vector.broadcast %cst_146 : f32 to vector<8x128xf32>
    %358 = arith.cmpf oge, %306, %357 : vector<8x128xf32>
    %cst_147 = arith.constant 1.400000e+00 : f32
    %359 = vector.broadcast %cst_147 : f32 to vector<8x128xf32>
    %360 = arith.cmpf oge, %306, %359 : vector<8x128xf32>
    %cst_148 = arith.constant 1.800000e+00 : f32
    %361 = vector.broadcast %cst_148 : f32 to vector<8x128xf32>
    %362 = arith.cmpf oge, %306, %361 : vector<8x128xf32>
    %cst_149 = arith.constant 2.200000e+00 : f32
    %363 = vector.broadcast %cst_149 : f32 to vector<8x128xf32>
    %364 = arith.cmpf oge, %306, %363 : vector<8x128xf32>
    %cst_150 = arith.constant dense<true> : vector<8x128xi1>
    %365 = arith.xori %344, %cst_150 : vector<8x128xi1>
    %366 = arith.andi %342, %365 : vector<8x128xi1>
    %cst_151 = arith.constant 1.000000e+00 : f32
    %cst_152 = arith.constant 0.000000e+00 : f32
    %367 = vector.broadcast %cst_151 : f32 to vector<8x128xf32>
    %368 = vector.broadcast %cst_152 : f32 to vector<8x128xf32>
    %369 = arith.select %366, %367, %368 : vector<8x128xi1>, vector<8x128xf32>
    %cst_153 = arith.constant dense<true> : vector<8x128xi1>
    %370 = arith.xori %346, %cst_153 : vector<8x128xi1>
    %371 = arith.andi %344, %370 : vector<8x128xi1>
    %cst_154 = arith.constant 1.000000e+00 : f32
    %cst_155 = arith.constant 0.000000e+00 : f32
    %372 = vector.broadcast %cst_154 : f32 to vector<8x128xf32>
    %373 = vector.broadcast %cst_155 : f32 to vector<8x128xf32>
    %374 = arith.select %371, %372, %373 : vector<8x128xi1>, vector<8x128xf32>
    %cst_156 = arith.constant dense<true> : vector<8x128xi1>
    %375 = arith.xori %348, %cst_156 : vector<8x128xi1>
    %376 = arith.andi %346, %375 : vector<8x128xi1>
    %cst_157 = arith.constant 1.000000e+00 : f32
    %cst_158 = arith.constant 0.000000e+00 : f32
    %377 = vector.broadcast %cst_157 : f32 to vector<8x128xf32>
    %378 = vector.broadcast %cst_158 : f32 to vector<8x128xf32>
    %379 = arith.select %376, %377, %378 : vector<8x128xi1>, vector<8x128xf32>
    %cst_159 = arith.constant dense<true> : vector<8x128xi1>
    %380 = arith.xori %350, %cst_159 : vector<8x128xi1>
    %381 = arith.andi %348, %380 : vector<8x128xi1>
    %cst_160 = arith.constant 1.000000e+00 : f32
    %cst_161 = arith.constant 0.000000e+00 : f32
    %382 = vector.broadcast %cst_160 : f32 to vector<8x128xf32>
    %383 = vector.broadcast %cst_161 : f32 to vector<8x128xf32>
    %384 = arith.select %381, %382, %383 : vector<8x128xi1>, vector<8x128xf32>
    %cst_162 = arith.constant dense<true> : vector<8x128xi1>
    %385 = arith.xori %352, %cst_162 : vector<8x128xi1>
    %386 = arith.andi %350, %385 : vector<8x128xi1>
    %cst_163 = arith.constant 1.000000e+00 : f32
    %cst_164 = arith.constant 0.000000e+00 : f32
    %387 = vector.broadcast %cst_163 : f32 to vector<8x128xf32>
    %388 = vector.broadcast %cst_164 : f32 to vector<8x128xf32>
    %389 = arith.select %386, %387, %388 : vector<8x128xi1>, vector<8x128xf32>
    %cst_165 = arith.constant dense<true> : vector<8x128xi1>
    %390 = arith.xori %354, %cst_165 : vector<8x128xi1>
    %391 = arith.andi %352, %390 : vector<8x128xi1>
    %cst_166 = arith.constant 1.000000e+00 : f32
    %cst_167 = arith.constant 0.000000e+00 : f32
    %392 = vector.broadcast %cst_166 : f32 to vector<8x128xf32>
    %393 = vector.broadcast %cst_167 : f32 to vector<8x128xf32>
    %394 = arith.select %391, %392, %393 : vector<8x128xi1>, vector<8x128xf32>
    %cst_168 = arith.constant dense<true> : vector<8x128xi1>
    %395 = arith.xori %356, %cst_168 : vector<8x128xi1>
    %396 = arith.andi %354, %395 : vector<8x128xi1>
    %cst_169 = arith.constant 1.000000e+00 : f32
    %cst_170 = arith.constant 0.000000e+00 : f32
    %397 = vector.broadcast %cst_169 : f32 to vector<8x128xf32>
    %398 = vector.broadcast %cst_170 : f32 to vector<8x128xf32>
    %399 = arith.select %396, %397, %398 : vector<8x128xi1>, vector<8x128xf32>
    %cst_171 = arith.constant dense<true> : vector<8x128xi1>
    %400 = arith.xori %358, %cst_171 : vector<8x128xi1>
    %401 = arith.andi %356, %400 : vector<8x128xi1>
    %cst_172 = arith.constant 1.000000e+00 : f32
    %cst_173 = arith.constant 0.000000e+00 : f32
    %402 = vector.broadcast %cst_172 : f32 to vector<8x128xf32>
    %403 = vector.broadcast %cst_173 : f32 to vector<8x128xf32>
    %404 = arith.select %401, %402, %403 : vector<8x128xi1>, vector<8x128xf32>
    %cst_174 = arith.constant dense<true> : vector<8x128xi1>
    %405 = arith.xori %360, %cst_174 : vector<8x128xi1>
    %406 = arith.andi %358, %405 : vector<8x128xi1>
    %cst_175 = arith.constant 1.000000e+00 : f32
    %cst_176 = arith.constant 0.000000e+00 : f32
    %407 = vector.broadcast %cst_175 : f32 to vector<8x128xf32>
    %408 = vector.broadcast %cst_176 : f32 to vector<8x128xf32>
    %409 = arith.select %406, %407, %408 : vector<8x128xi1>, vector<8x128xf32>
    %cst_177 = arith.constant dense<true> : vector<8x128xi1>
    %410 = arith.xori %362, %cst_177 : vector<8x128xi1>
    %411 = arith.andi %360, %410 : vector<8x128xi1>
    %cst_178 = arith.constant 1.000000e+00 : f32
    %cst_179 = arith.constant 0.000000e+00 : f32
    %412 = vector.broadcast %cst_178 : f32 to vector<8x128xf32>
    %413 = vector.broadcast %cst_179 : f32 to vector<8x128xf32>
    %414 = arith.select %411, %412, %413 : vector<8x128xi1>, vector<8x128xf32>
    %cst_180 = arith.constant dense<true> : vector<8x128xi1>
    %415 = arith.xori %364, %cst_180 : vector<8x128xi1>
    %416 = arith.andi %362, %415 : vector<8x128xi1>
    %cst_181 = arith.constant 1.000000e+00 : f32
    %cst_182 = arith.constant 0.000000e+00 : f32
    %417 = vector.broadcast %cst_181 : f32 to vector<8x128xf32>
    %418 = vector.broadcast %cst_182 : f32 to vector<8x128xf32>
    %419 = arith.select %416, %417, %418 : vector<8x128xi1>, vector<8x128xf32>
    %cst_183 = arith.constant 2.500000e+00 : f32
    %420 = vector.broadcast %cst_183 : f32 to vector<8x128xf32>
    %421 = arith.mulf %318, %420 : vector<8x128xf32>
    %422 = arith.mulf %421, %369 : vector<8x128xf32>
    %cst_184 = arith.constant -2.500000e+00 : f32
    %423 = vector.broadcast %cst_184 : f32 to vector<8x128xf32>
    %424 = arith.mulf %322, %423 : vector<8x128xf32>
    %425 = arith.mulf %424, %374 : vector<8x128xf32>
    %426 = arith.addf %422, %425 : vector<8x128xf32>
    %cst_185 = arith.constant 2.500000e+00 : f32
    %427 = vector.broadcast %cst_185 : f32 to vector<8x128xf32>
    %428 = arith.mulf %320, %427 : vector<8x128xf32>
    %429 = arith.mulf %428, %374 : vector<8x128xf32>
    %cst_186 = arith.constant -2.500000e+00 : f32
    %430 = vector.broadcast %cst_186 : f32 to vector<8x128xf32>
    %431 = arith.mulf %324, %430 : vector<8x128xf32>
    %432 = arith.mulf %431, %379 : vector<8x128xf32>
    %433 = arith.addf %429, %432 : vector<8x128xf32>
    %cst_187 = arith.constant 2.500000e+00 : f32
    %434 = vector.broadcast %cst_187 : f32 to vector<8x128xf32>
    %435 = arith.mulf %322, %434 : vector<8x128xf32>
    %436 = arith.mulf %435, %379 : vector<8x128xf32>
    %cst_188 = arith.constant -2.500000e+00 : f32
    %437 = vector.broadcast %cst_188 : f32 to vector<8x128xf32>
    %438 = arith.mulf %326, %437 : vector<8x128xf32>
    %439 = arith.mulf %438, %384 : vector<8x128xf32>
    %440 = arith.addf %436, %439 : vector<8x128xf32>
    %cst_189 = arith.constant 2.500000e+00 : f32
    %441 = vector.broadcast %cst_189 : f32 to vector<8x128xf32>
    %442 = arith.mulf %324, %441 : vector<8x128xf32>
    %443 = arith.mulf %442, %384 : vector<8x128xf32>
    %cst_190 = arith.constant -2.500000e+00 : f32
    %444 = vector.broadcast %cst_190 : f32 to vector<8x128xf32>
    %445 = arith.mulf %328, %444 : vector<8x128xf32>
    %446 = arith.mulf %445, %389 : vector<8x128xf32>
    %447 = arith.addf %443, %446 : vector<8x128xf32>
    %cst_191 = arith.constant 2.500000e+00 : f32
    %448 = vector.broadcast %cst_191 : f32 to vector<8x128xf32>
    %449 = arith.mulf %326, %448 : vector<8x128xf32>
    %450 = arith.mulf %449, %389 : vector<8x128xf32>
    %cst_192 = arith.constant -2.500000e+00 : f32
    %451 = vector.broadcast %cst_192 : f32 to vector<8x128xf32>
    %452 = arith.mulf %330, %451 : vector<8x128xf32>
    %453 = arith.mulf %452, %394 : vector<8x128xf32>
    %454 = arith.addf %450, %453 : vector<8x128xf32>
    %cst_193 = arith.constant 2.500000e+00 : f32
    %455 = vector.broadcast %cst_193 : f32 to vector<8x128xf32>
    %456 = arith.mulf %328, %455 : vector<8x128xf32>
    %457 = arith.mulf %456, %394 : vector<8x128xf32>
    %cst_194 = arith.constant -2.500000e+00 : f32
    %458 = vector.broadcast %cst_194 : f32 to vector<8x128xf32>
    %459 = arith.mulf %332, %458 : vector<8x128xf32>
    %460 = arith.mulf %459, %399 : vector<8x128xf32>
    %461 = arith.addf %457, %460 : vector<8x128xf32>
    %cst_195 = arith.constant 2.500000e+00 : f32
    %462 = vector.broadcast %cst_195 : f32 to vector<8x128xf32>
    %463 = arith.mulf %330, %462 : vector<8x128xf32>
    %464 = arith.mulf %463, %399 : vector<8x128xf32>
    %cst_196 = arith.constant -2.500000e+00 : f32
    %465 = vector.broadcast %cst_196 : f32 to vector<8x128xf32>
    %466 = arith.mulf %334, %465 : vector<8x128xf32>
    %467 = arith.mulf %466, %404 : vector<8x128xf32>
    %468 = arith.addf %464, %467 : vector<8x128xf32>
    %cst_197 = arith.constant 2.500000e+00 : f32
    %469 = vector.broadcast %cst_197 : f32 to vector<8x128xf32>
    %470 = arith.mulf %332, %469 : vector<8x128xf32>
    %471 = arith.mulf %470, %404 : vector<8x128xf32>
    %cst_198 = arith.constant -2.500000e+00 : f32
    %472 = vector.broadcast %cst_198 : f32 to vector<8x128xf32>
    %473 = arith.mulf %336, %472 : vector<8x128xf32>
    %474 = arith.mulf %473, %409 : vector<8x128xf32>
    %475 = arith.addf %471, %474 : vector<8x128xf32>
    %cst_199 = arith.constant 2.500000e+00 : f32
    %476 = vector.broadcast %cst_199 : f32 to vector<8x128xf32>
    %477 = arith.mulf %334, %476 : vector<8x128xf32>
    %478 = arith.mulf %477, %409 : vector<8x128xf32>
    %cst_200 = arith.constant -2.500000e+00 : f32
    %479 = vector.broadcast %cst_200 : f32 to vector<8x128xf32>
    %480 = arith.mulf %338, %479 : vector<8x128xf32>
    %481 = arith.mulf %480, %414 : vector<8x128xf32>
    %482 = arith.addf %478, %481 : vector<8x128xf32>
    %cst_201 = arith.constant 2.500000e+00 : f32
    %483 = vector.broadcast %cst_201 : f32 to vector<8x128xf32>
    %484 = arith.mulf %336, %483 : vector<8x128xf32>
    %485 = arith.mulf %484, %414 : vector<8x128xf32>
    %cst_202 = arith.constant -2.500000e+00 : f32
    %486 = vector.broadcast %cst_202 : f32 to vector<8x128xf32>
    %487 = arith.mulf %340, %486 : vector<8x128xf32>
    %488 = arith.mulf %487, %419 : vector<8x128xf32>
    %489 = arith.addf %485, %488 : vector<8x128xf32>
    %cst_203 = arith.constant 1.250000e+00 : f32
    %490 = vector.broadcast %cst_203 : f32 to vector<8x128xf32>
    %491 = arith.mulf %318, %490 : vector<8x128xf32>
    %492 = arith.mulf %491, %426 : vector<8x128xf32>
    %cst_204 = arith.constant -1.250000e+00 : f32
    %493 = vector.broadcast %cst_204 : f32 to vector<8x128xf32>
    %494 = arith.mulf %324, %493 : vector<8x128xf32>
    %495 = arith.mulf %494, %433 : vector<8x128xf32>
    %496 = arith.addf %492, %495 : vector<8x128xf32>
    %cst_205 = arith.constant 1.250000e+00 : f32
    %497 = vector.broadcast %cst_205 : f32 to vector<8x128xf32>
    %498 = arith.mulf %320, %497 : vector<8x128xf32>
    %499 = arith.mulf %498, %433 : vector<8x128xf32>
    %cst_206 = arith.constant -1.250000e+00 : f32
    %500 = vector.broadcast %cst_206 : f32 to vector<8x128xf32>
    %501 = arith.mulf %326, %500 : vector<8x128xf32>
    %502 = arith.mulf %501, %440 : vector<8x128xf32>
    %503 = arith.addf %499, %502 : vector<8x128xf32>
    %cst_207 = arith.constant 1.250000e+00 : f32
    %504 = vector.broadcast %cst_207 : f32 to vector<8x128xf32>
    %505 = arith.mulf %322, %504 : vector<8x128xf32>
    %506 = arith.mulf %505, %440 : vector<8x128xf32>
    %cst_208 = arith.constant -1.250000e+00 : f32
    %507 = vector.broadcast %cst_208 : f32 to vector<8x128xf32>
    %508 = arith.mulf %328, %507 : vector<8x128xf32>
    %509 = arith.mulf %508, %447 : vector<8x128xf32>
    %510 = arith.addf %506, %509 : vector<8x128xf32>
    %cst_209 = arith.constant 1.250000e+00 : f32
    %511 = vector.broadcast %cst_209 : f32 to vector<8x128xf32>
    %512 = arith.mulf %324, %511 : vector<8x128xf32>
    %513 = arith.mulf %512, %447 : vector<8x128xf32>
    %cst_210 = arith.constant -1.250000e+00 : f32
    %514 = vector.broadcast %cst_210 : f32 to vector<8x128xf32>
    %515 = arith.mulf %330, %514 : vector<8x128xf32>
    %516 = arith.mulf %515, %454 : vector<8x128xf32>
    %517 = arith.addf %513, %516 : vector<8x128xf32>
    %cst_211 = arith.constant 1.250000e+00 : f32
    %518 = vector.broadcast %cst_211 : f32 to vector<8x128xf32>
    %519 = arith.mulf %326, %518 : vector<8x128xf32>
    %520 = arith.mulf %519, %454 : vector<8x128xf32>
    %cst_212 = arith.constant -1.250000e+00 : f32
    %521 = vector.broadcast %cst_212 : f32 to vector<8x128xf32>
    %522 = arith.mulf %332, %521 : vector<8x128xf32>
    %523 = arith.mulf %522, %461 : vector<8x128xf32>
    %524 = arith.addf %520, %523 : vector<8x128xf32>
    %cst_213 = arith.constant 1.250000e+00 : f32
    %525 = vector.broadcast %cst_213 : f32 to vector<8x128xf32>
    %526 = arith.mulf %328, %525 : vector<8x128xf32>
    %527 = arith.mulf %526, %461 : vector<8x128xf32>
    %cst_214 = arith.constant -1.250000e+00 : f32
    %528 = vector.broadcast %cst_214 : f32 to vector<8x128xf32>
    %529 = arith.mulf %334, %528 : vector<8x128xf32>
    %530 = arith.mulf %529, %468 : vector<8x128xf32>
    %531 = arith.addf %527, %530 : vector<8x128xf32>
    %cst_215 = arith.constant 1.250000e+00 : f32
    %532 = vector.broadcast %cst_215 : f32 to vector<8x128xf32>
    %533 = arith.mulf %330, %532 : vector<8x128xf32>
    %534 = arith.mulf %533, %468 : vector<8x128xf32>
    %cst_216 = arith.constant -1.250000e+00 : f32
    %535 = vector.broadcast %cst_216 : f32 to vector<8x128xf32>
    %536 = arith.mulf %336, %535 : vector<8x128xf32>
    %537 = arith.mulf %536, %475 : vector<8x128xf32>
    %538 = arith.addf %534, %537 : vector<8x128xf32>
    %cst_217 = arith.constant 1.250000e+00 : f32
    %539 = vector.broadcast %cst_217 : f32 to vector<8x128xf32>
    %540 = arith.mulf %332, %539 : vector<8x128xf32>
    %541 = arith.mulf %540, %475 : vector<8x128xf32>
    %cst_218 = arith.constant -1.250000e+00 : f32
    %542 = vector.broadcast %cst_218 : f32 to vector<8x128xf32>
    %543 = arith.mulf %338, %542 : vector<8x128xf32>
    %544 = arith.mulf %543, %482 : vector<8x128xf32>
    %545 = arith.addf %541, %544 : vector<8x128xf32>
    %cst_219 = arith.constant 1.250000e+00 : f32
    %546 = vector.broadcast %cst_219 : f32 to vector<8x128xf32>
    %547 = arith.mulf %334, %546 : vector<8x128xf32>
    %548 = arith.mulf %547, %482 : vector<8x128xf32>
    %cst_220 = arith.constant -1.250000e+00 : f32
    %549 = vector.broadcast %cst_220 : f32 to vector<8x128xf32>
    %550 = arith.mulf %340, %549 : vector<8x128xf32>
    %551 = arith.mulf %550, %489 : vector<8x128xf32>
    %552 = arith.addf %548, %551 : vector<8x128xf32>
    %cst_221 = arith.constant 0.833333313 : f32
    %553 = vector.broadcast %cst_221 : f32 to vector<8x128xf32>
    %554 = arith.mulf %318, %553 : vector<8x128xf32>
    %555 = arith.mulf %554, %496 : vector<8x128xf32>
    %cst_222 = arith.constant -0.833333313 : f32
    %556 = vector.broadcast %cst_222 : f32 to vector<8x128xf32>
    %557 = arith.mulf %326, %556 : vector<8x128xf32>
    %558 = arith.mulf %557, %503 : vector<8x128xf32>
    %559 = arith.addf %555, %558 : vector<8x128xf32>
    %cst_223 = arith.constant 0.833333313 : f32
    %560 = vector.broadcast %cst_223 : f32 to vector<8x128xf32>
    %561 = arith.mulf %320, %560 : vector<8x128xf32>
    %562 = arith.mulf %561, %503 : vector<8x128xf32>
    %cst_224 = arith.constant -0.833333313 : f32
    %563 = vector.broadcast %cst_224 : f32 to vector<8x128xf32>
    %564 = arith.mulf %328, %563 : vector<8x128xf32>
    %565 = arith.mulf %564, %510 : vector<8x128xf32>
    %566 = arith.addf %562, %565 : vector<8x128xf32>
    %cst_225 = arith.constant 0.833333313 : f32
    %567 = vector.broadcast %cst_225 : f32 to vector<8x128xf32>
    %568 = arith.mulf %322, %567 : vector<8x128xf32>
    %569 = arith.mulf %568, %510 : vector<8x128xf32>
    %cst_226 = arith.constant -0.833333313 : f32
    %570 = vector.broadcast %cst_226 : f32 to vector<8x128xf32>
    %571 = arith.mulf %330, %570 : vector<8x128xf32>
    %572 = arith.mulf %571, %517 : vector<8x128xf32>
    %573 = arith.addf %569, %572 : vector<8x128xf32>
    %cst_227 = arith.constant 0.833333313 : f32
    %574 = vector.broadcast %cst_227 : f32 to vector<8x128xf32>
    %575 = arith.mulf %324, %574 : vector<8x128xf32>
    %576 = arith.mulf %575, %517 : vector<8x128xf32>
    %cst_228 = arith.constant -0.833333313 : f32
    %577 = vector.broadcast %cst_228 : f32 to vector<8x128xf32>
    %578 = arith.mulf %332, %577 : vector<8x128xf32>
    %579 = arith.mulf %578, %524 : vector<8x128xf32>
    %580 = arith.addf %576, %579 : vector<8x128xf32>
    %cst_229 = arith.constant 0.833333313 : f32
    %581 = vector.broadcast %cst_229 : f32 to vector<8x128xf32>
    %582 = arith.mulf %326, %581 : vector<8x128xf32>
    %583 = arith.mulf %582, %524 : vector<8x128xf32>
    %cst_230 = arith.constant -0.833333313 : f32
    %584 = vector.broadcast %cst_230 : f32 to vector<8x128xf32>
    %585 = arith.mulf %334, %584 : vector<8x128xf32>
    %586 = arith.mulf %585, %531 : vector<8x128xf32>
    %587 = arith.addf %583, %586 : vector<8x128xf32>
    %cst_231 = arith.constant 0.833333313 : f32
    %588 = vector.broadcast %cst_231 : f32 to vector<8x128xf32>
    %589 = arith.mulf %328, %588 : vector<8x128xf32>
    %590 = arith.mulf %589, %531 : vector<8x128xf32>
    %cst_232 = arith.constant -0.833333313 : f32
    %591 = vector.broadcast %cst_232 : f32 to vector<8x128xf32>
    %592 = arith.mulf %336, %591 : vector<8x128xf32>
    %593 = arith.mulf %592, %538 : vector<8x128xf32>
    %594 = arith.addf %590, %593 : vector<8x128xf32>
    %cst_233 = arith.constant 0.833333313 : f32
    %595 = vector.broadcast %cst_233 : f32 to vector<8x128xf32>
    %596 = arith.mulf %330, %595 : vector<8x128xf32>
    %597 = arith.mulf %596, %538 : vector<8x128xf32>
    %cst_234 = arith.constant -0.833333313 : f32
    %598 = vector.broadcast %cst_234 : f32 to vector<8x128xf32>
    %599 = arith.mulf %338, %598 : vector<8x128xf32>
    %600 = arith.mulf %599, %545 : vector<8x128xf32>
    %601 = arith.addf %597, %600 : vector<8x128xf32>
    %cst_235 = arith.constant 0.833333313 : f32
    %602 = vector.broadcast %cst_235 : f32 to vector<8x128xf32>
    %603 = arith.mulf %332, %602 : vector<8x128xf32>
    %604 = arith.mulf %603, %545 : vector<8x128xf32>
    %cst_236 = arith.constant -0.833333313 : f32
    %605 = vector.broadcast %cst_236 : f32 to vector<8x128xf32>
    %606 = arith.mulf %340, %605 : vector<8x128xf32>
    %607 = arith.mulf %606, %552 : vector<8x128xf32>
    %608 = arith.addf %604, %607 : vector<8x128xf32>
    %609 = tpu.concatenate %316, %559, %566, %573, %580, %587, %594, %601, %608 in 1 : vector<8x128xf32>, vector<8x128xf32>, vector<8x128xf32>, vector<8x128xf32>, vector<8x128xf32>, vector<8x128xf32>, vector<8x128xf32>, vector<8x128xf32>, vector<8x128xf32> -> vector<8x1152xf32>
    %cst_237 = arith.constant dense<0.000000e+00> : vector<8x128xf32>
    %610 = tpu.matmul %609, %307, %cst_237 {dimension_numbers = #tpu.dot_dimension_numbers<[1], [0], [0], [1], [0, 0, 1, 1], [], []>} : vector<8x1152xf32>, vector<1152x128xf32>, vector<8x128xf32> -> vector<8x128xf32>
    %611 = vector.broadcast %308 : vector<1x128xf32> to vector<8x128xf32>
    %612 = arith.addf %610, %611 : vector<8x128xf32>
    %c0_238 = arith.constant 0 : index
    %c0_239 = arith.constant 0 : index
    %613 = vector.load %arg6[%c0_238, %c0_239] : memref<1152x128xf32, #tpu.memory_space<vmem>>, vector<1152x128xf32>
    %c0_240 = arith.constant 0 : index
    %c0_241 = arith.constant 0 : index
    %614 = vector.load %arg7[%c0_240, %c0_241] : memref<1x128xf32, #tpu.memory_space<vmem>>, vector<1x128xf32>
    %cst_242 = arith.constant 5.000000e-01 : f32
    %615 = vector.broadcast %cst_242 : f32 to vector<8x128xf32>
    %616 = arith.mulf %615, %612 : vector<8x128xf32>
    %617 = math.tanh %616 : vector<8x128xf32>
    %cst_243 = arith.constant 5.000000e-01 : f32
    %618 = vector.broadcast %cst_243 : f32 to vector<8x128xf32>
    %619 = arith.mulf %618, %617 : vector<8x128xf32>
    %cst_244 = arith.constant 5.000000e-01 : f32
    %620 = vector.broadcast %cst_244 : f32 to vector<8x128xf32>
    %621 = arith.addf %619, %620 : vector<8x128xf32>
    %622 = arith.mulf %612, %621 : vector<8x128xf32>
    %cst_245 = arith.constant -2.200000e+00 : f32
    %623 = vector.broadcast %cst_245 : f32 to vector<8x128xf32>
    %624 = arith.subf %612, %623 : vector<8x128xf32>
    %cst_246 = arith.constant -1.800000e+00 : f32
    %625 = vector.broadcast %cst_246 : f32 to vector<8x128xf32>
    %626 = arith.subf %612, %625 : vector<8x128xf32>
    %cst_247 = arith.constant -1.400000e+00 : f32
    %627 = vector.broadcast %cst_247 : f32 to vector<8x128xf32>
    %628 = arith.subf %612, %627 : vector<8x128xf32>
    %cst_248 = arith.constant -1.000000e+00 : f32
    %629 = vector.broadcast %cst_248 : f32 to vector<8x128xf32>
    %630 = arith.subf %612, %629 : vector<8x128xf32>
    %cst_249 = arith.constant -6.000000e-01 : f32
    %631 = vector.broadcast %cst_249 : f32 to vector<8x128xf32>
    %632 = arith.subf %612, %631 : vector<8x128xf32>
    %cst_250 = arith.constant -2.000000e-01 : f32
    %633 = vector.broadcast %cst_250 : f32 to vector<8x128xf32>
    %634 = arith.subf %612, %633 : vector<8x128xf32>
    %cst_251 = arith.constant 2.000000e-01 : f32
    %635 = vector.broadcast %cst_251 : f32 to vector<8x128xf32>
    %636 = arith.subf %612, %635 : vector<8x128xf32>
    %cst_252 = arith.constant 6.000000e-01 : f32
    %637 = vector.broadcast %cst_252 : f32 to vector<8x128xf32>
    %638 = arith.subf %612, %637 : vector<8x128xf32>
    %cst_253 = arith.constant 1.000000e+00 : f32
    %639 = vector.broadcast %cst_253 : f32 to vector<8x128xf32>
    %640 = arith.subf %612, %639 : vector<8x128xf32>
    %cst_254 = arith.constant 1.400000e+00 : f32
    %641 = vector.broadcast %cst_254 : f32 to vector<8x128xf32>
    %642 = arith.subf %612, %641 : vector<8x128xf32>
    %cst_255 = arith.constant 1.800000e+00 : f32
    %643 = vector.broadcast %cst_255 : f32 to vector<8x128xf32>
    %644 = arith.subf %612, %643 : vector<8x128xf32>
    %cst_256 = arith.constant 2.200000e+00 : f32
    %645 = vector.broadcast %cst_256 : f32 to vector<8x128xf32>
    %646 = arith.subf %612, %645 : vector<8x128xf32>
    %cst_257 = arith.constant -2.200000e+00 : f32
    %647 = vector.broadcast %cst_257 : f32 to vector<8x128xf32>
    %648 = arith.cmpf oge, %612, %647 : vector<8x128xf32>
    %cst_258 = arith.constant -1.800000e+00 : f32
    %649 = vector.broadcast %cst_258 : f32 to vector<8x128xf32>
    %650 = arith.cmpf oge, %612, %649 : vector<8x128xf32>
    %cst_259 = arith.constant -1.400000e+00 : f32
    %651 = vector.broadcast %cst_259 : f32 to vector<8x128xf32>
    %652 = arith.cmpf oge, %612, %651 : vector<8x128xf32>
    %cst_260 = arith.constant -1.000000e+00 : f32
    %653 = vector.broadcast %cst_260 : f32 to vector<8x128xf32>
    %654 = arith.cmpf oge, %612, %653 : vector<8x128xf32>
    %cst_261 = arith.constant -6.000000e-01 : f32
    %655 = vector.broadcast %cst_261 : f32 to vector<8x128xf32>
    %656 = arith.cmpf oge, %612, %655 : vector<8x128xf32>
    %cst_262 = arith.constant -2.000000e-01 : f32
    %657 = vector.broadcast %cst_262 : f32 to vector<8x128xf32>
    %658 = arith.cmpf oge, %612, %657 : vector<8x128xf32>
    %cst_263 = arith.constant 2.000000e-01 : f32
    %659 = vector.broadcast %cst_263 : f32 to vector<8x128xf32>
    %660 = arith.cmpf oge, %612, %659 : vector<8x128xf32>
    %cst_264 = arith.constant 6.000000e-01 : f32
    %661 = vector.broadcast %cst_264 : f32 to vector<8x128xf32>
    %662 = arith.cmpf oge, %612, %661 : vector<8x128xf32>
    %cst_265 = arith.constant 1.000000e+00 : f32
    %663 = vector.broadcast %cst_265 : f32 to vector<8x128xf32>
    %664 = arith.cmpf oge, %612, %663 : vector<8x128xf32>
    %cst_266 = arith.constant 1.400000e+00 : f32
    %665 = vector.broadcast %cst_266 : f32 to vector<8x128xf32>
    %666 = arith.cmpf oge, %612, %665 : vector<8x128xf32>
    %cst_267 = arith.constant 1.800000e+00 : f32
    %667 = vector.broadcast %cst_267 : f32 to vector<8x128xf32>
    %668 = arith.cmpf oge, %612, %667 : vector<8x128xf32>
    %cst_268 = arith.constant 2.200000e+00 : f32
    %669 = vector.broadcast %cst_268 : f32 to vector<8x128xf32>
    %670 = arith.cmpf oge, %612, %669 : vector<8x128xf32>
    %cst_269 = arith.constant dense<true> : vector<8x128xi1>
    %671 = arith.xori %650, %cst_269 : vector<8x128xi1>
    %672 = arith.andi %648, %671 : vector<8x128xi1>
    %cst_270 = arith.constant 1.000000e+00 : f32
    %cst_271 = arith.constant 0.000000e+00 : f32
    %673 = vector.broadcast %cst_270 : f32 to vector<8x128xf32>
    %674 = vector.broadcast %cst_271 : f32 to vector<8x128xf32>
    %675 = arith.select %672, %673, %674 : vector<8x128xi1>, vector<8x128xf32>
    %cst_272 = arith.constant dense<true> : vector<8x128xi1>
    %676 = arith.xori %652, %cst_272 : vector<8x128xi1>
    %677 = arith.andi %650, %676 : vector<8x128xi1>
    %cst_273 = arith.constant 1.000000e+00 : f32
    %cst_274 = arith.constant 0.000000e+00 : f32
    %678 = vector.broadcast %cst_273 : f32 to vector<8x128xf32>
    %679 = vector.broadcast %cst_274 : f32 to vector<8x128xf32>
    %680 = arith.select %677, %678, %679 : vector<8x128xi1>, vector<8x128xf32>
    %cst_275 = arith.constant dense<true> : vector<8x128xi1>
    %681 = arith.xori %654, %cst_275 : vector<8x128xi1>
    %682 = arith.andi %652, %681 : vector<8x128xi1>
    %cst_276 = arith.constant 1.000000e+00 : f32
    %cst_277 = arith.constant 0.000000e+00 : f32
    %683 = vector.broadcast %cst_276 : f32 to vector<8x128xf32>
    %684 = vector.broadcast %cst_277 : f32 to vector<8x128xf32>
    %685 = arith.select %682, %683, %684 : vector<8x128xi1>, vector<8x128xf32>
    %cst_278 = arith.constant dense<true> : vector<8x128xi1>
    %686 = arith.xori %656, %cst_278 : vector<8x128xi1>
    %687 = arith.andi %654, %686 : vector<8x128xi1>
    %cst_279 = arith.constant 1.000000e+00 : f32
    %cst_280 = arith.constant 0.000000e+00 : f32
    %688 = vector.broadcast %cst_279 : f32 to vector<8x128xf32>
    %689 = vector.broadcast %cst_280 : f32 to vector<8x128xf32>
    %690 = arith.select %687, %688, %689 : vector<8x128xi1>, vector<8x128xf32>
    %cst_281 = arith.constant dense<true> : vector<8x128xi1>
    %691 = arith.xori %658, %cst_281 : vector<8x128xi1>
    %692 = arith.andi %656, %691 : vector<8x128xi1>
    %cst_282 = arith.constant 1.000000e+00 : f32
    %cst_283 = arith.constant 0.000000e+00 : f32
    %693 = vector.broadcast %cst_282 : f32 to vector<8x128xf32>
    %694 = vector.broadcast %cst_283 : f32 to vector<8x128xf32>
    %695 = arith.select %692, %693, %694 : vector<8x128xi1>, vector<8x128xf32>
    %cst_284 = arith.constant dense<true> : vector<8x128xi1>
    %696 = arith.xori %660, %cst_284 : vector<8x128xi1>
    %697 = arith.andi %658, %696 : vector<8x128xi1>
    %cst_285 = arith.constant 1.000000e+00 : f32
    %cst_286 = arith.constant 0.000000e+00 : f32
    %698 = vector.broadcast %cst_285 : f32 to vector<8x128xf32>
    %699 = vector.broadcast %cst_286 : f32 to vector<8x128xf32>
    %700 = arith.select %697, %698, %699 : vector<8x128xi1>, vector<8x128xf32>
    %cst_287 = arith.constant dense<true> : vector<8x128xi1>
    %701 = arith.xori %662, %cst_287 : vector<8x128xi1>
    %702 = arith.andi %660, %701 : vector<8x128xi1>
    %cst_288 = arith.constant 1.000000e+00 : f32
    %cst_289 = arith.constant 0.000000e+00 : f32
    %703 = vector.broadcast %cst_288 : f32 to vector<8x128xf32>
    %704 = vector.broadcast %cst_289 : f32 to vector<8x128xf32>
    %705 = arith.select %702, %703, %704 : vector<8x128xi1>, vector<8x128xf32>
    %cst_290 = arith.constant dense<true> : vector<8x128xi1>
    %706 = arith.xori %664, %cst_290 : vector<8x128xi1>
    %707 = arith.andi %662, %706 : vector<8x128xi1>
    %cst_291 = arith.constant 1.000000e+00 : f32
    %cst_292 = arith.constant 0.000000e+00 : f32
    %708 = vector.broadcast %cst_291 : f32 to vector<8x128xf32>
    %709 = vector.broadcast %cst_292 : f32 to vector<8x128xf32>
    %710 = arith.select %707, %708, %709 : vector<8x128xi1>, vector<8x128xf32>
    %cst_293 = arith.constant dense<true> : vector<8x128xi1>
    %711 = arith.xori %666, %cst_293 : vector<8x128xi1>
    %712 = arith.andi %664, %711 : vector<8x128xi1>
    %cst_294 = arith.constant 1.000000e+00 : f32
    %cst_295 = arith.constant 0.000000e+00 : f32
    %713 = vector.broadcast %cst_294 : f32 to vector<8x128xf32>
    %714 = vector.broadcast %cst_295 : f32 to vector<8x128xf32>
    %715 = arith.select %712, %713, %714 : vector<8x128xi1>, vector<8x128xf32>
    %cst_296 = arith.constant dense<true> : vector<8x128xi1>
    %716 = arith.xori %668, %cst_296 : vector<8x128xi1>
    %717 = arith.andi %666, %716 : vector<8x128xi1>
    %cst_297 = arith.constant 1.000000e+00 : f32
    %cst_298 = arith.constant 0.000000e+00 : f32
    %718 = vector.broadcast %cst_297 : f32 to vector<8x128xf32>
    %719 = vector.broadcast %cst_298 : f32 to vector<8x128xf32>
    %720 = arith.select %717, %718, %719 : vector<8x128xi1>, vector<8x128xf32>
    %cst_299 = arith.constant dense<true> : vector<8x128xi1>
    %721 = arith.xori %670, %cst_299 : vector<8x128xi1>
    %722 = arith.andi %668, %721 : vector<8x128xi1>
    %cst_300 = arith.constant 1.000000e+00 : f32
    %cst_301 = arith.constant 0.000000e+00 : f32
    %723 = vector.broadcast %cst_300 : f32 to vector<8x128xf32>
    %724 = vector.broadcast %cst_301 : f32 to vector<8x128xf32>
    %725 = arith.select %722, %723, %724 : vector<8x128xi1>, vector<8x128xf32>
    %cst_302 = arith.constant 2.500000e+00 : f32
    %726 = vector.broadcast %cst_302 : f32 to vector<8x128xf32>
    %727 = arith.mulf %624, %726 : vector<8x128xf32>
    %728 = arith.mulf %727, %675 : vector<8x128xf32>
    %cst_303 = arith.constant -2.500000e+00 : f32
    %729 = vector.broadcast %cst_303 : f32 to vector<8x128xf32>
    %730 = arith.mulf %628, %729 : vector<8x128xf32>
    %731 = arith.mulf %730, %680 : vector<8x128xf32>
    %732 = arith.addf %728, %731 : vector<8x128xf32>
    %cst_304 = arith.constant 2.500000e+00 : f32
    %733 = vector.broadcast %cst_304 : f32 to vector<8x128xf32>
    %734 = arith.mulf %626, %733 : vector<8x128xf32>
    %735 = arith.mulf %734, %680 : vector<8x128xf32>
    %cst_305 = arith.constant -2.500000e+00 : f32
    %736 = vector.broadcast %cst_305 : f32 to vector<8x128xf32>
    %737 = arith.mulf %630, %736 : vector<8x128xf32>
    %738 = arith.mulf %737, %685 : vector<8x128xf32>
    %739 = arith.addf %735, %738 : vector<8x128xf32>
    %cst_306 = arith.constant 2.500000e+00 : f32
    %740 = vector.broadcast %cst_306 : f32 to vector<8x128xf32>
    %741 = arith.mulf %628, %740 : vector<8x128xf32>
    %742 = arith.mulf %741, %685 : vector<8x128xf32>
    %cst_307 = arith.constant -2.500000e+00 : f32
    %743 = vector.broadcast %cst_307 : f32 to vector<8x128xf32>
    %744 = arith.mulf %632, %743 : vector<8x128xf32>
    %745 = arith.mulf %744, %690 : vector<8x128xf32>
    %746 = arith.addf %742, %745 : vector<8x128xf32>
    %cst_308 = arith.constant 2.500000e+00 : f32
    %747 = vector.broadcast %cst_308 : f32 to vector<8x128xf32>
    %748 = arith.mulf %630, %747 : vector<8x128xf32>
    %749 = arith.mulf %748, %690 : vector<8x128xf32>
    %cst_309 = arith.constant -2.500000e+00 : f32
    %750 = vector.broadcast %cst_309 : f32 to vector<8x128xf32>
    %751 = arith.mulf %634, %750 : vector<8x128xf32>
    %752 = arith.mulf %751, %695 : vector<8x128xf32>
    %753 = arith.addf %749, %752 : vector<8x128xf32>
    %cst_310 = arith.constant 2.500000e+00 : f32
    %754 = vector.broadcast %cst_310 : f32 to vector<8x128xf32>
    %755 = arith.mulf %632, %754 : vector<8x128xf32>
    %756 = arith.mulf %755, %695 : vector<8x128xf32>
    %cst_311 = arith.constant -2.500000e+00 : f32
    %757 = vector.broadcast %cst_311 : f32 to vector<8x128xf32>
    %758 = arith.mulf %636, %757 : vector<8x128xf32>
    %759 = arith.mulf %758, %700 : vector<8x128xf32>
    %760 = arith.addf %756, %759 : vector<8x128xf32>
    %cst_312 = arith.constant 2.500000e+00 : f32
    %761 = vector.broadcast %cst_312 : f32 to vector<8x128xf32>
    %762 = arith.mulf %634, %761 : vector<8x128xf32>
    %763 = arith.mulf %762, %700 : vector<8x128xf32>
    %cst_313 = arith.constant -2.500000e+00 : f32
    %764 = vector.broadcast %cst_313 : f32 to vector<8x128xf32>
    %765 = arith.mulf %638, %764 : vector<8x128xf32>
    %766 = arith.mulf %765, %705 : vector<8x128xf32>
    %767 = arith.addf %763, %766 : vector<8x128xf32>
    %cst_314 = arith.constant 2.500000e+00 : f32
    %768 = vector.broadcast %cst_314 : f32 to vector<8x128xf32>
    %769 = arith.mulf %636, %768 : vector<8x128xf32>
    %770 = arith.mulf %769, %705 : vector<8x128xf32>
    %cst_315 = arith.constant -2.500000e+00 : f32
    %771 = vector.broadcast %cst_315 : f32 to vector<8x128xf32>
    %772 = arith.mulf %640, %771 : vector<8x128xf32>
    %773 = arith.mulf %772, %710 : vector<8x128xf32>
    %774 = arith.addf %770, %773 : vector<8x128xf32>
    %cst_316 = arith.constant 2.500000e+00 : f32
    %775 = vector.broadcast %cst_316 : f32 to vector<8x128xf32>
    %776 = arith.mulf %638, %775 : vector<8x128xf32>
    %777 = arith.mulf %776, %710 : vector<8x128xf32>
    %cst_317 = arith.constant -2.500000e+00 : f32
    %778 = vector.broadcast %cst_317 : f32 to vector<8x128xf32>
    %779 = arith.mulf %642, %778 : vector<8x128xf32>
    %780 = arith.mulf %779, %715 : vector<8x128xf32>
    %781 = arith.addf %777, %780 : vector<8x128xf32>
    %cst_318 = arith.constant 2.500000e+00 : f32
    %782 = vector.broadcast %cst_318 : f32 to vector<8x128xf32>
    %783 = arith.mulf %640, %782 : vector<8x128xf32>
    %784 = arith.mulf %783, %715 : vector<8x128xf32>
    %cst_319 = arith.constant -2.500000e+00 : f32
    %785 = vector.broadcast %cst_319 : f32 to vector<8x128xf32>
    %786 = arith.mulf %644, %785 : vector<8x128xf32>
    %787 = arith.mulf %786, %720 : vector<8x128xf32>
    %788 = arith.addf %784, %787 : vector<8x128xf32>
    %cst_320 = arith.constant 2.500000e+00 : f32
    %789 = vector.broadcast %cst_320 : f32 to vector<8x128xf32>
    %790 = arith.mulf %642, %789 : vector<8x128xf32>
    %791 = arith.mulf %790, %720 : vector<8x128xf32>
    %cst_321 = arith.constant -2.500000e+00 : f32
    %792 = vector.broadcast %cst_321 : f32 to vector<8x128xf32>
    %793 = arith.mulf %646, %792 : vector<8x128xf32>
    %794 = arith.mulf %793, %725 : vector<8x128xf32>
    %795 = arith.addf %791, %794 : vector<8x128xf32>
    %cst_322 = arith.constant 1.250000e+00 : f32
    %796 = vector.broadcast %cst_322 : f32 to vector<8x128xf32>
    %797 = arith.mulf %624, %796 : vector<8x128xf32>
    %798 = arith.mulf %797, %732 : vector<8x128xf32>
    %cst_323 = arith.constant -1.250000e+00 : f32
    %799 = vector.broadcast %cst_323 : f32 to vector<8x128xf32>
    %800 = arith.mulf %630, %799 : vector<8x128xf32>
    %801 = arith.mulf %800, %739 : vector<8x128xf32>
    %802 = arith.addf %798, %801 : vector<8x128xf32>
    %cst_324 = arith.constant 1.250000e+00 : f32
    %803 = vector.broadcast %cst_324 : f32 to vector<8x128xf32>
    %804 = arith.mulf %626, %803 : vector<8x128xf32>
    %805 = arith.mulf %804, %739 : vector<8x128xf32>
    %cst_325 = arith.constant -1.250000e+00 : f32
    %806 = vector.broadcast %cst_325 : f32 to vector<8x128xf32>
    %807 = arith.mulf %632, %806 : vector<8x128xf32>
    %808 = arith.mulf %807, %746 : vector<8x128xf32>
    %809 = arith.addf %805, %808 : vector<8x128xf32>
    %cst_326 = arith.constant 1.250000e+00 : f32
    %810 = vector.broadcast %cst_326 : f32 to vector<8x128xf32>
    %811 = arith.mulf %628, %810 : vector<8x128xf32>
    %812 = arith.mulf %811, %746 : vector<8x128xf32>
    %cst_327 = arith.constant -1.250000e+00 : f32
    %813 = vector.broadcast %cst_327 : f32 to vector<8x128xf32>
    %814 = arith.mulf %634, %813 : vector<8x128xf32>
    %815 = arith.mulf %814, %753 : vector<8x128xf32>
    %816 = arith.addf %812, %815 : vector<8x128xf32>
    %cst_328 = arith.constant 1.250000e+00 : f32
    %817 = vector.broadcast %cst_328 : f32 to vector<8x128xf32>
    %818 = arith.mulf %630, %817 : vector<8x128xf32>
    %819 = arith.mulf %818, %753 : vector<8x128xf32>
    %cst_329 = arith.constant -1.250000e+00 : f32
    %820 = vector.broadcast %cst_329 : f32 to vector<8x128xf32>
    %821 = arith.mulf %636, %820 : vector<8x128xf32>
    %822 = arith.mulf %821, %760 : vector<8x128xf32>
    %823 = arith.addf %819, %822 : vector<8x128xf32>
    %cst_330 = arith.constant 1.250000e+00 : f32
    %824 = vector.broadcast %cst_330 : f32 to vector<8x128xf32>
    %825 = arith.mulf %632, %824 : vector<8x128xf32>
    %826 = arith.mulf %825, %760 : vector<8x128xf32>
    %cst_331 = arith.constant -1.250000e+00 : f32
    %827 = vector.broadcast %cst_331 : f32 to vector<8x128xf32>
    %828 = arith.mulf %638, %827 : vector<8x128xf32>
    %829 = arith.mulf %828, %767 : vector<8x128xf32>
    %830 = arith.addf %826, %829 : vector<8x128xf32>
    %cst_332 = arith.constant 1.250000e+00 : f32
    %831 = vector.broadcast %cst_332 : f32 to vector<8x128xf32>
    %832 = arith.mulf %634, %831 : vector<8x128xf32>
    %833 = arith.mulf %832, %767 : vector<8x128xf32>
    %cst_333 = arith.constant -1.250000e+00 : f32
    %834 = vector.broadcast %cst_333 : f32 to vector<8x128xf32>
    %835 = arith.mulf %640, %834 : vector<8x128xf32>
    %836 = arith.mulf %835, %774 : vector<8x128xf32>
    %837 = arith.addf %833, %836 : vector<8x128xf32>
    %cst_334 = arith.constant 1.250000e+00 : f32
    %838 = vector.broadcast %cst_334 : f32 to vector<8x128xf32>
    %839 = arith.mulf %636, %838 : vector<8x128xf32>
    %840 = arith.mulf %839, %774 : vector<8x128xf32>
    %cst_335 = arith.constant -1.250000e+00 : f32
    %841 = vector.broadcast %cst_335 : f32 to vector<8x128xf32>
    %842 = arith.mulf %642, %841 : vector<8x128xf32>
    %843 = arith.mulf %842, %781 : vector<8x128xf32>
    %844 = arith.addf %840, %843 : vector<8x128xf32>
    %cst_336 = arith.constant 1.250000e+00 : f32
    %845 = vector.broadcast %cst_336 : f32 to vector<8x128xf32>
    %846 = arith.mulf %638, %845 : vector<8x128xf32>
    %847 = arith.mulf %846, %781 : vector<8x128xf32>
    %cst_337 = arith.constant -1.250000e+00 : f32
    %848 = vector.broadcast %cst_337 : f32 to vector<8x128xf32>
    %849 = arith.mulf %644, %848 : vector<8x128xf32>
    %850 = arith.mulf %849, %788 : vector<8x128xf32>
    %851 = arith.addf %847, %850 : vector<8x128xf32>
    %cst_338 = arith.constant 1.250000e+00 : f32
    %852 = vector.broadcast %cst_338 : f32 to vector<8x128xf32>
    %853 = arith.mulf %640, %852 : vector<8x128xf32>
    %854 = arith.mulf %853, %788 : vector<8x128xf32>
    %cst_339 = arith.constant -1.250000e+00 : f32
    %855 = vector.broadcast %cst_339 : f32 to vector<8x128xf32>
    %856 = arith.mulf %646, %855 : vector<8x128xf32>
    %857 = arith.mulf %856, %795 : vector<8x128xf32>
    %858 = arith.addf %854, %857 : vector<8x128xf32>
    %cst_340 = arith.constant 0.833333313 : f32
    %859 = vector.broadcast %cst_340 : f32 to vector<8x128xf32>
    %860 = arith.mulf %624, %859 : vector<8x128xf32>
    %861 = arith.mulf %860, %802 : vector<8x128xf32>
    %cst_341 = arith.constant -0.833333313 : f32
    %862 = vector.broadcast %cst_341 : f32 to vector<8x128xf32>
    %863 = arith.mulf %632, %862 : vector<8x128xf32>
    %864 = arith.mulf %863, %809 : vector<8x128xf32>
    %865 = arith.addf %861, %864 : vector<8x128xf32>
    %cst_342 = arith.constant 0.833333313 : f32
    %866 = vector.broadcast %cst_342 : f32 to vector<8x128xf32>
    %867 = arith.mulf %626, %866 : vector<8x128xf32>
    %868 = arith.mulf %867, %809 : vector<8x128xf32>
    %cst_343 = arith.constant -0.833333313 : f32
    %869 = vector.broadcast %cst_343 : f32 to vector<8x128xf32>
    %870 = arith.mulf %634, %869 : vector<8x128xf32>
    %871 = arith.mulf %870, %816 : vector<8x128xf32>
    %872 = arith.addf %868, %871 : vector<8x128xf32>
    %cst_344 = arith.constant 0.833333313 : f32
    %873 = vector.broadcast %cst_344 : f32 to vector<8x128xf32>
    %874 = arith.mulf %628, %873 : vector<8x128xf32>
    %875 = arith.mulf %874, %816 : vector<8x128xf32>
    %cst_345 = arith.constant -0.833333313 : f32
    %876 = vector.broadcast %cst_345 : f32 to vector<8x128xf32>
    %877 = arith.mulf %636, %876 : vector<8x128xf32>
    %878 = arith.mulf %877, %823 : vector<8x128xf32>
    %879 = arith.addf %875, %878 : vector<8x128xf32>
    %cst_346 = arith.constant 0.833333313 : f32
    %880 = vector.broadcast %cst_346 : f32 to vector<8x128xf32>
    %881 = arith.mulf %630, %880 : vector<8x128xf32>
    %882 = arith.mulf %881, %823 : vector<8x128xf32>
    %cst_347 = arith.constant -0.833333313 : f32
    %883 = vector.broadcast %cst_347 : f32 to vector<8x128xf32>
    %884 = arith.mulf %638, %883 : vector<8x128xf32>
    %885 = arith.mulf %884, %830 : vector<8x128xf32>
    %886 = arith.addf %882, %885 : vector<8x128xf32>
    %cst_348 = arith.constant 0.833333313 : f32
    %887 = vector.broadcast %cst_348 : f32 to vector<8x128xf32>
    %888 = arith.mulf %632, %887 : vector<8x128xf32>
    %889 = arith.mulf %888, %830 : vector<8x128xf32>
    %cst_349 = arith.constant -0.833333313 : f32
    %890 = vector.broadcast %cst_349 : f32 to vector<8x128xf32>
    %891 = arith.mulf %640, %890 : vector<8x128xf32>
    %892 = arith.mulf %891, %837 : vector<8x128xf32>
    %893 = arith.addf %889, %892 : vector<8x128xf32>
    %cst_350 = arith.constant 0.833333313 : f32
    %894 = vector.broadcast %cst_350 : f32 to vector<8x128xf32>
    %895 = arith.mulf %634, %894 : vector<8x128xf32>
    %896 = arith.mulf %895, %837 : vector<8x128xf32>
    %cst_351 = arith.constant -0.833333313 : f32
    %897 = vector.broadcast %cst_351 : f32 to vector<8x128xf32>
    %898 = arith.mulf %642, %897 : vector<8x128xf32>
    %899 = arith.mulf %898, %844 : vector<8x128xf32>
    %900 = arith.addf %896, %899 : vector<8x128xf32>
    %cst_352 = arith.constant 0.833333313 : f32
    %901 = vector.broadcast %cst_352 : f32 to vector<8x128xf32>
    %902 = arith.mulf %636, %901 : vector<8x128xf32>
    %903 = arith.mulf %902, %844 : vector<8x128xf32>
    %cst_353 = arith.constant -0.833333313 : f32
    %904 = vector.broadcast %cst_353 : f32 to vector<8x128xf32>
    %905 = arith.mulf %644, %904 : vector<8x128xf32>
    %906 = arith.mulf %905, %851 : vector<8x128xf32>
    %907 = arith.addf %903, %906 : vector<8x128xf32>
    %cst_354 = arith.constant 0.833333313 : f32
    %908 = vector.broadcast %cst_354 : f32 to vector<8x128xf32>
    %909 = arith.mulf %638, %908 : vector<8x128xf32>
    %910 = arith.mulf %909, %851 : vector<8x128xf32>
    %cst_355 = arith.constant -0.833333313 : f32
    %911 = vector.broadcast %cst_355 : f32 to vector<8x128xf32>
    %912 = arith.mulf %646, %911 : vector<8x128xf32>
    %913 = arith.mulf %912, %858 : vector<8x128xf32>
    %914 = arith.addf %910, %913 : vector<8x128xf32>
    %915 = tpu.concatenate %622, %865, %872, %879, %886, %893, %900, %907, %914 in 1 : vector<8x128xf32>, vector<8x128xf32>, vector<8x128xf32>, vector<8x128xf32>, vector<8x128xf32>, vector<8x128xf32>, vector<8x128xf32>, vector<8x128xf32>, vector<8x128xf32> -> vector<8x1152xf32>
    %cst_356 = arith.constant dense<0.000000e+00> : vector<8x128xf32>
    %916 = tpu.matmul %915, %613, %cst_356 {dimension_numbers = #tpu.dot_dimension_numbers<[1], [0], [0], [1], [0, 0, 1, 1], [], []>} : vector<8x1152xf32>, vector<1152x128xf32>, vector<8x128xf32> -> vector<8x128xf32>
    %917 = vector.broadcast %614 : vector<1x128xf32> to vector<8x128xf32>
    %918 = arith.addf %916, %917 : vector<8x128xf32>
    %c0_357 = arith.constant 0 : index
    %c0_358 = arith.constant 0 : index
    %919 = vector.load %arg8[%c0_357, %c0_358] : memref<8x128xf32, #tpu.memory_space<vmem>>, vector<8x128xf32>
    tpu.vector_store %arg8[%c0_357, %c0_358], %918 {strides = array<i32>} : memref<8x128xf32, #tpu.memory_space<vmem>>, vector<8x128xf32>,
    return
  }
  func.func @transform_0(%arg0: i32) -> (i32, i32) {
    %c0_i32 = arith.constant 0 : i32
    %c0_i32_0 = arith.constant 0 : i32
    return %arg0, %c0_i32 : i32, i32
  }
  func.func @transform_1(%arg0: i32) -> (i32, i32) {
    %c0_i32 = arith.constant 0 : i32
    %c0_i32_0 = arith.constant 0 : i32
    %c0_i32_1 = arith.constant 0 : i32
    return %c0_i32, %c0_i32_0 : i32, i32
  }
  func.func @transform_2(%arg0: i32) -> (i32, i32) {
    %c0_i32 = arith.constant 0 : i32
    %c0_i32_0 = arith.constant 0 : i32
    %c0_i32_1 = arith.constant 0 : i32
    return %c0_i32, %c0_i32_0 : i32, i32
  }
  func.func @transform_3(%arg0: i32) -> (i32, i32) {
    %c0_i32 = arith.constant 0 : i32
    %c0_i32_0 = arith.constant 0 : i32
    %c0_i32_1 = arith.constant 0 : i32
    return %c0_i32, %c0_i32_0 : i32, i32
  }
  func.func @transform_4(%arg0: i32) -> (i32, i32) {
    %c0_i32 = arith.constant 0 : i32
    %c0_i32_0 = arith.constant 0 : i32
    %c0_i32_1 = arith.constant 0 : i32
    return %c0_i32, %c0_i32_0 : i32, i32
  }
  func.func @transform_5(%arg0: i32) -> (i32, i32) {
    %c0_i32 = arith.constant 0 : i32
    %c0_i32_0 = arith.constant 0 : i32
    %c0_i32_1 = arith.constant 0 : i32
    return %c0_i32, %c0_i32_0 : i32, i32
  }
  func.func @transform_6(%arg0: i32) -> (i32, i32) {
    %c0_i32 = arith.constant 0 : i32
    %c0_i32_0 = arith.constant 0 : i32
    %c0_i32_1 = arith.constant 0 : i32
    return %c0_i32, %c0_i32_0 : i32, i32
  }
  func.func @transform_7(%arg0: i32) -> (i32, i32) {
    %c0_i32 = arith.constant 0 : i32
    %c0_i32_0 = arith.constant 0 : i32
    return %arg0, %c0_i32 : i32, i32
  }
}

</mosaic_0001>

<bundles_post_ra>
// kernel: _lambda_.1
= control target key start
LH: loop header
LB: loop body
LE: loop exit
PB: predicated region body
PF: predicated region fallthrough
CT: control target
= control target key end

     0   :  { %12 = vsyncpa [#allocation3], 0  ;;  %s4054_s0 = inlined_call_operand.vmem [shape: f32[16,128], index: 0, kind: input, shape index: {}]   ;;  %s4055_s1 = inlined_call_operand.hbm [shape: f32[1152,128], index: 1, kind: input, shape index: {}]   ;;  %s4056_s2 = inlined_call_operand.vmem [shape: f32[1,128], index: 2, kind: input, shape index: {}, may-alias: {2,4,6}]   ;;  %s4057_s3 = inlined_call_operand.hbm [shape: f32[1152,128], index: 3, kind: input, shape index: {}]   ;;  %s4058_s4 = inlined_call_operand.vmem [shape: f32[1,128], index: 4, kind: input, shape index: {}, may-alias: {2,4,6}]   ;;  %s4059_s5 = inlined_call_operand.hbm [shape: f32[1152,128], index: 5, kind: input, shape index: {}]   ;;  %s4060_s6 = inlined_call_operand.vmem [shape: f32[1,128], index: 6, kind: input, shape index: {}, may-alias: {2,4,6}]   ;;  %s4061_s7 = inlined_call_operand.vmem [shape: f32[16,128], index: 7, kind: output, shape index: {}]  }
   0x1   :  { %13 = vsyncpa [#allocation5], 0  ;;  %s3320_s24 = smov 0  }
   0x2 LB: > { %s3326_s25 = sadd.s32 4294967295, %s3270_s24   ;;  %p2500_p0 = scmp.ge.s32.totalorder %s3270_s24, 1  ;;  %s3270_s24 = sphi %s3320_s24, %s19_s24  }
   0x3   : > { %p202_p1 = scmp.lt.s32.totalorder %s3270_s24, 3  ;;  %p3150_p2 = scmp.eq.s32.totalorder %s3326_s25, 0 }
   0x4   : > { %s3272_s27 = smov [#allocation4]   ;;  %s3273_s29 = smov [#allocation2]  }
   0x5   : > { %p3331_p3 = pnand %p2500_p0, %p202_p1  ;;  %s230_s28 = sshll.u32 %s3272_s27, 4  ;;  %s231_s28 = int_to_ptr.vmem [resolvable:$true] %s230_s28 }
   0x6   : > { %s214_s30 = sshll.u32 %s3273_s29, 4  ;;  %s3274_s9 = smov [#allocation6]   ;;  %s215_s30 = int_to_ptr.vmem [resolvable:$true] %s214_s30 }
   0x7   : > { %p3140_p4 = pneg %p3331_p3  ;;  %s246_s10 = sshll.u32 %s3274_s9, 4  ;;  %s3343_s10 = int_to_ptr.vmem [resolvable:$true] %s246_s10 }
   0x8   : > { %s3189_s11 = scalar_lea.vmem %s231_s28, 18432  ;;  %p3197_p10 = scmp.lt.s32.totalorder %s231_s28, %s231_s28 }
   0x9   : > { %p3339_p5 = pnand %p3150_p2, %p3140_p4  ;;  %p3190_p7 = scmp.ne.s32.totalorder %s231_s28, %s3189_s11 }
   0xa   : > { %p3198_p11 = scmp.lt.s32.totalorder %s3189_s11, %s3189_s11 }
   0xb   : > { %p3180_p6 = pneg %p3339_p5 }
   0xc   : > { %p3199_p12 = por %p3198_p11, %p3197_p10 }
   0xd   : > { %p3192_p8 = pnand %p3190_p7, %p3180_p6 }
   0xf   : > { %p3193_p9 = pneg %p3192_p8 }
  0x11   : > { %p3200_p13 = pnand %p3199_p12, %p3193_p9 }
  0x13   : > { %3203 = shalt.err (!%p3200_p13)
}
  0x14   : > { %s3275_s12 = smov 128   ;;  %s3276_s13 = smov 8  }
  0x15   : > { %3146 = dma.hbm_to_vmem [thread:$0]  (!%p3339_p5), %s4057_s3, 18432, %s231_s28, [#allocation5], %s3275_s12, %s3275_s12, %s3276_s13  }
  0x16   : > { %s3215_s16 = scalar_lea.vmem %s215_s30, 18432  ;;  %p3223_p7 = scmp.lt.s32.totalorder %s215_s30, %s215_s30 }
  0x17   : > { %p3216_p0 = scmp.ne.s32.totalorder %s215_s30, %s3215_s16  ;;  %p3224_p8 = scmp.lt.s32.totalorder %s3215_s16, %s3215_s16 }
  0x19   : > { %p3218_p1 = pnand %p3216_p0, %p3180_p6  ;;  %p3225_p10 = por %p3224_p8, %p3223_p7 }
  0x1b   : > { %p3219_p4 = pneg %p3218_p1 }
  0x1d   : > { %p3226_p9 = pnand %p3225_p10, %p3219_p4 }
  0x1f   : > { %3229 = shalt.err (!%p3226_p9)
}
  0x20   : > { %3143 = dma.hbm_to_vmem [thread:$0]  (!%p3339_p5), %s4055_s1, 18432, %s215_s30, [#allocation3], %s3275_s12, %s3275_s12, %s3276_s13  }
  0x21   : > { %s3241_s19 = scalar_lea.vmem %s3343_s10, 18432  ;;  %p3249_p0 = scmp.lt.s32.totalorder %s3343_s10, %s3343_s10 }
  0x22   : > { %p3242_p11 = scmp.ne.s32.totalorder %s3343_s10, %s3241_s19  ;;  %p3250_p1 = scmp.lt.s32.totalorder %s3241_s19, %s3241_s19 }
  0x24   : > { %p3244_p12 = pnand %p3242_p11, %p3180_p6  ;;  %p3251_p4 = por %p3250_p1, %p3249_p0 }
  0x26   : > { %p3245_p13 = pneg %p3244_p12 }
  0x28   : > { %p3252_p7 = pnand %p3251_p4, %p3245_p13 }
  0x2a   : > { %3255 = shalt.err (!%p3252_p7)
}
  0x2b   : > { %3149 = dma.hbm_to_vmem [thread:$0]  (!%p3339_p5), %s4059_s5, 18432, %s3343_s10, [#allocation5], %s3275_s12, %s3275_s12, %s3276_s13  }
  0x2c   : > { %272 = sbr.rel (%p3331_p3) target bundleno = 979 (0x3d3), region = 48 }
  0x31   : > { %3261 = dma.done.wait (%p3150_p2), [#allocation3], 18432  }
  0x32   : > { %3263 = vsyncadd (%p3150_p2), [#allocation3], 4294948864 }
  0x33   : > { %3265 = dma.done.wait (%p3150_p2), [#allocation5], 36864  }
  0x34   : > { %3267 = vsyncadd (%p3150_p2), [#allocation5], 4294930432  ;;  %v350_v0 = vld [vmem:[#allocation2 + $0xf8] sm:$0xff]  ;;  %v349_v2 = vld [vmem:[#allocation2 + $0xf0] sm:$0xff]  ;;  %p310_p2 = scmp.lt.s32.totalorder %s3326_s25, 1  ;;  %vm3277_vm4 = vmmov 1  }
  0x35   : > { %v334_v1 = vld [vmem:[#allocation2 + $0x78] sm:$0xff]  ;;  %2552 = vmatprep.subr.mxu0 %v350_v0  ;;  %v333_v4 = vld [vmem:[#allocation2 + $0x70] sm:$0xff]  ;;  %v348_v6 = vld [vmem:[#allocation2 + $0xe8] sm:$0xff] }
  0x36   : > { %v382_v3 = vld [vmem:[#allocation2 + $0x1f8] sm:$0xff]  ;;  %2553 = vmatpush3.msra.mxu0 %v334_v1  ;;  %v381_v7 = vld [vmem:[#allocation2 + $0x1f0] sm:$0xff]  ;;  %v332_v8 = vld [vmem:[#allocation2 + $0x68] sm:$0xff]  ;;  %s4077_s25 = smov (!%p310_p2, %s3326_s25), 1 }
  0x37   : > { %v366_v5 = vld [vmem:[#allocation2 + $0x178] sm:$0xff]  ;;  %2587 = vmatprep.subr.mxu1 %v382_v3  ;;  %2554 = vmatprep.subr.mxu0 %v349_v2  ;;  %v365_v9 = vld [vmem:[#allocation2 + $0x170] sm:$0xff]  ;;  %v380_v10 = vld [vmem:[#allocation2 + $0x1e8] sm:$0xff]  ;;  %s2509_s22 = sshll.u32 %s4077_s25, 3 }
  0x38   : > { %2588 = vmatpush3.msra.mxu1 %v366_v5  ;;  %2555 = vmatpush3.msra.mxu0 %v333_v4  ;;  %v347_v11 = vld [vmem:[#allocation2 + $0xe0] sm:$0xff]  ;;  %v364_v12 = vld [vmem:[#allocation2 + $0x168] sm:$0xff]  ;;  %v346_v15 = vld [vmem:[#allocation2 + $0xd8] sm:$0xff]  ;;  %s313_s27 = scalar_lea.vmem %s4054_s0, %s2509_s22  ;;  %s317_s13 = scalar_lea.vmem %s4061_s7, %s2509_s22 }
  0x39   : > { %2589 = vmatprep.subr.mxu1 %v381_v7  ;;  %2556 = vmatprep.subr.mxu0 %v348_v6  ;;  %v331_v13 = vld [vmem:[#allocation2 + $0x60] sm:$0xff]  ;;  %v330_v17 = vld [vmem:[#allocation2 + $0x58] sm:$0xff]  ;;  %v345_v19 = vld [vmem:[#allocation2 + $0xd0] sm:$0xff] }
  0x3a   : > { %2590 = vmatpush3.msra.mxu1 %v365_v9  ;;  %v379_v14 = vld [vmem:[#allocation2 + $0x1e0] sm:$0xff]  ;;  %2557 = vmatpush3.msra.mxu0 %v332_v8  ;;  %v378_v18 = vld [vmem:[#allocation2 + $0x1d8] sm:$0xff]  ;;  %v329_v21 = vld [vmem:[#allocation2 + $0x50] sm:$0xff]  ;;  %v3278_v8 = vmov 0.0  }
  0x3b   : > { %2591 = vmatprep.subr.mxu1 %v380_v10  ;;  %v363_v16 = vld [vmem:[#allocation2 + $0x160] sm:$0xff]  ;;  %2558 = vmatprep.subr.mxu0 %v347_v11  ;;  %v362_v20 = vld [vmem:[#allocation2 + $0x158] sm:$0xff]  ;;  %v377_v22 = vld [vmem:[#allocation2 + $0x1d0] sm:$0xff] }
  0x3c   : > { %2592 = vmatpush3.msra.mxu1 %v364_v12  ;;  %2559 = vmatpush3.msra.mxu0 %v331_v13  ;;  %v344_v23 = vld [vmem:[#allocation2 + $0xc8] sm:$0xff]  ;;  %v361_v24 = vld [vmem:[#allocation2 + $0x150] sm:$0xff]  ;;  %v343_v27 = vld [vmem:[#allocation2 + $0xc0] sm:$0xff] }
  0x3d   : > { %2593 = vmatprep.subr.mxu1 %v379_v14  ;;  %2560 = vmatprep.subr.mxu0 %v346_v15  ;;  %v328_v25 = vld [vmem:[#allocation2 + $0x48] sm:$0xff]  ;;  %v327_v29 = vld [vmem:[#allocation2 + $0x40] sm:$0xff]  ;;  %v342_v31 = vld [vmem:[#allocation2 + $0xb8] sm:$0xff] }
  0x3e   : > { %2594 = vmatpush3.msra.mxu1 %v363_v16  ;;  %2561 = vmatpush3.msra.mxu0 %v330_v17  ;;  %v376_v26 = vld [vmem:[#allocation2 + $0x1c8] sm:$0xff]  ;;  %v375_v30 = vld [vmem:[#allocation2 + $0x1c0] sm:$0xff]  ;;  %v326_v33 = vld [vmem:[#allocation2 + $0x38] sm:$0xff] }
  0x3f   : > { %2595 = vmatprep.subr.mxu1 %v378_v18  ;;  %2562 = vmatprep.subr.mxu0 %v345_v19  ;;  %v360_v28 = vld [vmem:[#allocation2 + $0x148] sm:$0xff]  ;;  %v359_v32 = vld [vmem:[#allocation2 + $0x140] sm:$0xff]  ;;  %v374_v34 = vld [vmem:[#allocation2 + $0x1b8] sm:$0xff] }
  0x40   : > { %2596 = vmatpush3.msra.mxu1 %v362_v20  ;;  %2563 = vmatpush3.msra.mxu0 %v329_v21  ;;  %v341_v35 = vld [vmem:[#allocation2 + $0xb0] sm:$0xff]  ;;  %v358_v36 = vld [vmem:[#allocation2 + $0x138] sm:$0xff]  ;;  %v340_v38 = vld [vmem:[#allocation2 + $0xa8] sm:$0xff] }
  0x41   : > { %2597 = vmatprep.subr.mxu1 %v377_v22  ;;  %2564 = vmatprep.subr.mxu0 %v344_v23  ;;  %v325_v37 = vld [vmem:[#allocation2 + $0x30] sm:$0xff]  ;;  %v324_v40 = vld [vmem:[#allocation2 + $0x28] sm:$0xff]  ;;  %v339_v42 = vld [vmem:[#allocation2 + $0xa0] sm:$0xff] }
  0x42   : > { %2598 = vmatpush3.msra.mxu1 %v361_v24  ;;  %2565 = vmatpush3.msra.mxu0 %v328_v25  ;;  %v373_v39 = vld [vmem:[#allocation2 + $0x1b0] sm:$0xff]  ;;  %v372_v43 = vld [vmem:[#allocation2 + $0x1a8] sm:$0xff]  ;;  %v323_v44 = vld [vmem:[#allocation2 + $0x20] sm:$0xff] }
  0x43   : > { %2599 = vmatprep.subr.mxu1 %v376_v26  ;;  %2566 = vmatprep.subr.mxu0 %v343_v27  ;;  %v357_v41 = vld [vmem:[#allocation2 + $0x130] sm:$0xff]  ;;  %v356_v45 = vld [vmem:[#allocation2 + $0x128] sm:$0xff]  ;;  %v338_v46 = vld [vmem:[#allocation2 + $0x98] sm:$0xff] }
  0x44   : > { %2600 = vmatpush3.msra.mxu1 %v360_v28  ;;  %2567 = vmatpush3.msra.mxu0 %v327_v29  ;;  %v371_v47 = vld [vmem:[#allocation2 + $0x1a0] sm:$0xff]  ;;  %v322_v50 = vld [vmem:[#allocation2 + $0x18] sm:$0xff]  ;;  %v337_v54 = vld [vmem:[#allocation2 + $0x90] sm:$0xff] }
  0x45   : > { %2601 = vmatprep.subr.mxu1 %v375_v30  ;;  %2568 = vmatprep.subr.mxu0 %v342_v31  ;;  %v355_v48 = vld [vmem:[#allocation2 + $0x120] sm:$0xff]  ;;  %v370_v57 = vld [vmem:[#allocation2 + $0x198] sm:$0xff]  ;;  %v321_v58 = vld [vmem:[#allocation2 + $0x10] sm:$0xff] }
  0x46   : > { %2602 = vmatpush3.msra.mxu1 %v359_v32  ;;  %2569 = vmatpush3.msra.mxu0 %v326_v33  ;;  %v3398_v49 = vld [vmem:[%s313_s27] sm:$0xff]  ;;  %v354_v60 = vld [vmem:[#allocation2 + $0x118] sm:$0xff]  ;;  %v336_v61 = vld [vmem:[#allocation2 + $0x88] sm:$0xff] }
  0x47   : > { %2603 = vmatprep.subr.mxu1 %v374_v34  ;;  %2570 = vmatprep.subr.mxu0 %v341_v35  ;;  %v3401_v51 = vadd.f32 2.2, %v3398_v49  ;;  %v3404_v52 = vadd.f32 1.8, %v3398_v49  ;;  %v3407_v53 = vadd.f32 1.4, %v3398_v49 }
  0x48   : > { %2604 = vmatpush3.msra.mxu1 %v358_v36  ;;  %2571 = vmatpush3.msra.mxu0 %v325_v37  ;;  %v3410_v55 = vadd.f32 1.0, %v3398_v49  ;;  %v3413_v56 = vadd.f32 0.6, %v3398_v49  ;;  %vm481_vm0 = vcmp.ge.f32.partialorder %v3398_v49, -2.2  ;;  %vm484_vm1 = vcmp.ge.f32.partialorder %v3398_v49, -1.0 }
  0x49   : > { %2605 = vmatprep.subr.mxu1 %v373_v39  ;;  %2572 = vmatprep.subr.mxu0 %v340_v38  ;;  %vm482_vm2 = vcmp.ge.f32.partialorder %v3398_v49, -1.8  ;;  %vm483_vm3 = vcmp.ge.f32.partialorder %v3398_v49, -1.4  ;;  %vm3422_vm5 = vmxor %vm484_vm1, %vm3277_vm4  ;;  %vm485_vm6 = vcmp.ge.f32.partialorder %v3398_v49, -0.6 }
  0x4a   : > { %2606 = vmatpush3.msra.mxu1 %v357_v41  ;;  %2573 = vmatpush3.msra.mxu0 %v324_v40  ;;  %vm493_vm7 = vmxor %vm482_vm2, %vm3277_vm4  ;;  %v526_v62 = vmul.f32 2.5, %v3401_v51  ;;  %v528_v63 = vmul.f32 -2.5, %v3407_v53  ;;  %v369_v0 = vld [vmem:[#allocation2 + $0x190] sm:$0xff]  ;;  %v320_v1 = vld [vmem:[#allocation2 + $0x8] sm:$0xff]  ;;  %v531_v2 = vmul.f32 2.5, %v3404_v52  ;;  %v533_v3 = vmul.f32 -2.5, %v3410_v55 }
  0x4b   : > { %2607 = vmatprep.subr.mxu1 %v372_v43  ;;  %2574 = vmatprep.subr.mxu0 %v339_v42  ;;  %vm494_vm8 = vmand %vm481_vm0, %vm493_vm7  ;;  %v536_v4 = vmul.f32 2.5, %v3407_v53  ;;  %v538_v5 = vmul.f32 -2.5, %v3413_v56  ;;  %v353_v6 = vld [vmem:[#allocation2 + $0x110] sm:$0xff]  ;;  %v335_v7 = vld [vmem:[#allocation2 + $0x80] sm:$0xff]  ;;  %v576_v10 = vmul.f32 1.25, %v3401_v51  ;;  %v578_v11 = vmul.f32 -1.25, %v3410_v55 }
  0x4c   : > { %2608 = vmatpush3.msra.mxu1 %v356_v45  ;;  %2575 = vmatpush3.msra.mxu0 %v323_v44  ;;  %v495_v9 = vsel %vm494_vm8, 1.0, %v3278_v8  ;;  %vm496_vm9 = vmxor %vm483_vm3, %vm3277_vm4  ;;  %v581_v12 = vmul.f32 1.25, %v3404_v52  ;;  %v368_v13 = vld [vmem:[#allocation2 + $0x188] sm:$0xff]  ;;  %v583_v15 = vmul.f32 -1.25, %v3413_v56  ;;  %v464_v17 = vmul.f32 0.5, %v3398_v49  ;;  %v319_v22 = vld [vmem:[#allocation2] sm:$0xff] }
  0x4d   : > { %2609 = vmatprep.subr.mxu1 %v371_v47  ;;  %2576 = vmatprep.subr.mxu0 %v338_v46  ;;  %vm497_vm10 = vmand %vm482_vm2, %vm496_vm9  ;;  %v527_v14 = vmul.f32 %v526_v62, %v495_v9  ;;  %v352_v16 = vld [vmem:[#allocation2 + $0x108] sm:$0xff]  ;;  %v3450_v18 = vadd.f32 0.2, %v3398_v49  ;;  %v3458_v20 = vadd.f32 -0.2, %v3398_v49  ;;  %v541_v21 = vmul.f32 2.5, %v3410_v55 }
  0x4e   : > { %2610 = vmatpush3.msra.mxu1 %v355_v48  ;;  %2577 = vmatpush3.msra.mxu0 %v322_v50  ;;  %v498_v19 = vsel %vm497_vm10, 1.0, %v3278_v8  ;;  %vm500_vm11 = vmand %vm483_vm3, %vm3422_vm5  ;;  %vm486_vm12 = vcmp.ge.f32.partialorder %v3398_v49, -0.2  ;;  %3172 = vtanh.f32 %v464_v17  ;;  %v367_v26 = vld [vmem:[#allocation2 + $0x180] sm:$0xff]  ;;  %v621_v29 = vmul.f32 0.8333333, %v3401_v51 }
  0x4f   : > { %2611 = vmatprep.subr.mxu1 %v370_v57  ;;  %2578 = vmatprep.subr.mxu0 %v337_v54  ;;  %v501_v23 = vsel %vm500_vm11, 1.0, %v3278_v8  ;;  %vm502_vm13 = vmxor %vm485_vm6, %vm3277_vm4  ;;  %v529_v24 = vmul.f32 %v528_v63, %v498_v19  ;;  %v532_v25 = vmul.f32 %v531_v2, %v498_v19  ;;  %v414_v30 = vld [vmem:[#allocation2 + $0x2f8] sm:$0xff]  ;;  %v351_v31 = vld [vmem:[#allocation2 + $0x100] sm:$0xff]  ;;  %vm487_vm15 = vcmp.ge.f32.partialorder %v3398_v49, 0.2 }
  0x50   : > { %2612 = vmatpush3.msra.mxu1 %v354_v60  ;;  %2579 = vmatpush3.msra.mxu0 %v321_v58  ;;  %vm503_vm14 = vmand %vm484_vm1, %vm502_vm13  ;;  %v534_v27 = vmul.f32 %v533_v3, %v501_v23  ;;  %v537_v28 = vmul.f32 %v536_v4, %v501_v23  ;;  %v543_v34 = vmul.f32 -2.5, %v3450_v18  ;;  %v546_v35 = vmul.f32 2.5, %v3413_v56  ;;  %v446_v36 = vld [vmem:[#allocation2 + $0x3f8] sm:$0xff] }
  0x51   : > { %2613 = vmatprep.subr.mxu1 %v369_v0  ;;  %2580 = vmatprep.subr.mxu0 %v336_v61  ;;  %v504_v32 = vsel %vm503_vm14, 1.0, %v3278_v8  ;;  %v530_v33 = vadd.f32 %v529_v24, %v527_v14  ;;  %vm505_vm0 = vmxor %vm486_vm12, %vm3277_vm4  ;;  %v548_v40 = vmul.f32 -2.5, %v3458_v20  ;;  %v623_v42 = vmul.f32 -0.8333333, %v3413_v56 }
  0x52   : > { %2614 = vmatpush3.msra.mxu1 %v353_v6  ;;  %2581 = vmatpush3.msra.mxu0 %v320_v1  ;;  %v535_v37 = vadd.f32 %v534_v27, %v532_v25  ;;  %v539_v38 = vmul.f32 %v538_v5, %v504_v32  ;;  %vm506_vm1 = vmand %vm485_vm6, %vm505_vm0  ;;  %v542_v39 = vmul.f32 %v541_v21, %v504_v32  ;;  %v586_v44 = vmul.f32 1.25, %v3407_v53  ;;  %v445_v32 = vld [vmem:[#allocation2 + $0x3f0] sm:$0xff] }
  0x53   : > { %2615 = vmatprep.subr.mxu1 %v368_v13  ;;  %2582 = vmatprep.subr.mxu0 %v335_v7  ;;  %v577_v41 = vmul.f32 %v576_v10, %v530_v33  ;;  %v507_v43 = vsel %vm506_vm1, 1.0, %v3278_v8  ;;  %vm508_vm2 = vmxor %vm487_vm15, %vm3277_vm4  ;;  %v588_v54 = vmul.f32 -1.25, %v3450_v18  ;;  %v591_v57 = vmul.f32 1.25, %v3410_v55 }
  0x54   : > { %2616 = vmatpush3.msra.mxu1 %v352_v16  ;;  %2583 = vmatpush3.msra.mxu0 %v319_v22  ;;  %v540_v45 = vadd.f32 %v539_v38, %v537_v28  ;;  %v579_v46 = vmul.f32 %v578_v11, %v535_v37  ;;  %v582_v47 = vmul.f32 %v581_v12, %v535_v37  ;;  %vm509_vm3 = vmand %vm486_vm12, %vm508_vm2  ;;  %v593_v63 = vmul.f32 -1.25, %v3458_v20  ;;  %v398_v28 = vld [vmem:[#allocation2 + $0x278] sm:$0xff]  ;;  %v412_v38 = vld [vmem:[#allocation2 + $0x2e8] sm:$0xff] }
  0x55   : > { %2617 = vmatprep.subr.mxu1 %v367_v26  ;;  %2622 = vmatprep.subr.mxu0 %v414_v30  ;;  %v544_v48 = vmul.f32 %v543_v34, %v507_v43  ;;  %v3488_v50 = vsel %vm509_vm3, 1.0, %v3278_v8  ;;  %v547_v51 = vmul.f32 %v546_v35, %v507_v43  ;;  %v631_v0 = vmul.f32 0.8333333, %v3407_v53  ;;  %v397_v34 = vld [vmem:[#allocation2 + $0x270] sm:$0xff] }
  0x56   : > { %2618 = vmatpush3.msra.mxu1 %v351_v31  ;;  %v580_v58 = vadd.f32 %v579_v46, %v577_v41  ;;  %v584_v59 = vmul.f32 %v583_v15, %v540_v45  ;;  %v549_v61 = vmul.f32 %v548_v40, %v3488_v50  ;;  %v587_v62 = vmul.f32 %v586_v44, %v540_v45  ;;  %v413_v31 = vld [vmem:[#allocation2 + $0x2f0] sm:$0xff]  ;;  %v396_v41 = vld [vmem:[#allocation2 + $0x268] sm:$0xff]  ;;  %v411_v46 = vld [vmem:[#allocation2 + $0x2e0] sm:$0xff] }
  0x57   : > { %2657 = vmatprep.subr.mxu1 %v446_v36  ;;  %v545_v60 = vadd.f32 %v544_v48, %v542_v39  ;;  %vm488_vm5 = vcmp.ge.f32.partialorder %v3398_v49, 0.6  ;;  %v633_v6 = vmul.f32 -0.8333333, %v3458_v20  ;;  %v626_v7 = vmul.f32 0.8333333, %v3404_v52 }
  0x58   : > { %v585_v1 = vadd.f32 %v584_v59, %v582_v47  ;;  %v622_v2 = vmul.f32 %v621_v29, %v580_v58  ;;  %v3495_v3 = vadd.f32 %v549_v61, %v547_v51  ;;  %v628_v12 = vmul.f32 -0.8333333, %v3450_v18  ;;  %vm511_vm6 = vmxor %vm488_vm5, %vm3277_vm4  ;;  %v430_v29 = vld [vmem:[#allocation2 + $0x378] sm:$0xff]  ;;  %v429_v35 = vld [vmem:[#allocation2 + $0x370] sm:$0xff] }
  0x59   : > { %v589_v4 = vmul.f32 %v588_v54, %v545_v60  ;;  %v592_v5 = vmul.f32 %v591_v57, %v545_v60  ;;  %v3509_v21 = vadd.f32 -0.6, %v3398_v49  ;;  %vm3513_vm7 = vmand %vm487_vm15, %vm511_vm6  ;;  %v3518_v26 = vadd.f32 -1.0, %v3398_v49  ;;  %v444_v39 = vld [vmem:[#allocation2 + $0x3e8] sm:$0xff]  ;;  %v443_v47 = vld [vmem:[#allocation2 + $0x3e0] sm:$0xff] }
  0x5a   : > { %v624_v9 = vmul.f32 %v623_v42, %v585_v1  ;;  %v594_v11 = vmul.f32 %v593_v63, %v3495_v3  ;;  %v627_v13 = vmul.f32 %v626_v7, %v585_v1  ;;  %v551_v30 = vmul.f32 2.5, %v3450_v18  ;;  %v428_v42 = vld [vmem:[#allocation2 + $0x368] sm:$0xff]  ;;  %v395_v51 = vld [vmem:[#allocation2 + $0x260] sm:$0xff]  ;;  %v410_v59 = vld [vmem:[#allocation2 + $0x2d8] sm:$0xff] }
  0x5b   : > { %v590_v10 = vadd.f32 %v589_v4, %v587_v62  ;;  %v3173_v53 = vpop.eup %3172  ;;  %vm489_vm8 = vcmp.ge.f32.partialorder %v3398_v49, 1.0  ;;  %v553_v33 = vmul.f32 -2.5, %v3509_v21  ;;  %v513_v36 = vsel %vm3513_vm7, 1.0, %v3278_v8  ;;  %v427_v54 = vld [vmem:[#allocation2 + $0x360] sm:$0xff]  ;;  %v442_v60 = vld [vmem:[#allocation2 + $0x3d8] sm:$0xff] }
  0x5c   : > { %v625_v14 = vadd.f32 %v624_v9, %v622_v2  ;;  %v3502_v15 = vadd.f32 %v594_v11, %v592_v5  ;;  %v466_v19 = vmul.f32 0.5, %v3173_v53  ;;  %v556_v37 = vmul.f32 2.5, %v3458_v20  ;;  %vm514_vm9 = vmxor %vm489_vm8, %vm3277_vm4  ;;  %v394_v1 = vld [vmem:[#allocation2 + $0x258] sm:$0xff]  ;;  %v409_v5 = vld [vmem:[#allocation2 + $0x2d0] sm:$0xff] }
  0x5d   : > { %v632_v16 = vmul.f32 %v631_v0, %v590_v10  ;;  %v629_v17 = vmul.f32 %v628_v12, %v590_v10  ;;  %v558_v40 = vmul.f32 -2.5, %v3518_v26  ;;  %v3533_v43 = vadd.f32 -1.4, %v3398_v49  ;;  %vm515_vm10 = vmand %vm488_vm5, %vm514_vm9  ;;  %v426_v2 = vld [vmem:[#allocation2 + $0x358] sm:$0xff]  ;;  %v393_v12 = vld [vmem:[#allocation2 + $0x250] sm:$0xff] }
  0x5e   : > { %731 = vmatprep.mubr.f32.mxu0 %v625_v14  ;;  %v634_v52 = vmul.f32 %v633_v6, %v3502_v15  ;;  %v467_v22 = vadd.f32 0.5, %v466_v19  ;;  %v3536_v44 = vadd.f32 -1.8, %v3398_v49  ;;  %v552_v45 = vmul.f32 %v551_v30, %v3488_v50  ;;  %v441_v6 = vld [vmem:[#allocation2 + $0x3d0] sm:$0xff]  ;;  %v408_v19 = vld [vmem:[#allocation2 + $0x2c8] sm:$0xff] }
  0x5f   : > { %v630_v23 = vadd.f32 %v629_v17, %v627_v13  ;;  %v554_v48 = vmul.f32 %v553_v33, %v513_v36  ;;  %vm490_vm11 = vcmp.ge.f32.partialorder %v3398_v49, 1.4  ;;  %vm491_vm12 = vcmp.ge.f32.partialorder %v3398_v49, 1.8  ;;  %v425_v13 = vld [vmem:[#allocation2 + $0x350] sm:$0xff]  ;;  %v423_v33 = vld [vmem:[#allocation2 + $0x340] sm:$0xff] }
  0x60   : > { %v635_v25 = vadd.f32 %v634_v52, %v632_v16  ;;  %v468_v27 = vmul.f32 %v467_v22, %v3398_v49  ;;  %v516_v57 = vsel %vm515_vm10, 1.0, %v3278_v8  ;;  %v557_v58 = vmul.f32 %v556_v37, %v513_v36  ;;  %vm517_vm13 = vmxor %vm490_vm11, %vm3277_vm4  ;;  %v440_v52 = vld [vmem:[#allocation2 + $0x3c8] sm:$0xff] }
  0x61   : > { %v561_v50 = vmul.f32 2.5, %v3509_v21  ;;  %v559_v61 = vmul.f32 %v558_v40, %v516_v57  ;;  %vm518_vm14 = vmand %vm489_vm8, %vm517_vm13  ;;  %v563_v62 = vmul.f32 -2.5, %v3533_v43  ;;  %v566_v63 = vmul.f32 2.5, %v3518_v26 }
  0x62   : > { %801 = vmatprep.mubr.f32.mxu1 %v635_v25  ;;  %732 = vmatmul.mubr.f32.vlgmr.msra.gmra.mxu0 %v468_v27  ;;  %v568_v0 = vmul.f32 -2.5, %v3536_v44  ;;  %v519_v4 = vsel %vm518_vm14, 1.0, %v3278_v8  ;;  %vm520_vm15 = vmxor %vm491_vm12, %vm3277_vm4  ;;  %v555_v7 = vadd.f32 %v554_v48, %v552_v45  ;;  %v596_v9 = vmul.f32 1.25, %v3413_v56  ;;  %v392_v25 = vld [vmem:[#allocation2 + $0x248] sm:$0xff]  ;;  %v390_v45 = vld [vmem:[#allocation2 + $0x238] sm:$0xff] }
  0x63   : > { %802 = vmatmul.mubr.f32.vlgmr.msra.gmra.mxu1 %v630_v23  ;;  %2623 = vmatpush3.msra.mxu0 %v398_v28  ;;  %v598_v10 = vmul.f32 -1.25, %v3509_v21  ;;  %v601_v11 = vmul.f32 1.25, %v3450_v18  ;;  %vm521_vm0 = vmand %vm490_vm11, %vm520_vm15  ;;  %v560_v53 = vadd.f32 %v559_v61, %v557_v58  ;;  %v603_v14 = vmul.f32 -1.25, %v3518_v26  ;;  %v424_v27 = vld [vmem:[#allocation2 + $0x348] sm:$0xff]  ;;  %v407_v28 = vld [vmem:[#allocation2 + $0x2c0] sm:$0xff] }
  0x64   : > { %2658 = vmatpush3.msra.mxu1 %v430_v29  ;;  %2624 = vmatprep.subr.mxu0 %v413_v31  ;;  %v3564_v16 = vsel %vm521_vm0, 1.0, %v3278_v8  ;;  %v562_v17 = vmul.f32 %v561_v50, %v516_v57  ;;  %v564_v22 = vmul.f32 %v563_v62, %v519_v4  ;;  %v567_v23 = vmul.f32 %v566_v63, %v519_v4  ;;  %v439_v29 = vld [vmem:[#allocation2 + $0x3c0] sm:$0xff]  ;;  %v437_v48 = vld [vmem:[#allocation2 + $0x3b0] sm:$0xff]  ;;  %v436_v61 = vld [vmem:[#allocation2 + $0x3a8] sm:$0xff] }
  0x65   : > { %2659 = vmatprep.subr.mxu1 %v445_v32  ;;  %2625 = vmatpush3.msra.mxu0 %v397_v34  ;;  %v569_v24 = vmul.f32 %v568_v0, %v3564_v16  ;;  %v597_v30 = vmul.f32 %v596_v9, %v3495_v3  ;;  %v599_v31 = vmul.f32 %v598_v10, %v555_v7  ;;  %v391_v32 = vld [vmem:[#allocation2 + $0x240] sm:$0xff]  ;;  %v606_v36 = vmul.f32 1.25, %v3458_v20  ;;  %v420_v4 = vld [vmem:[#allocation2 + $0x328] sm:$0xff] }
  0x66   : > { %2660 = vmatpush3.msra.mxu1 %v429_v35  ;;  %2626 = vmatprep.subr.mxu0 %v412_v38  ;;  %v602_v34 = vmul.f32 %v601_v11, %v555_v7  ;;  %v604_v35 = vmul.f32 %v603_v14, %v560_v53  ;;  %v608_v37 = vmul.f32 -1.25, %v3533_v43  ;;  %v406_v38 = vld [vmem:[#allocation2 + $0x2b8] sm:$0xff]  ;;  %v565_v40 = vadd.f32 %v564_v22, %v562_v17  ;;  %v387_v7 = vld [vmem:[#allocation2 + $0x220] sm:$0xff] }
  0x67   : > { %2661 = vmatprep.subr.mxu1 %v444_v39  ;;  %2627 = vmatpush3.msra.mxu0 %v396_v41  ;;  %v438_v39 = vld [vmem:[#allocation2 + $0x3b8] sm:$0xff]  ;;  %v3570_v41 = vadd.f32 %v569_v24, %v567_v23  ;;  %v611_v3 = vmul.f32 1.25, %v3509_v21  ;;  %v600_v57 = vadd.f32 %v599_v31, %v597_v30  ;;  %v641_v50 = vmul.f32 0.8333333, %v3413_v56  ;;  %v403_v56 = vld [vmem:[#allocation2 + $0x2a0] sm:$0xff]  ;;  %v432_v31 = vld [vmem:[#allocation2 + $0x388] sm:$0xff] }
  0x68   : > { %2662 = vmatpush3.msra.mxu1 %v428_v42  ;;  %2628 = vmatprep.subr.mxu0 %v411_v46  ;;  %v613_v42 = vmul.f32 -1.25, %v3536_v44  ;;  %v422_v46 = vld [vmem:[#allocation2 + $0x338] sm:$0xff]  ;;  %v605_v58 = vadd.f32 %v604_v35, %v602_v34  ;;  %v643_v62 = vmul.f32 -0.8333333, %v3518_v26  ;;  %v609_v63 = vmul.f32 %v608_v37, %v565_v40  ;;  %v419_v9 = vld [vmem:[#allocation2 + $0x320] sm:$0xff]  ;;  %v384_v34 = vld [vmem:[#allocation2 + $0x208] sm:$0xff] }
  0x69   : > { %2663 = vmatprep.subr.mxu1 %v443_v47  ;;  %2629 = vmatpush3.msra.mxu0 %v395_v51  ;;  %v405_v47 = vld [vmem:[#allocation2 + $0x2b0] sm:$0xff]  ;;  %v612_v0 = vmul.f32 %v611_v3, %v565_v40  ;;  %v642_v10 = vmul.f32 %v641_v50, %v600_v57  ;;  %v638_v11 = vmul.f32 -0.8333333, %v3509_v21  ;;  %v418_v22 = vld [vmem:[#allocation2 + $0x318] sm:$0xff]  ;;  %v646_v23 = vmul.f32 0.8333333, %v3450_v18 }
  0x6a   : > { %2664 = vmatpush3.msra.mxu1 %v427_v54  ;;  %2630 = vmatprep.subr.mxu0 %v410_v59  ;;  %v389_v51 = vld [vmem:[#allocation2 + $0x230] sm:$0xff]  ;;  %v607_v59 = vmul.f32 %v606_v36, %v560_v53  ;;  %v434_v53 = vld [vmem:[#allocation2 + $0x398] sm:$0xff]  ;;  %v644_v14 = vmul.f32 %v643_v62, %v605_v58  ;;  %v648_v24 = vmul.f32 -0.8333333, %v3533_v43  ;;  %v416_v37 = vld [vmem:[#allocation2 + $0x308] sm:$0xff]  ;;  %vm3279_vm5 = vmmov 0  }
  0x6b   : > { %2665 = vmatprep.subr.mxu1 %v442_v60  ;;  %2631 = vmatpush3.msra.mxu0 %v394_v1  ;;  %v421_v54 = vld [vmem:[#allocation2 + $0x330] sm:$0xff]  ;;  %v404_v60 = vld [vmem:[#allocation2 + $0x2a8] sm:$0xff]  ;;  %v614_v1 = vmul.f32 %v613_v42, %v3570_v41  ;;  %v639_v30 = vmul.f32 %v638_v11, %v600_v57  ;;  %v647_v35 = vmul.f32 %v646_v23, %v605_v58  ;;  %v431_v40 = vld [vmem:[#allocation2 + $0x380] sm:$0xff]  ;;  %vm492_vm1 = vcmp.ge.f32.partialorder %v3398_v49, 2.2 }
  0x6c   : > { %2666 = vmatpush3.msra.mxu1 %v426_v2  ;;  %2632 = vmatprep.subr.mxu0 %v409_v5  ;;  %v388_v2 = vld [vmem:[#allocation2 + $0x228] sm:$0xff]  ;;  %v636_v5 = vmul.f32 0.8333333, %v3410_v55  ;;  %v610_v17 = vadd.f32 %v609_v63, %v607_v59  ;;  %v415_v42 = vld [vmem:[#allocation2 + $0x300] sm:$0xff]  ;;  %vm523_vm2 = vmxor %vm492_vm1, %vm3277_vm4 }
  0x6d   : > { %2667 = vmatprep.subr.mxu1 %v441_v6  ;;  %2633 = vmatpush3.msra.mxu0 %v393_v12  ;;  %v435_v6 = vld [vmem:[#allocation2 + $0x3a0] sm:$0xff]  ;;  %v651_v12 = vmul.f32 0.8333333, %v3458_v20  ;;  %v3580_v55 = vadd.f32 %v614_v1, %v612_v0  ;;  %v401_v20 = vld [vmem:[#allocation2 + $0x290] sm:$0xff]  ;;  %vm524_vm3 = vmand %vm491_vm12, %vm523_vm2  ;;  %v616_v0 = vmul.f32 1.25, %v3518_v26 }
  0x6e   : > { %2668 = vmatpush3.msra.mxu1 %v425_v13  ;;  %2634 = vmatprep.subr.mxu0 %v408_v19  ;;  %v402_v13 = vld [vmem:[#allocation2 + $0x298] sm:$0xff]  ;;  %v653_v19 = vmul.f32 -0.8333333, %v3536_v44  ;;  %v400_v44 = vld [vmem:[#allocation2 + $0x288] sm:$0xff]  ;;  %v649_v36 = vmul.f32 %v648_v24, %v610_v17  ;;  %v459_v57 = vld [vmem:[#allocation2 + $0x460] sm:$0xff]  ;;  %v525_v50 = vsel %vm524_vm3, 1.0, %v3278_v8 }
  0x6f   : > { %2669 = vmatprep.subr.mxu1 %v440_v52  ;;  %2635 = vmatpush3.msra.mxu0 %v392_v25  ;;  %v386_v52 = vld [vmem:[#allocation2 + $0x218] sm:$0xff]  ;;  %v433_v25 = vld [vmem:[#allocation2 + $0x390] sm:$0xff]  ;;  %v455_v62 = vld [vmem:[#allocation2 + $0x440] sm:$0xff] }
  0x70   : > { %2670 = vmatpush3.msra.mxu1 %v424_v27  ;;  %2636 = vmatprep.subr.mxu0 %v407_v28  ;;  %v637_v27 = vmul.f32 %v636_v5, %v3502_v15  ;;  %v385_v28 = vld [vmem:[#allocation2 + $0x210] sm:$0xff]  ;;  %v654_v18 = vmul.f32 %v653_v19, %v3580_v55  ;;  %v399_v15 = vld [vmem:[#allocation2 + $0x280] sm:$0xff]  ;;  %v1032_v23 = vld [vmem:[#allocation4 + $0x78] sm:$0xff] }
  0x71   : > { %2671 = vmatprep.subr.mxu1 %v439_v29  ;;  %2637 = vmatpush3.msra.mxu0 %v391_v32  ;;  %v417_v29 = vld [vmem:[#allocation2 + $0x310] sm:$0xff]  ;;  %v645_v32 = vadd.f32 %v644_v14, %v642_v10  ;;  %v451_v26 = vld [vmem:[#allocation2 + $0x420] sm:$0xff]  ;;  %v450_v10 = vld [vmem:[#allocation2 + $0x418] sm:$0xff] }
  0x72   : > { %2672 = vmatpush3.msra.mxu1 %v423_v33  ;;  %2638 = vmatprep.subr.mxu0 %v406_v38  ;;  %v652_v33 = vmul.f32 %v651_v12, %v610_v17  ;;  %v383_v38 = vld [vmem:[#allocation2 + $0x200] sm:$0xff]  ;;  %v1080_v14 = vld [vmem:[#allocation4 + $0x1f8] sm:$0xff]  ;;  %v1079_v19 = vld [vmem:[#allocation4 + $0x1f0] sm:$0xff] }
  0x73   : > { %2673 = vmatprep.subr.mxu1 %v438_v39  ;;  %2639 = vmatpush3.msra.mxu0 %v390_v45  ;;  %v640_v39 = vadd.f32 %v639_v30, %v637_v27  ;;  %v650_v45 = vadd.f32 %v649_v36, %v647_v35  ;;  %v1064_v17 = vld [vmem:[#allocation4 + $0x178] sm:$0xff]  ;;  %v1062_v24 = vld [vmem:[#allocation4 + $0x168] sm:$0xff]  ;;  %v1077_v27 = vld [vmem:[#allocation4 + $0x1e0] sm:$0xff] }
  0x74   : > { %2674 = vmatpush3.msra.mxu1 %v422_v46  ;;  %2640 = vmatprep.subr.mxu0 %v405_v47  ;;  %v655_v3 = vadd.f32 %v654_v18, %v652_v33  ;;  %v462_v46 = vld [vmem:[#allocation2 + $0x478] sm:$0xff]  ;;  %v461_v47 = vld [vmem:[#allocation2 + $0x470] sm:$0xff]  ;;  %v1030_v30 = vld [vmem:[#allocation4 + $0x68] sm:$0xff] }
  0x75   : > { %2675 = vmatprep.subr.mxu1 %v437_v48  ;;  %2641 = vmatpush3.msra.mxu0 %v389_v51  ;;  %v2522_v48 = vadd.f32 -2.2, %v3398_v49  ;;  %v460_v51 = vld [vmem:[#allocation2 + $0x468] sm:$0xff]  ;;  %v458_v49 = vld [vmem:[#allocation2 + $0x458] sm:$0xff]  ;;  %v1075_v18 = vld [vmem:[#allocation4 + $0x1d0] sm:$0xff] }
  0x76   : > { %2676 = vmatpush3.msra.mxu1 %v421_v54  ;;  %2642 = vmatprep.subr.mxu0 %v404_v60  ;;  %v571_v54 = vmul.f32 2.5, %v3533_v43  ;;  %v457_v60 = vld [vmem:[#allocation2 + $0x450] sm:$0xff]  ;;  %v456_v43 = vld [vmem:[#allocation2 + $0x448] sm:$0xff]  ;;  %v1060_v33 = vld [vmem:[#allocation4 + $0x158] sm:$0xff] }
  0x77   : > { %2677 = vmatprep.subr.mxu1 %v436_v61  ;;  %2643 = vmatpush3.msra.mxu0 %v388_v2  ;;  %v573_v58 = vmul.f32 -2.5, %v2522_v48  ;;  %v618_v1 = vmul.f32 -1.25, %v2522_v48  ;;  %v453_v2 = vld [vmem:[#allocation2 + $0x430] sm:$0xff]  ;;  %v1074_v35 = vld [vmem:[#allocation4 + $0x1c8] sm:$0xff]  ;;  %v1044_v36 = vld [vmem:[#allocation4 + $0xd8] sm:$0xff] }
  0x78   : > { %2678 = vmatpush3.msra.mxu1 %v420_v4  ;;  %2644 = vmatprep.subr.mxu0 %v403_v56  ;;  %v572_v59 = vmul.f32 %v571_v54, %v3564_v16  ;;  %v454_v16 = vld [vmem:[#allocation2 + $0x438] sm:$0xff]  ;;  %v617_v4 = vmul.f32 %v616_v0, %v3570_v41  ;;  %v452_v56 = vld [vmem:[#allocation2 + $0x428] sm:$0xff]  ;;  %v449_v41 = vld [vmem:[#allocation2 + $0x410] sm:$0xff] }
  0x79   : > { %2679 = vmatprep.subr.mxu1 %v435_v6  ;;  %2645 = vmatpush3.msra.mxu0 %v387_v7  ;;  %v574_v61 = vmul.f32 %v573_v58, %v525_v50  ;;  %v656_v7 = vmul.f32 0.8333333, %v3509_v21  ;;  %v447_v21 = vld [vmem:[#allocation2 + $0x400] sm:$0xff]  ;;  %v1055_v54 = vld [vmem:[#allocation4 + $0x130] sm:$0xff]  ;;  %v1070_v58 = vld [vmem:[#allocation4 + $0x1a8] sm:$0xff] }
  0x7a   : > { %2680 = vmatpush3.msra.mxu1 %v419_v9  ;;  %2646 = vmatprep.subr.mxu0 %v402_v13  ;;  %v658_v9 = vmul.f32 -0.8333333, %v2522_v48  ;;  %v448_v13 = vld [vmem:[#allocation2 + $0x408] sm:$0xff]  ;;  %v1071_v48 = vld [vmem:[#allocation4 + $0x1b0] sm:$0xff]  ;;  %v1040_v50 = vld [vmem:[#allocation4 + $0xb8] sm:$0xff] }
  0x7b   : > { %2681 = vmatprep.subr.mxu1 %v434_v53  ;;  %2647 = vmatpush3.msra.mxu0 %v386_v52  ;;  %v575_v63 = vadd.f32 %v574_v61, %v572_v59  ;;  %v657_v11 = vmul.f32 %v656_v7, %v3580_v55  ;;  %v1063_v55 = vld [vmem:[#allocation4 + $0x170] sm:$0xff]  ;;  %v1048_v52 = vld [vmem:[#allocation4 + $0xf8] sm:$0xff]  ;;  %v1038_v0 = vld [vmem:[#allocation4 + $0xa8] sm:$0xff] }
  0x7c   : > { %2682 = vmatpush3.msra.mxu1 %v418_v22  ;;  %2648 = vmatprep.subr.mxu0 %v401_v20  ;;  %v1078_v22 = vld [vmem:[#allocation4 + $0x1e8] sm:$0xff]  ;;  %v1047_v20 = vld [vmem:[#allocation4 + $0xf0] sm:$0xff]  ;;  %v1024_v59 = vld [vmem:[#allocation4 + $0x38] sm:$0xff] }
  0x7d   : > { %2683 = vmatprep.subr.mxu1 %v433_v25  ;;  %2649 = vmatpush3.msra.mxu0 %v385_v28  ;;  %v619_v5 = vmul.f32 %v618_v1, %v575_v63  ;;  %v1031_v25 = vld [vmem:[#allocation4 + $0x70] sm:$0xff]  ;;  %v1046_v28 = vld [vmem:[#allocation4 + $0xe8] sm:$0xff]  ;;  %v1068_v63 = vld [vmem:[#allocation4 + $0x198] sm:$0xff] }
  0x7e   : > { %2684 = vmatpush3.msra.mxu1 %v417_v29  ;;  %2650 = vmatprep.subr.mxu0 %v400_v44  ;;  %v1061_v29 = vld [vmem:[#allocation4 + $0x160] sm:$0xff]  ;;  %v1039_v61 = vld [vmem:[#allocation4 + $0xb0] sm:$0xff]  ;;  %v1052_v1 = vld [vmem:[#allocation4 + $0x118] sm:$0xff] }
  0x7f   : > { %2685 = vmatprep.subr.mxu1 %v432_v31  ;;  %2651 = vmatpush3.msra.mxu0 %v384_v34  ;;  %v620_v6 = vadd.f32 %v619_v5, %v617_v4  ;;  %v1045_v44 = vld [vmem:[#allocation4 + $0xe0] sm:$0xff]  ;;  %v1076_v31 = vld [vmem:[#allocation4 + $0x1d8] sm:$0xff]  ;;  %v1059_v34 = vld [vmem:[#allocation4 + $0x150] sm:$0xff] }
  0x80   : > { %871 = vmatprep.mubr.f32.mxu0 %v645_v32  ;;  %2652 = vmatprep.subr.mxu0 %v399_v15  ;;  %v1029_v32 = vld [vmem:[#allocation4 + $0x60] sm:$0xff]  ;;  %v1058_v15 = vld [vmem:[#allocation4 + $0x148] sm:$0xff]  ;;  %v1051_v5 = vld [vmem:[#allocation4 + $0x110] sm:$0xff] }
  0x81   : > { %2686 = vmatpush3.msra.mxu1 %v416_v37  ;;  %2653 = vmatpush3.msra.mxu0 %v383_v38  ;;  %v659_v12 = vmul.f32 %v658_v9, %v620_v6  ;;  %v1028_v37 = vld [vmem:[#allocation4 + $0x58] sm:$0xff]  ;;  %v1073_v38 = vld [vmem:[#allocation4 + $0x1c0] sm:$0xff]  ;;  %v1050_v7 = vld [vmem:[#allocation4 + $0x108] sm:$0xff] }
  0x82   : > { %2687 = vmatprep.subr.mxu1 %v431_v40  ;;  %872 = vmatmul.mubr.f32.vlgmr.msra.gmra.mxu0 %v640_v39  ;;  %v1043_v39 = vld [vmem:[#allocation4 + $0xd0] sm:$0xff]  ;;  %v1057_v40 = vld [vmem:[#allocation4 + $0x140] sm:$0xff]  ;;  %v1036_v6 = vld [vmem:[#allocation4 + $0x98] sm:$0xff] }
  0x83   : > { %3023 = vmatprep.subr.mxu0 %v3278_v8  ;;  %2688 = vmatpush3.msra.mxu1 %v415_v42  ;;  %v660_v53 = vadd.f32 %v659_v12, %v657_v11  ;;  %v1072_v42 = vld [vmem:[#allocation4 + $0x1b8] sm:$0xff]  ;;  %v1037_v4 = vld [vmem:[#allocation4 + $0xa0] sm:$0xff]  ;;  %v1019_v12 = vld [vmem:[#allocation4 + $0x10] sm:$0xff] }
  0x84   : > { %941 = vmatprep.mubr.f32.mxu1 %v655_v3  ;;  %3024 = vmatpush3.msra.mxu0 %v462_v46  ;;  %v1027_v3 = vld [vmem:[#allocation4 + $0x50] sm:$0xff]  ;;  %v1056_v46 = vld [vmem:[#allocation4 + $0x138] sm:$0xff]  ;;  %v1049_v11 = vld [vmem:[#allocation4 + $0x100] sm:$0xff] }
  0x85   : > { %942 = vmatmul.mubr.f32.vlgmr.msra.gmra.mxu1 %v650_v45  ;;  %3025 = vmatprep.subr.mxu0 %v3278_v8  ;;  %v1042_v45 = vld [vmem:[#allocation4 + $0xc8] sm:$0xff]  ;;  %v1020_v9 = vld [vmem:[#allocation4 + $0x18] sm:$0xff] }
  0x86   : > { %3055 = vmatprep.mubr.msk.f32.mxu0 %vm3279_vm5, %v3278_v8  ;;  %3026 = vmatpush3.msra.mxu0 %v461_v47  ;;  %v1026_v47 = vld [vmem:[#allocation4 + $0x48] sm:$0xff] }
  0x87   : > { %3027 = vmatprep.subr.mxu0 %v3278_v8  ;;  %2709 = vmatprep.subr.mxu1 %v1048_v52 }
  0x88   : > { %3028 = vmatpush3.msra.mxu0 %v460_v51  ;;  %2710 = vmatpush3.msra.mxu1 %v1032_v23  ;;  %v1041_v51 = vld [vmem:[#allocation4 + $0xc0] sm:$0xff] }
  0x89   : > { %3029 = vmatprep.subr.mxu0 %v3278_v8  ;;  %2711 = vmatprep.subr.mxu1 %v1047_v20  ;;  %v2523_v20 = vld [vmem:[%s4056_s2] ss:$0 sm:$0xff] }
  0x8a   : > { %3030 = vmatpush3.msra.mxu0 %v459_v57  ;;  %2712 = vmatpush3.msra.mxu1 %v1031_v25  ;;  %v1025_v57 = vld [vmem:[#allocation4 + $0x40] sm:$0xff] }
  0x8b   : > { %3031 = vmatprep.subr.mxu0 %v3278_v8  ;;  %2713 = vmatprep.subr.mxu1 %v1046_v28 }
  0x8c   : > { %3032 = vmatpush3.msra.mxu0 %v458_v49  ;;  %2714 = vmatpush3.msra.mxu1 %v1030_v30  ;;  %v1054_v49 = vld [vmem:[#allocation4 + $0x128] sm:$0xff] }
  0x8d   : > { %3033 = vmatprep.subr.mxu0 %v3278_v8  ;;  %2715 = vmatprep.subr.mxu1 %v1045_v44 }
  0x8e   : > { %3034 = vmatpush3.msra.mxu0 %v457_v60  ;;  %2716 = vmatpush3.msra.mxu1 %v1029_v32  ;;  %v1069_v60 = vld [vmem:[#allocation4 + $0x1a0] sm:$0xff] }
  0x8f   : > { %3035 = vmatprep.subr.mxu0 %v3278_v8  ;;  %2717 = vmatprep.subr.mxu1 %v1044_v36 }
  0x90   : > { %3036 = vmatpush3.msra.mxu0 %v456_v43  ;;  %2718 = vmatpush3.msra.mxu1 %v1028_v37  ;;  %v1053_v43 = vld [vmem:[#allocation4 + $0x120] sm:$0xff] }
  0x91   : > { %3037 = vmatprep.subr.mxu0 %v3278_v8  ;;  %2719 = vmatprep.subr.mxu1 %v1043_v39 }
  0x92   : > { %3038 = vmatpush3.msra.mxu0 %v455_v62  ;;  %2720 = vmatpush3.msra.mxu1 %v1027_v3  ;;  %v1023_v62 = vld [vmem:[#allocation4 + $0x30] sm:$0xff] }
  0x93   : > { %3039 = vmatprep.subr.mxu0 %v3278_v8  ;;  %2721 = vmatprep.subr.mxu1 %v1042_v45 }
  0x94   : > { %3040 = vmatpush3.msra.mxu0 %v454_v16  ;;  %2722 = vmatpush3.msra.mxu1 %v1026_v47  ;;  %v1022_v16 = vld [vmem:[#allocation4 + $0x28] sm:$0xff] }
  0x95   : > { %3041 = vmatprep.subr.mxu0 %v3278_v8  ;;  %2723 = vmatprep.subr.mxu1 %v1041_v51 }
  0x96   : > { %3042 = vmatpush3.msra.mxu0 %v453_v2  ;;  %2724 = vmatpush3.msra.mxu1 %v1025_v57  ;;  %v1067_v2 = vld [vmem:[#allocation4 + $0x190] sm:$0xff] }
  0x97   : > { %3043 = vmatprep.subr.mxu0 %v3278_v8  ;;  %2725 = vmatprep.subr.mxu1 %v1040_v50 }
  0x98   : > { %3044 = vmatpush3.msra.mxu0 %v452_v56  ;;  %2726 = vmatpush3.msra.mxu1 %v1024_v59  ;;  %v1021_v56 = vld [vmem:[#allocation4 + $0x20] sm:$0xff] }
  0x99   : > { %3045 = vmatprep.subr.mxu0 %v3278_v8  ;;  %2727 = vmatprep.subr.mxu1 %v1039_v61 }
  0x9a   : > { %3046 = vmatpush3.msra.mxu0 %v451_v26  ;;  %2728 = vmatpush3.msra.mxu1 %v1023_v62  ;;  %v1066_v26 = vld [vmem:[#allocation4 + $0x188] sm:$0xff] }
  0x9b   : > { %3047 = vmatprep.subr.mxu0 %v3278_v8  ;;  %2729 = vmatprep.subr.mxu1 %v1038_v0 }
  0x9c   : > { %3048 = vmatpush3.msra.mxu0 %v450_v10  ;;  %2730 = vmatpush3.msra.mxu1 %v1022_v16  ;;  %v1065_v10 = vld [vmem:[#allocation4 + $0x180] sm:$0xff] }
  0x9d   : > { %3049 = vmatprep.subr.mxu0 %v3278_v8  ;;  %2731 = vmatprep.subr.mxu1 %v1037_v4 }
  0x9e   : > { %3050 = vmatpush3.msra.mxu0 %v449_v41  ;;  %2732 = vmatpush3.msra.mxu1 %v1021_v56  ;;  %v1035_v41 = vld [vmem:[#allocation4 + $0x90] sm:$0xff] }
  0x9f   : > { %3051 = vmatprep.subr.mxu0 %v3278_v8  ;;  %2733 = vmatprep.subr.mxu1 %v1036_v6 }
  0xa0   : > { %3052 = vmatpush3.msra.mxu0 %v448_v13  ;;  %2734 = vmatpush3.msra.mxu1 %v1020_v9  ;;  %v1144_v13 = vld [vmem:[#allocation4 + $0x3f8] sm:$0xff] }
  0xa1   : > { %3053 = vmatprep.subr.mxu0 %v3278_v8  ;;  %2735 = vmatprep.subr.mxu1 %v1035_v41 }
  0xa2   : > { %3054 = vmatpush3.msra.mxu0 %v447_v21  ;;  %2736 = vmatpush3.msra.mxu1 %v1019_v12  ;;  %v1034_v21 = vld [vmem:[#allocation4 + $0x88] sm:$0xff] }
  0xa3   : > { %3056 = vmatmul.mubr.f32.vlgmr.msra.gmra.mxu0 %v660_v53  ;;  %2744 = vmatprep.subr.mxu0 %v1080_v14  ;;  %v1018_v53 = vld [vmem:[#allocation4 + $0x8] sm:$0xff]  ;;  %v1033_v14 = vld [vmem:[#allocation4 + $0x80] sm:$0xff] }
  0xa4   : > { %2745 = vmatpush3.msra.mxu0 %v1064_v17  ;;  %2737 = vmatprep.subr.mxu1 %v1034_v21  ;;  %v1017_v17 = vld [vmem:[#allocation4] sm:$0xff] }
  0xa5   : > { %2746 = vmatprep.subr.mxu0 %v1079_v19  ;;  %2738 = vmatpush3.msra.mxu1 %v1018_v53  ;;  %v1112_v19 = vld [vmem:[#allocation4 + $0x2f8] sm:$0xff] }
  0xa6   : > { %2747 = vmatpush3.msra.mxu0 %v1063_v55  ;;  %2739 = vmatprep.subr.mxu1 %v1033_v14 }
  0xa7   : > { %2748 = vmatprep.subr.mxu0 %v1078_v22  ;;  %2740 = vmatpush3.msra.mxu1 %v1017_v17 }
  0xa8   : > { %2749 = vmatpush3.msra.mxu0 %v1062_v24  ;;  %2779 = vmatprep.subr.mxu1 %v1112_v19 }
  0xa9   : > { %2750 = vmatprep.subr.mxu0 %v1077_v27 }
  0xaa   : > { %2751 = vmatpush3.msra.mxu0 %v1061_v29 }
  0xab   : > { %2752 = vmatprep.subr.mxu0 %v1076_v31 }
  0xac   : > { %2753 = vmatpush3.msra.mxu0 %v1060_v33 }
  0xad   : > { %2754 = vmatprep.subr.mxu0 %v1075_v18 }
  0xae   : > { %2755 = vmatpush3.msra.mxu0 %v1059_v34 }
  0xaf   : > { %2756 = vmatprep.subr.mxu0 %v1074_v35 }
  0xb0   : > { %2757 = vmatpush3.msra.mxu0 %v1058_v15 }
  0xb1   : > { %2758 = vmatprep.subr.mxu0 %v1073_v38 }
  0xb2   : > { %2759 = vmatpush3.msra.mxu0 %v1057_v40 }
  0xb3   : > { %2760 = vmatprep.subr.mxu0 %v1072_v42 }
  0xb4   : > { %2761 = vmatpush3.msra.mxu0 %v1056_v46 }
  0xb5   : > { %2762 = vmatprep.subr.mxu0 %v1071_v48 }
  0xb6   : > { %2763 = vmatpush3.msra.mxu0 %v1055_v54 }
  0xb7   : > { %2764 = vmatprep.subr.mxu0 %v1070_v58 }
  0xb8   : > { %2765 = vmatpush3.msra.mxu0 %v1054_v49 }
  0xb9   : > { %2766 = vmatprep.subr.mxu0 %v1069_v60 }
  0xba   : > { %2767 = vmatpush3.msra.mxu0 %v1053_v43 }
  0xbb   : > { %2768 = vmatprep.subr.mxu0 %v1068_v63 }
  0xbc   : > { %2769 = vmatpush3.msra.mxu0 %v1052_v1 }
  0xbd   : > { %2770 = vmatprep.subr.mxu0 %v1067_v2 }
  0xbe   : > { %2771 = vmatpush3.msra.mxu0 %v1051_v5 }
  0xbf   : > { %2772 = vmatprep.subr.mxu0 %v1066_v26 }
  0xc0   : > { %2773 = vmatpush3.msra.mxu0 %v1050_v7 }
  0xc1   : > { %2774 = vmatprep.subr.mxu0 %v1065_v10 }
  0xc2   : > { %2775 = vmatpush3.msra.mxu0 %v1049_v11 }
  0xc3   : > { %2814 = vmatprep.subr.mxu0 %v1144_v13 }
 0x122   : > { %v2584_v55 = vpop.f32.mrf.mxu0 }
 0x123   : > { %v2619_v22 = vpop.f32.mrf.mxu1 }
 0x124   : > { %v2585_v52 = vpop.f32.mrf.mxu0 }
 0x125   : > { %v2586_v24 = vadd.f32 %v2585_v52, %v2584_v55  ;;  %v2620_v25 = vpop.f32.mrf.mxu1 }
 0x126   : > { %v2621_v30 = vadd.f32 %v2620_v25, %v2619_v22 }
 0x127   : > { %v734_v29 = vadd.f32 %v2586_v24, %v2523_v20 }
 0x129   : > { %v804_v32 = vadd.f32 %v2621_v30, %v734_v29 }
 0x142   : > { %v2654_v23 = vpop.f32.mrf.mxu0 }
 0x144   : > { %v2655_v27 = vpop.f32.mrf.mxu0 }
 0x145   : > { %v2689_v28 = vpop.f32.mrf.mxu1  ;;  %v2656_v44 = vadd.f32 %v2655_v27, %v2654_v23 }
 0x147   : > { %v2690_v31 = vpop.f32.mrf.mxu1  ;;  %v874_v33 = vadd.f32 %v2656_v44, %v804_v32 }
 0x148   : > { %v2691_v18 = vadd.f32 %v2690_v31, %v2689_v28 }
 0x14a   : > { %v944_v34 = vadd.f32 %v2691_v18, %v874_v33 }
 0x163   : > { %v1013_v35 = vpop.f32.mrf.mxu0 }
 0x164   : > { %v3620_v36 = vadd.f32 %v1013_v35, %v944_v34 }
 0x165   : > { %v3057_v15 = vpop.f32.mrf.mxu0 }
 0x166   : > { %v2524_v37 = vadd.f32 2.2, %v3620_v36  ;;  %v3624_v38 = vadd.f32 1.8, %v3620_v36  ;;  %v2526_v39 = vadd.f32 1.4, %v3620_v36 }
 0x167   : > { %v3628_v40 = vadd.f32 1.0, %v3620_v36  ;;  %v3631_v3 = vadd.f32 0.6, %v3620_v36  ;;  %vm1179_vm6 = vcmp.ge.f32.partialorder %v3620_v36, -2.2  ;;  %vm1182_vm7 = vcmp.ge.f32.partialorder %v3620_v36, -1.0 }
 0x168   : > { %vm1180_vm8 = vcmp.ge.f32.partialorder %v3620_v36, -1.8  ;;  %vm1181_vm9 = vcmp.ge.f32.partialorder %v3620_v36, -1.4  ;;  %vm1183_vm10 = vcmp.ge.f32.partialorder %v3620_v36, -0.6  ;;  %vm3641_vm11 = vmxor %vm1182_vm7, %vm3277_vm4 }
 0x169   : > { %vm1191_vm12 = vmxor %vm1180_vm8, %vm3277_vm4  ;;  %v1224_v45 = vmul.f32 2.5, %v2524_v37  ;;  %v1226_v46 = vmul.f32 -2.5, %v2526_v39  ;;  %v1229_v47 = vmul.f32 2.5, %v3624_v38  ;;  %v1231_v48 = vmul.f32 -2.5, %v3628_v40 }
 0x16a   : > { %vm1192_vm13 = vmand %vm1179_vm6, %vm1191_vm12  ;;  %v1234_v51 = vmul.f32 2.5, %v2526_v39  ;;  %v1236_v54 = vmul.f32 -2.5, %v3631_v3  ;;  %v1274_v57 = vmul.f32 1.25, %v2524_v37  ;;  %v1276_v58 = vmul.f32 -1.25, %v3628_v40 }
 0x16b   : > { %v1193_v50 = vsel %vm1192_vm13, 1.0, %v3278_v8  ;;  %vm1194_vm14 = vmxor %vm1181_vm9, %vm3277_vm4  ;;  %v1279_v49 = vmul.f32 1.25, %v3624_v38  ;;  %v1281_v59 = vmul.f32 -1.25, %v3631_v3  ;;  %v1319_v60 = vmul.f32 0.8333333, %v2524_v37 }
 0x16c   : > { %vm1195_vm15 = vmand %vm1180_vm8, %vm1194_vm14  ;;  %v1225_v61 = vmul.f32 %v1224_v45, %v1193_v50  ;;  %v1321_v43 = vmul.f32 -0.8333333, %v3631_v3  ;;  %v3662_v62 = vadd.f32 0.2, %v3620_v36  ;;  %v3665_v63 = vadd.f32 -0.2, %v3620_v36 }
 0x16d   : > { %v1196_v0 = vsel %vm1195_vm15, 1.0, %v3278_v8  ;;  %vm1198_vm0 = vmand %vm1181_vm9, %vm3641_vm11  ;;  %vm1184_vm1 = vcmp.ge.f32.partialorder %v3620_v36, -0.2  ;;  %vm1185_vm2 = vcmp.ge.f32.partialorder %v3620_v36, 0.2  ;;  %v1239_v1 = vmul.f32 2.5, %v3628_v40 }
 0x16e   : > { %v1199_v16 = vsel %vm1198_vm0, 1.0, %v3278_v8  ;;  %vm1200_vm3 = vmxor %vm1183_vm10, %vm3277_vm4  ;;  %v1227_v2 = vmul.f32 %v1226_v46, %v1196_v0  ;;  %v1230_v4 = vmul.f32 %v1229_v47, %v1196_v0  ;;  %v1241_v5 = vmul.f32 -2.5, %v3662_v62 }
 0x16f   : > { %vm1201_vm6 = vmand %vm1182_vm7, %vm1200_vm3  ;;  %v1232_v56 = vmul.f32 %v1231_v48, %v1199_v16  ;;  %v1235_v26 = vmul.f32 %v1234_v51, %v1199_v16  ;;  %v1244_v6 = vmul.f32 2.5, %v3631_v3  ;;  %v1246_v7 = vmul.f32 -2.5, %v3665_v63 }
 0x170   : > { %v1202_v9 = vsel %vm1201_vm6, 1.0, %v3278_v8  ;;  %v1228_v10 = vadd.f32 %v1227_v2, %v1225_v61  ;;  %vm1203_vm8 = vmxor %vm1184_vm1, %vm3277_vm4  ;;  %v1284_v41 = vmul.f32 1.25, %v2526_v39  ;;  %v1286_v11 = vmul.f32 -1.25, %v3662_v62 }
 0x171   : > { %v1233_v12 = vadd.f32 %v1232_v56, %v1230_v4  ;;  %v1237_v13 = vmul.f32 %v1236_v54, %v1202_v9  ;;  %vm1204_vm7 = vmand %vm1183_vm10, %vm1203_vm8  ;;  %v1240_v21 = vmul.f32 %v1239_v1, %v1202_v9  ;;  %v1289_v53 = vmul.f32 1.25, %v3628_v40 }
 0x172   : > { %v1275_v14 = vmul.f32 %v1274_v57, %v1228_v10  ;;  %v1205_v17 = vsel %vm1204_vm7, 1.0, %v3278_v8  ;;  %vm1206_vm9 = vmxor %vm1185_vm2, %vm3277_vm4  ;;  %v1291_v19 = vmul.f32 -1.25, %v3665_v63  ;;  %v1329_v55 = vmul.f32 0.8333333, %v2526_v39  ;;  %v1128_v10 = vld [vmem:[#allocation4 + $0x378] sm:$0xff] }
 0x173   : > { %v1238_v52 = vadd.f32 %v1237_v13, %v1235_v26  ;;  %v1277_v22 = vmul.f32 %v1276_v58, %v1233_v12  ;;  %v1280_v23 = vmul.f32 %v1279_v49, %v1233_v12  ;;  %vm1207_vm11 = vmand %vm1184_vm1, %vm1206_vm9  ;;  %v1242_v24 = vmul.f32 %v1241_v5, %v1205_v17 }
 0x174   : > { %v3700_v20 = vsel %vm1207_vm11, 1.0, %v3278_v8  ;;  %v1245_v25 = vmul.f32 %v1244_v6, %v1205_v17  ;;  %v1331_v27 = vmul.f32 -0.8333333, %v3665_v63  ;;  %v1324_v28 = vmul.f32 0.8333333, %v3624_v38 }
 0x175   : > { %v1278_v29 = vadd.f32 %v1277_v22, %v1275_v14  ;;  %v1282_v30 = vmul.f32 %v1281_v59, %v1238_v52  ;;  %v1243_v44 = vadd.f32 %v1242_v24, %v1240_v21  ;;  %v1247_v31 = vmul.f32 %v1246_v7, %v3700_v20  ;;  %v1143_v21 = vld [vmem:[#allocation4 + $0x3f0] sm:$0xff] }
 0x176   : > { %v1285_v32 = vmul.f32 %v1284_v41, %v1238_v52  ;;  %v1326_v33 = vmul.f32 -0.8333333, %v3662_v62  ;;  %v3707_v18 = vadd.f32 -0.6, %v3620_v36  ;;  %v3710_v34 = vadd.f32 -1.0, %v3620_v36  ;;  %v1127_v24 = vld [vmem:[#allocation4 + $0x370] sm:$0xff] }
 0x177   : > { %v1283_v35 = vadd.f32 %v1282_v30, %v1280_v23  ;;  %v1320_v15 = vmul.f32 %v1319_v60, %v1278_v29  ;;  %v3712_v37 = vadd.f32 %v1247_v31, %v1245_v25  ;;  %v1287_v39 = vmul.f32 %v1286_v11, %v1243_v44 }
 0x178   : > { %v1290_v38 = vmul.f32 %v1289_v53, %v1243_v44  ;;  %v3715_v42 = vadd.f32 -1.4, %v3620_v36  ;;  %v3718_v45 = vadd.f32 -1.8, %v3620_v36  ;;  %vm1186_vm10 = vcmp.ge.f32.partialorder %v3620_v36, 0.6 }
 0x179   : > { %v1322_v46 = vmul.f32 %v1321_v43, %v1283_v35  ;;  %v1288_v47 = vadd.f32 %v1287_v39, %v1285_v32  ;;  %v1292_v48 = vmul.f32 %v1291_v19, %v3712_v37  ;;  %v1325_v51 = vmul.f32 %v1324_v28, %v1283_v35  ;;  %vm1209_vm12 = vmxor %vm1186_vm10, %vm3277_vm4  ;;  %v1126_v32 = vld [vmem:[#allocation4 + $0x368] sm:$0xff]  ;;  %v1141_v35 = vld [vmem:[#allocation4 + $0x3e0] sm:$0xff] }
 0x17a   : > { %vm1187_vm13 = vcmp.ge.f32.partialorder %v3620_v36, 1.0  ;;  %vm1188_vm14 = vcmp.ge.f32.partialorder %v3620_v36, 1.4  ;;  %vm1189_vm15 = vcmp.ge.f32.partialorder %v3620_v36, 1.8  ;;  %vm1210_vm0 = vmand %vm1185_vm2, %vm1209_vm12  ;;  %v1254_v54 = vmul.f32 2.5, %v3665_v63 }
 0x17b   : > { %v1323_v57 = vadd.f32 %v1322_v46, %v1320_v15  ;;  %v3731_v58 = vadd.f32 %v1292_v48, %v1290_v38  ;;  %v1330_v50 = vmul.f32 %v1329_v55, %v1288_v47  ;;  %v1327_v49 = vmul.f32 %v1326_v33, %v1288_v47  ;;  %vm1212_vm1 = vmxor %vm1187_vm13, %vm3277_vm4  ;;  %v1125_v48 = vld [vmem:[#allocation4 + $0x360] sm:$0xff]  ;;  %v1135_v19 = vld [vmem:[#allocation4 + $0x3b0] sm:$0xff] }
 0x17c   : > { %vm1190_vm3 = vcmp.ge.f32.partialorder %v3620_v36, 2.2  ;;  %v1211_v59 = vsel %vm1210_vm0, 1.0, %v3278_v8  ;;  %vm1213_vm6 = vmand %vm1186_vm10, %vm1212_vm1  ;;  %v1256_v60 = vmul.f32 -2.5, %v3710_v34  ;;  %v1259_v61 = vmul.f32 2.5, %v3707_v18 }
 0x17d   : > { %1429 = vmatprep.mubr.f32.mxu1 %v1323_v57  ;;  %v1332_v43 = vmul.f32 %v1331_v27, %v3731_v58  ;;  %v1328_v0 = vadd.f32 %v1327_v49, %v1325_v51  ;;  %v1214_v1 = vsel %vm1213_vm6, 1.0, %v3278_v8  ;;  %vm1215_vm2 = vmxor %vm1188_vm14, %vm3277_vm4  ;;  %v1255_v16 = vmul.f32 %v1254_v54, %v1211_v59  ;;  %v1142_v27 = vld [vmem:[#allocation4 + $0x3e8] sm:$0xff]  ;;  %v1140_v51 = vld [vmem:[#allocation4 + $0x3d8] sm:$0xff] }
 0x17e   : > { %vm1216_vm8 = vmand %vm1187_vm13, %vm1215_vm2  ;;  %v1257_v2 = vmul.f32 %v1256_v60, %v1214_v1  ;;  %v1260_v4 = vmul.f32 %v1259_v61, %v1214_v1  ;;  %v1261_v5 = vmul.f32 -2.5, %v3715_v42  ;;  %v1264_v56 = vmul.f32 2.5, %v3710_v34  ;;  %v1124_v60 = vld [vmem:[#allocation4 + $0x358] sm:$0xff]  ;;  %v1123_v1 = vld [vmem:[#allocation4 + $0x350] sm:$0xff] }
 0x17f   : > { %v1333_v26 = vadd.f32 %v1332_v43, %v1330_v50  ;;  %v1217_v6 = vsel %vm1216_vm8, 1.0, %v3278_v8  ;;  %vm1218_vm7 = vmxor %vm1189_vm15, %vm3277_vm4  ;;  %v1266_v7 = vmul.f32 -2.5, %v3718_v45  ;;  %v1269_v9 = vmul.f32 2.5, %v3715_v42 }
 0x180   : > { %vm1219_vm9 = vmand %vm1188_vm14, %vm1218_vm7  ;;  %v1258_v41 = vadd.f32 %v1257_v2, %v1255_v16  ;;  %v1262_v11 = vmul.f32 %v1261_v5, %v1217_v6  ;;  %v1265_v12 = vmul.f32 %v1264_v56, %v1217_v6  ;;  %v1304_v13 = vmul.f32 1.25, %v3665_v63  ;;  %v1138_v5 = vld [vmem:[#allocation4 + $0x3c8] sm:$0xff] }
 0x181   : > { %1499 = vmatprep.mubr.f32.mxu0 %v1333_v26  ;;  %v1220_v53 = vsel %vm1219_vm9, 1.0, %v3278_v8  ;;  %vm1221_vm11 = vmxor %vm1190_vm3, %vm3277_vm4  ;;  %v1306_v14 = vmul.f32 -1.25, %v3715_v42  ;;  %v1309_v17 = vmul.f32 1.25, %v3707_v18  ;;  %v1311_v25 = vmul.f32 -1.25, %v3718_v45 }
 0x182   : > { %1500 = vmatmul.mubr.f32.vlgmr.msra.gmra.mxu0 %v1328_v0  ;;  %vm3768_vm10 = vmand %vm1189_vm15, %vm1221_vm11  ;;  %v1263_v55 = vadd.f32 %v1262_v11, %v1260_v4  ;;  %v1267_v52 = vmul.f32 %v1266_v7, %v1220_v53  ;;  %v3772_v22 = vmul.f32 %v1269_v9, %v1220_v53  ;;  %v1305_v23 = vmul.f32 %v1304_v13, %v1258_v41  ;;  %v1122_v7 = vld [vmem:[#allocation4 + $0x348] sm:$0xff]  ;;  %v1137_v11 = vld [vmem:[#allocation4 + $0x3c0] sm:$0xff] }
 0x183   : > { %2815 = vmatpush3.msra.mxu0 %v1128_v10  ;;  %v1162_v28 = vmul.f32 0.5, %v3620_v36  ;;  %v1249_v29 = vmul.f32 2.5, %v3662_v62  ;;  %v1251_v33 = vmul.f32 -2.5, %v3707_v18  ;;  %v1349_v46 = vmul.f32 0.8333333, %v3665_v63  ;;  %v1139_v63 = vld [vmem:[#allocation4 + $0x3d0] sm:$0xff] }
 0x184   : > { %2816 = vmatprep.subr.mxu0 %v1143_v21  ;;  %v1268_v30 = vadd.f32 %v1267_v52, %v1265_v12  ;;  %v1307_v44 = vmul.f32 %v1306_v14, %v1263_v55  ;;  %v1310_v31 = vmul.f32 %v1309_v17, %v1263_v55  ;;  %v1351_v50 = vmul.f32 -0.8333333, %v3718_v45  ;;  %v1136_v13 = vld [vmem:[#allocation4 + $0x3b8] sm:$0xff] }
 0x185   : > { %2817 = vmatpush3.msra.mxu0 %v1127_v24  ;;  %3174 = vtanh.f32 %v1162_v28  ;;  %v1250_v15 = vmul.f32 %v1249_v29, %v3700_v20  ;;  %v1252_v47 = vmul.f32 %v1251_v33, %v1211_v59  ;;  %v1294_v20 = vmul.f32 1.25, %v3631_v3  ;;  %v1120_v55 = vld [vmem:[#allocation4 + $0x338] sm:$0xff]  ;;  %v1119_v28 = vld [vmem:[#allocation4 + $0x330] sm:$0xff]  ;;  %v1118_v33 = vld [vmem:[#allocation4 + $0x328] sm:$0xff] }
 0x186   : > { %v3779_v39 = vadd.f32 %v1307_v44, %v1305_v23  ;;  %v1312_v38 = vmul.f32 %v1311_v25, %v1268_v30  ;;  %2818 = vmatprep.subr.mxu0 %v1142_v27  ;;  %v1296_v61 = vmul.f32 -1.25, %v3707_v18  ;;  %v1301_v43 = vmul.f32 -1.25, %v3710_v34 }
 0x187   : > { %2819 = vmatpush3.msra.mxu0 %v1126_v32  ;;  %v1253_v49 = vadd.f32 %v1252_v47, %v1250_v15  ;;  %v1299_v0 = vmul.f32 1.25, %v3662_v62  ;;  %v2535_v16 = vadd.f32 -2.2, %v3620_v36  ;;  %v1295_v45 = vmul.f32 %v1294_v20, %v3712_v37  ;;  %v1131_v20 = vld [vmem:[#allocation4 + $0x390] sm:$0xff] }
 0x188   : > { %v1313_v54 = vadd.f32 %v1312_v38, %v1310_v31  ;;  %v1350_v57 = vmul.f32 %v1349_v46, %v3779_v39  ;;  %2820 = vmatprep.subr.mxu0 %v1141_v35  ;;  %v1302_v4 = vmul.f32 %v1301_v43, %v1258_v41  ;;  %v1314_v56 = vmul.f32 1.25, %v3710_v34  ;;  %v1121_v41 = vld [vmem:[#allocation4 + $0x340] sm:$0xff]  ;;  %v1096_v46 = vld [vmem:[#allocation4 + $0x278] sm:$0xff] }
 0x189   : > { %2821 = vmatpush3.msra.mxu0 %v1125_v48  ;;  %v1297_v2 = vmul.f32 %v1296_v61, %v1253_v49  ;;  %v1300_v6 = vmul.f32 %v1299_v0, %v1253_v49  ;;  %v1223_v9 = vsel %vm3768_vm10, 1.0, %v3278_v8  ;;  %v1271_v10 = vmul.f32 -2.5, %v2535_v16  ;;  %v1111_v48 = vld [vmem:[#allocation4 + $0x2f0] sm:$0xff]  ;;  %v1094_v61 = vld [vmem:[#allocation4 + $0x268] sm:$0xff] }
 0x18a   : > { %v1352_v59 = vmul.f32 %v1351_v50, %v1313_v54  ;;  %2822 = vmatprep.subr.mxu0 %v1140_v51  ;;  %v1315_v12 = vmul.f32 %v1314_v56, %v1268_v30  ;;  %v1354_v37 = vmul.f32 0.8333333, %v3707_v18  ;;  %v1316_v23 = vmul.f32 -1.25, %v2535_v16  ;;  %v1134_v30 = vld [vmem:[#allocation4 + $0x3a8] sm:$0xff]  ;;  %v1116_v50 = vld [vmem:[#allocation4 + $0x318] sm:$0xff] }
 0x18b   : > { %2823 = vmatpush3.msra.mxu0 %v1124_v60  ;;  %v1272_v21 = vmul.f32 %v1271_v10, %v1223_v9  ;;  %v3795_v14 = vadd.f32 %v1297_v2, %v1295_v45  ;;  %v1303_v17 = vadd.f32 %v1302_v4, %v1300_v6  ;;  %v1339_v25 = vmul.f32 0.8333333, %v3631_v3  ;;  %v1117_v3 = vld [vmem:[#allocation4 + $0x320] sm:$0xff]  ;;  %v1110_v60 = vld [vmem:[#allocation4 + $0x2e8] sm:$0xff]  ;;  %v1108_v4 = vld [vmem:[#allocation4 + $0x2d8] sm:$0xff] }
 0x18c   : > { %v1353_v26 = vadd.f32 %v1352_v59, %v1350_v57  ;;  %2824 = vmatprep.subr.mxu0 %v1139_v63  ;;  %v1355_v53 = vmul.f32 %v1354_v37, %v1313_v54  ;;  %v1341_v27 = vmul.f32 -0.8333333, %v3710_v34  ;;  %v1356_v38 = vmul.f32 -0.8333333, %v2535_v16  ;;  %v1132_v54 = vld [vmem:[#allocation4 + $0x398] sm:$0xff]  ;;  %v1095_v57 = vld [vmem:[#allocation4 + $0x270] sm:$0xff] }
 0x18d   : > { %2825 = vmatpush3.msra.mxu0 %v1123_v1  ;;  %v1273_v52 = vadd.f32 %v1272_v21, %v3772_v22  ;;  %v1340_v31 = vmul.f32 %v1339_v25, %v3795_v14  ;;  %v1133_v22 = vld [vmem:[#allocation4 + $0x3a0] sm:$0xff]  ;;  %v1344_v43 = vmul.f32 0.8333333, %v3662_v62  ;;  %v1346_v63 = vmul.f32 -0.8333333, %v3715_v42  ;;  %v1130_v0 = vld [vmem:[#allocation4 + $0x388] sm:$0xff] }
 0x18e   : > { %1639 = vmatprep.mubr.f32.mxu0 %v1353_v26  ;;  %2826 = vmatprep.subr.mxu0 %v1138_v5  ;;  %v1342_v32 = vmul.f32 %v1341_v27, %v1303_v17  ;;  %v1109_v59 = vld [vmem:[#allocation4 + $0x2e0] sm:$0xff]  ;;  %v1114_v16 = vld [vmem:[#allocation4 + $0x308] sm:$0xff]  ;;  %v1092_v56 = vld [vmem:[#allocation4 + $0x258] sm:$0xff]  ;;  %v1336_v25 = vmul.f32 -0.8333333, %v3707_v18 }
 0x18f   : > { %2827 = vmatpush3.msra.mxu0 %v1122_v7  ;;  %v1317_v44 = vmul.f32 %v1316_v23, %v1273_v52  ;;  %v1093_v1 = vld [vmem:[#allocation4 + $0x260] sm:$0xff]  ;;  %v1345_v45 = vmul.f32 %v1344_v43, %v1303_v17  ;;  %v1347_v2 = vmul.f32 %v1346_v63, %v3779_v39  ;;  %v1107_v42 = vld [vmem:[#allocation4 + $0x2d0] sm:$0xff]  ;;  %v1106_v7 = vld [vmem:[#allocation4 + $0x2c8] sm:$0xff] }
 0x190   : > { %2828 = vmatprep.subr.mxu0 %v1137_v11  ;;  %v1343_v51 = vadd.f32 %v1342_v32, %v1340_v31  ;;  %v1129_v5 = vld [vmem:[#allocation4 + $0x380] sm:$0xff]  ;;  %v1091_v26 = vld [vmem:[#allocation4 + $0x250] sm:$0xff]  ;;  %v1090_v39 = vld [vmem:[#allocation4 + $0x248] sm:$0xff] }
 0x191   : > { %2829 = vmatpush3.msra.mxu0 %v1121_v41  ;;  %v1318_v15 = vadd.f32 %v1317_v44, %v1315_v12  ;;  %v1113_v62 = vld [vmem:[#allocation4 + $0x300] sm:$0xff]  ;;  %v1348_v6 = vadd.f32 %v1347_v2, %v1345_v45  ;;  %v1104_v11 = vld [vmem:[#allocation4 + $0x2b8] sm:$0xff]  ;;  %v1103_v37 = vld [vmem:[#allocation4 + $0x2b0] sm:$0xff] }
 0x192   : > { %v3175_v24 = vpop.eup %3174  ;;  %2830 = vmatprep.subr.mxu0 %v1136_v13  ;;  %v1105_v9 = vld [vmem:[#allocation4 + $0x2c0] sm:$0xff]  ;;  %v1088_v12 = vld [vmem:[#allocation4 + $0x238] sm:$0xff]  ;;  %v1087_v41 = vld [vmem:[#allocation4 + $0x230] sm:$0xff] }
 0x193   : > { %v1164_v29 = vmul.f32 0.5, %v3175_v24  ;;  %2831 = vmatpush3.msra.mxu0 %v1120_v55  ;;  %v1357_v47 = vmul.f32 %v1356_v38, %v1318_v15  ;;  %v1089_v10 = vld [vmem:[#allocation4 + $0x240] sm:$0xff]  ;;  %v1102_v13 = vld [vmem:[#allocation4 + $0x2a8] sm:$0xff]  ;;  %v1100_v55 = vld [vmem:[#allocation4 + $0x298] sm:$0xff]  ;;  %v1334_v24 = vmul.f32 0.8333333, %v3628_v40 }
 0x194   : > { %2832 = vmatprep.subr.mxu0 %v1135_v19  ;;  %v1086_v21 = vld [vmem:[#allocation4 + $0x228] sm:$0xff]  ;;  %v1085_v17 = vld [vmem:[#allocation4 + $0x220] sm:$0xff]  ;;  %v1084_v19 = vld [vmem:[#allocation4 + $0x218] sm:$0xff] }
 0x195   : > { %v1165_v35 = vadd.f32 0.5, %v1164_v29  ;;  %2833 = vmatpush3.msra.mxu0 %v1119_v28  ;;  %v3802_v49 = vadd.f32 %v1357_v47, %v1355_v53  ;;  %v1101_v53 = vld [vmem:[#allocation4 + $0x2a0] sm:$0xff]  ;;  %v1099_v52 = vld [vmem:[#allocation4 + $0x290] sm:$0xff]  ;;  %v1098_v27 = vld [vmem:[#allocation4 + $0x288] sm:$0xff]  ;;  %v1335_v29 = vmul.f32 %v1334_v24, %v3731_v58 }
 0x196   : > { %2834 = vmatprep.subr.mxu0 %v1134_v30  ;;  %v1083_v23 = vld [vmem:[#allocation4 + $0x210] sm:$0xff]  ;;  %v1082_v28 = vld [vmem:[#allocation4 + $0x208] sm:$0xff]  ;;  %v1337_v30 = vmul.f32 %v1336_v25, %v3795_v14  ;;  %v1097_v44 = vld [vmem:[#allocation4 + $0x280] sm:$0xff] }
 0x197   : > { %v1166_v34 = vmul.f32 %v1165_v35, %v3620_v36  ;;  %2835 = vmatpush3.msra.mxu0 %v1118_v33  ;;  %v1115_v36 = vld [vmem:[#allocation4 + $0x310] sm:$0xff]  ;;  %v1081_v31 = vld [vmem:[#allocation4 + $0x200] sm:$0xff]  ;;  %v1160_v33 = vld [vmem:[#allocation4 + $0x478] sm:$0xff] }
 0x198   : > { %2836 = vmatprep.subr.mxu0 %v1133_v22  ;;  %v1338_v32 = vadd.f32 %v1337_v30, %v1335_v29  ;;  %v1159_v40 = vld [vmem:[#allocation4 + $0x470] sm:$0xff]  ;;  %v1158_v18 = vld [vmem:[#allocation4 + $0x468] sm:$0xff]  ;;  %v1157_v58 = vld [vmem:[#allocation4 + $0x460] sm:$0xff] }
 0x199   : > { %1430 = vmatmul.mubr.f32.vlgmr.msra.gmra.mxu1 %v1166_v34  ;;  %2837 = vmatpush3.msra.mxu0 %v1117_v3  ;;  %v1156_v14 = vld [vmem:[#allocation4 + $0x458] sm:$0xff]  ;;  %v1155_v35 = vld [vmem:[#allocation4 + $0x450] sm:$0xff]  ;;  %v1154_v22 = vld [vmem:[#allocation4 + $0x448] sm:$0xff] }
 0x19a   : > { %2780 = vmatpush3.msra.mxu1 %v1096_v46  ;;  %1569 = vmatprep.mubr.f32.mxu1 %v1343_v51  ;;  %v1153_v15 = vld [vmem:[#allocation4 + $0x440] sm:$0xff]  ;;  %v1152_v38 = vld [vmem:[#allocation4 + $0x438] sm:$0xff]  ;;  %v1151_v3 = vld [vmem:[#allocation4 + $0x430] sm:$0xff] }
 0x19b   : > { %2781 = vmatprep.subr.mxu1 %v1111_v48  ;;  %2838 = vmatprep.subr.mxu0 %v1132_v54  ;;  %v1150_v34 = vld [vmem:[#allocation4 + $0x428] sm:$0xff]  ;;  %v1149_v46 = vld [vmem:[#allocation4 + $0x420] sm:$0xff]  ;;  %v1148_v47 = vld [vmem:[#allocation4 + $0x418] sm:$0xff] }
 0x19c   : > { %2782 = vmatpush3.msra.mxu1 %v1095_v57  ;;  %2839 = vmatpush3.msra.mxu0 %v1116_v50  ;;  %v1147_v48 = vld [vmem:[#allocation4 + $0x410] sm:$0xff]  ;;  %v1146_v51 = vld [vmem:[#allocation4 + $0x408] sm:$0xff]  ;;  %v1145_v54 = vld [vmem:[#allocation4 + $0x400] sm:$0xff] }
 0x19d   : > { %2783 = vmatprep.subr.mxu1 %v1110_v60  ;;  %2840 = vmatprep.subr.mxu0 %v1131_v20  ;;  %v1778_v57 = vld [vmem:[#allocation6 + $0x1f8] sm:$0xff]  ;;  %v1777_v60 = vld [vmem:[#allocation6 + $0x1f0] sm:$0xff]  ;;  %v1760_v63 = vld [vmem:[#allocation6 + $0x168] sm:$0xff] }
 0x19e   : > { %2784 = vmatpush3.msra.mxu1 %v1094_v61  ;;  %2841 = vmatpush3.msra.mxu0 %v1115_v36  ;;  %v1762_v50 = vld [vmem:[#allocation6 + $0x178] sm:$0xff]  ;;  %v1761_v20 = vld [vmem:[#allocation6 + $0x170] sm:$0xff]  ;;  %v1776_v36 = vld [vmem:[#allocation6 + $0x1e8] sm:$0xff] }
 0x19f   : > { %2785 = vmatprep.subr.mxu1 %v1109_v59  ;;  %2842 = vmatprep.subr.mxu0 %v1130_v0  ;;  %v1746_v61 = vld [vmem:[#allocation6 + $0xf8] sm:$0xff]  ;;  %v1745_v59 = vld [vmem:[#allocation6 + $0xf0] sm:$0xff]  ;;  %v1728_v45 = vld [vmem:[#allocation6 + $0x68] sm:$0xff] }
 0x1a0   : > { %2786 = vmatpush3.msra.mxu1 %v1093_v1  ;;  %2843 = vmatpush3.msra.mxu0 %v1114_v16  ;;  %v1730_v43 = vld [vmem:[#allocation6 + $0x78] sm:$0xff]  ;;  %v1729_v0 = vld [vmem:[#allocation6 + $0x70] sm:$0xff]  ;;  %v1775_v1 = vld [vmem:[#allocation6 + $0x1e0] sm:$0xff] }
 0x1a1   : > { %2787 = vmatprep.subr.mxu1 %v1108_v4  ;;  %2844 = vmatprep.subr.mxu0 %v1129_v5  ;;  %v1744_v16 = vld [vmem:[#allocation6 + $0xe8] sm:$0xff]  ;;  %v1743_v2 = vld [vmem:[#allocation6 + $0xe0] sm:$0xff]  ;;  %v1774_v4 = vld [vmem:[#allocation6 + $0x1d8] sm:$0xff] }
 0x1a2   : > { %2788 = vmatpush3.msra.mxu1 %v1092_v56  ;;  %2845 = vmatpush3.msra.mxu0 %v1113_v62  ;;  %v1727_v5 = vld [vmem:[#allocation6 + $0x60] sm:$0xff]  ;;  %v1758_v56 = vld [vmem:[#allocation6 + $0x158] sm:$0xff]  ;;  %v1773_v62 = vld [vmem:[#allocation6 + $0x1d0] sm:$0xff] }
 0x1a3   : > { %2789 = vmatprep.subr.mxu1 %v1107_v42  ;;  %1640 = vmatmul.mubr.f32.vlgmr.msra.gmra.mxu0 %v1348_v6  ;;  %v1757_v42 = vld [vmem:[#allocation6 + $0x150] sm:$0xff]  ;;  %v1742_v6 = vld [vmem:[#allocation6 + $0xd8] sm:$0xff]  ;;  %v1752_v24 = vld [vmem:[#allocation6 + $0x128] sm:$0xff] }
 0x1a4   : > { %2790 = vmatpush3.msra.mxu1 %v1091_v26  ;;  %2866 = vmatprep.subr.mxu0 %v1746_v61  ;;  %v1772_v26 = vld [vmem:[#allocation6 + $0x1c8] sm:$0xff]  ;;  %v1722_v25 = vld [vmem:[#allocation6 + $0x38] sm:$0xff]  ;;  %v1751_v29 = vld [vmem:[#allocation6 + $0x120] sm:$0xff] }
 0x1a5   : > { %2791 = vmatprep.subr.mxu1 %v1106_v7  ;;  %2867 = vmatpush3.msra.mxu0 %v1730_v43  ;;  %v1756_v7 = vld [vmem:[#allocation6 + $0x148] sm:$0xff]  ;;  %v1721_v30 = vld [vmem:[#allocation6 + $0x30] sm:$0xff] }
 0x1a6   : > { %2792 = vmatpush3.msra.mxu1 %v1090_v39  ;;  %2868 = vmatprep.subr.mxu0 %v1745_v59  ;;  %v1726_v39 = vld [vmem:[#allocation6 + $0x58] sm:$0xff]  ;;  %v2536_v59 = vld [vmem:[%s4058_s4] ss:$0 sm:$0xff] }
 0x1a7   : > { %2793 = vmatprep.subr.mxu1 %v1105_v9  ;;  %2869 = vmatpush3.msra.mxu0 %v1729_v0  ;;  %v1771_v9 = vld [vmem:[#allocation6 + $0x1c0] sm:$0xff] }
 0x1a8   : > { %2794 = vmatpush3.msra.mxu1 %v1089_v10  ;;  %2870 = vmatprep.subr.mxu0 %v1744_v16  ;;  %v1741_v10 = vld [vmem:[#allocation6 + $0xd0] sm:$0xff] }
 0x1a9   : > { %2795 = vmatprep.subr.mxu1 %v1104_v11  ;;  %2871 = vmatpush3.msra.mxu0 %v1728_v45  ;;  %v1755_v11 = vld [vmem:[#allocation6 + $0x140] sm:$0xff] }
 0x1aa   : > { %2796 = vmatpush3.msra.mxu1 %v1088_v12  ;;  %2872 = vmatprep.subr.mxu0 %v1743_v2  ;;  %v1725_v12 = vld [vmem:[#allocation6 + $0x50] sm:$0xff] }
 0x1ab   : > { %2797 = vmatprep.subr.mxu1 %v1103_v37  ;;  %2873 = vmatpush3.msra.mxu0 %v1727_v5  ;;  %v1770_v37 = vld [vmem:[#allocation6 + $0x1b8] sm:$0xff] }
 0x1ac   : > { %2798 = vmatpush3.msra.mxu1 %v1087_v41  ;;  %2874 = vmatprep.subr.mxu0 %v1742_v6  ;;  %v1740_v41 = vld [vmem:[#allocation6 + $0xc8] sm:$0xff] }
 0x1ad   : > { %2799 = vmatprep.subr.mxu1 %v1102_v13  ;;  %2875 = vmatpush3.msra.mxu0 %v1726_v39  ;;  %v1754_v13 = vld [vmem:[#allocation6 + $0x138] sm:$0xff] }
 0x1ae   : > { %2800 = vmatpush3.msra.mxu1 %v1086_v21  ;;  %2876 = vmatprep.subr.mxu0 %v1741_v10  ;;  %v1724_v21 = vld [vmem:[#allocation6 + $0x48] sm:$0xff] }
 0x1af   : > { %2801 = vmatprep.subr.mxu1 %v1101_v53  ;;  %v1769_v53 = vld [vmem:[#allocation6 + $0x1b0] sm:$0xff]  ;;  %2877 = vmatpush3.msra.mxu0 %v1725_v12 }
 0x1b0   : > { %2802 = vmatpush3.msra.mxu1 %v1085_v17  ;;  %v1739_v17 = vld [vmem:[#allocation6 + $0xc0] sm:$0xff]  ;;  %2878 = vmatprep.subr.mxu0 %v1740_v41 }
 0x1b1   : > { %2803 = vmatprep.subr.mxu1 %v1100_v55  ;;  %v1753_v55 = vld [vmem:[#allocation6 + $0x130] sm:$0xff]  ;;  %2879 = vmatpush3.msra.mxu0 %v1724_v21 }
 0x1b2   : > { %2804 = vmatpush3.msra.mxu1 %v1084_v19  ;;  %v1723_v19 = vld [vmem:[#allocation6 + $0x40] sm:$0xff]  ;;  %2880 = vmatprep.subr.mxu0 %v1739_v17 }
 0x1b3   : > { %2805 = vmatprep.subr.mxu1 %v1099_v52  ;;  %v1768_v52 = vld [vmem:[#allocation6 + $0x1a8] sm:$0xff]  ;;  %2881 = vmatpush3.msra.mxu0 %v1723_v19 }
 0x1b4   : > { %2806 = vmatpush3.msra.mxu1 %v1083_v23  ;;  %v1738_v23 = vld [vmem:[#allocation6 + $0xb8] sm:$0xff] }
 0x1b5   : > { %2807 = vmatprep.subr.mxu1 %v1098_v27  ;;  %v1767_v27 = vld [vmem:[#allocation6 + $0x1a0] sm:$0xff]  ;;  %2882 = vmatprep.subr.mxu0 %v1738_v23 }
 0x1b6   : > { %2808 = vmatpush3.msra.mxu1 %v1082_v28  ;;  %v1737_v28 = vld [vmem:[#allocation6 + $0xb0] sm:$0xff]  ;;  %2883 = vmatpush3.msra.mxu0 %v1722_v25 }
 0x1b7   : > { %2809 = vmatprep.subr.mxu1 %v1097_v44  ;;  %v1766_v44 = vld [vmem:[#allocation6 + $0x198] sm:$0xff]  ;;  %2884 = vmatprep.subr.mxu0 %v1737_v28 }
 0x1b8   : > { %2810 = vmatpush3.msra.mxu1 %v1081_v31  ;;  %v1736_v31 = vld [vmem:[#allocation6 + $0xa8] sm:$0xff]  ;;  %2885 = vmatpush3.msra.mxu0 %v1721_v30 }
 0x1b9   : > { %1570 = vmatmul.mubr.f32.vlgmr.msra.gmra.mxu1 %v1338_v32  ;;  %3058 = vmatprep.subr.mxu1 %v3278_v8  ;;  %v1750_v32 = vld [vmem:[#allocation6 + $0x118] sm:$0xff] }
 0x1ba   : > { %3059 = vmatpush3.msra.mxu1 %v1160_v33  ;;  %3090 = vmatprep.mubr.msk.f32.mxu1 %vm3279_vm5, %v3278_v8  ;;  %v1720_v33 = vld [vmem:[#allocation6 + $0x28] sm:$0xff] }
 0x1bb   : > { %3060 = vmatprep.subr.mxu1 %v3278_v8  ;;  %2886 = vmatprep.subr.mxu0 %v1736_v31 }
 0x1bc   : > { %3061 = vmatpush3.msra.mxu1 %v1159_v40  ;;  %v1765_v40 = vld [vmem:[#allocation6 + $0x190] sm:$0xff]  ;;  %2887 = vmatpush3.msra.mxu0 %v1720_v33 }
 0x1bd   : > { %3062 = vmatprep.subr.mxu1 %v3278_v8 }
 0x1be   : > { %3063 = vmatpush3.msra.mxu1 %v1158_v18  ;;  %v1735_v18 = vld [vmem:[#allocation6 + $0xa0] sm:$0xff] }
 0x1bf   : > { %3064 = vmatprep.subr.mxu1 %v3278_v8  ;;  %2888 = vmatprep.subr.mxu0 %v1735_v18 }
 0x1c0   : > { %3065 = vmatpush3.msra.mxu1 %v1157_v58  ;;  %v1749_v58 = vld [vmem:[#allocation6 + $0x110] sm:$0xff] }
 0x1c1   : > { %3066 = vmatprep.subr.mxu1 %v3278_v8 }
 0x1c2   : > { %3067 = vmatpush3.msra.mxu1 %v1156_v14  ;;  %v1719_v14 = vld [vmem:[#allocation6 + $0x20] sm:$0xff] }
 0x1c3   : > { %3068 = vmatprep.subr.mxu1 %v3278_v8  ;;  %2889 = vmatpush3.msra.mxu0 %v1719_v14 }
 0x1c4   : > { %3069 = vmatpush3.msra.mxu1 %v1155_v35  ;;  %v1764_v35 = vld [vmem:[#allocation6 + $0x188] sm:$0xff] }
 0x1c5   : > { %3070 = vmatprep.subr.mxu1 %v3278_v8 }
 0x1c6   : > { %3071 = vmatpush3.msra.mxu1 %v1154_v22  ;;  %v1734_v22 = vld [vmem:[#allocation6 + $0x98] sm:$0xff] }
 0x1c7   : > { %3072 = vmatprep.subr.mxu1 %v3278_v8  ;;  %2890 = vmatprep.subr.mxu0 %v1734_v22 }
 0x1c8   : > { %3073 = vmatpush3.msra.mxu1 %v1153_v15  ;;  %v1748_v15 = vld [vmem:[#allocation6 + $0x108] sm:$0xff] }
 0x1c9   : > { %3074 = vmatprep.subr.mxu1 %v3278_v8 }
 0x1ca   : > { %3075 = vmatpush3.msra.mxu1 %v1152_v38  ;;  %v1718_v38 = vld [vmem:[#allocation6 + $0x18] sm:$0xff] }
 0x1cb   : > { %3076 = vmatprep.subr.mxu1 %v3278_v8  ;;  %2891 = vmatpush3.msra.mxu0 %v1718_v38 }
 0x1cc   : > { %3077 = vmatpush3.msra.mxu1 %v1151_v3  ;;  %v1763_v3 = vld [vmem:[#allocation6 + $0x180] sm:$0xff] }
 0x1cd   : > { %3078 = vmatprep.subr.mxu1 %v3278_v8 }
 0x1ce   : > { %3079 = vmatpush3.msra.mxu1 %v1150_v34  ;;  %v1733_v34 = vld [vmem:[#allocation6 + $0x90] sm:$0xff] }
 0x1cf   : > { %3080 = vmatprep.subr.mxu1 %v3278_v8  ;;  %2892 = vmatprep.subr.mxu0 %v1733_v34 }
 0x1d0   : > { %3081 = vmatpush3.msra.mxu1 %v1149_v46  ;;  %v1747_v46 = vld [vmem:[#allocation6 + $0x100] sm:$0xff] }
 0x1d1   : > { %3082 = vmatprep.subr.mxu1 %v3278_v8 }
 0x1d2   : > { %3083 = vmatpush3.msra.mxu1 %v1148_v47  ;;  %v1717_v47 = vld [vmem:[#allocation6 + $0x10] sm:$0xff] }
 0x1d3   : > { %3084 = vmatprep.subr.mxu1 %v3278_v8  ;;  %2893 = vmatpush3.msra.mxu0 %v1717_v47 }
 0x1d4   : > { %3085 = vmatpush3.msra.mxu1 %v1147_v48  ;;  %v1842_v48 = vld [vmem:[#allocation6 + $0x3f8] sm:$0xff] }
 0x1d5   : > { %3086 = vmatprep.subr.mxu1 %v3278_v8 }
 0x1d6   : > { %3087 = vmatpush3.msra.mxu1 %v1146_v51  ;;  %v1732_v51 = vld [vmem:[#allocation6 + $0x88] sm:$0xff] }
 0x1d7   : > { %3088 = vmatprep.subr.mxu1 %v3278_v8  ;;  %2894 = vmatprep.subr.mxu0 %v1732_v51 }
 0x1d8   : > { %3089 = vmatpush3.msra.mxu1 %v1145_v54  ;;  %v1716_v54 = vld [vmem:[#allocation6 + $0x8] sm:$0xff] }
 0x1d9   : > { %3091 = vmatmul.mubr.f32.vlgmr.msra.gmra.mxu1 %v3802_v49  ;;  %2901 = vmatprep.subr.mxu1 %v1778_v57  ;;  %v1759_v49 = vld [vmem:[#allocation6 + $0x160] sm:$0xff] }
 0x1da   : > { %2902 = vmatpush3.msra.mxu1 %v1762_v50  ;;  %2895 = vmatpush3.msra.mxu0 %v1716_v54  ;;  %v1731_v57 = vld [vmem:[#allocation6 + $0x80] sm:$0xff] }
 0x1db   : > { %2903 = vmatprep.subr.mxu1 %v1777_v60  ;;  %v1715_v50 = vld [vmem:[#allocation6] sm:$0xff]  ;;  %2896 = vmatprep.subr.mxu0 %v1731_v57  ;;  %v1810_v60 = vld [vmem:[#allocation6 + $0x2f8] sm:$0xff] }
 0x1dc   : > { %2904 = vmatpush3.msra.mxu1 %v1761_v20  ;;  %2897 = vmatpush3.msra.mxu0 %v1715_v50 }
 0x1dd   : > { %2905 = vmatprep.subr.mxu1 %v1776_v36  ;;  %2936 = vmatprep.subr.mxu0 %v1810_v60 }
 0x1de   : > { %2906 = vmatpush3.msra.mxu1 %v1760_v63 }
 0x1df   : > { %2907 = vmatprep.subr.mxu1 %v1775_v1 }
 0x1e0   : > { %2908 = vmatpush3.msra.mxu1 %v1759_v49 }
 0x1e1   : > { %2909 = vmatprep.subr.mxu1 %v1774_v4 }
 0x1e2   : > { %2910 = vmatpush3.msra.mxu1 %v1758_v56 }
 0x1e3   : > { %2911 = vmatprep.subr.mxu1 %v1773_v62 }
 0x1e4   : > { %2912 = vmatpush3.msra.mxu1 %v1757_v42 }
 0x1e5   : > { %2913 = vmatprep.subr.mxu1 %v1772_v26 }
 0x1e6   : > { %2914 = vmatpush3.msra.mxu1 %v1756_v7 }
 0x1e7   : > { %2915 = vmatprep.subr.mxu1 %v1771_v9 }
 0x1e8   : > { %2916 = vmatpush3.msra.mxu1 %v1755_v11 }
 0x1e9   : > { %2917 = vmatprep.subr.mxu1 %v1770_v37 }
 0x1ea   : > { %2918 = vmatpush3.msra.mxu1 %v1754_v13 }
 0x1eb   : > { %2919 = vmatprep.subr.mxu1 %v1769_v53 }
 0x1ec   : > { %2920 = vmatpush3.msra.mxu1 %v1753_v55 }
 0x1ed   : > { %2921 = vmatprep.subr.mxu1 %v1768_v52 }
 0x1ee   : > { %2922 = vmatpush3.msra.mxu1 %v1752_v24 }
 0x1ef   : > { %2923 = vmatprep.subr.mxu1 %v1767_v27 }
 0x1f0   : > { %2924 = vmatpush3.msra.mxu1 %v1751_v29 }
 0x1f1   : > { %2925 = vmatprep.subr.mxu1 %v1766_v44 }
 0x1f2   : > { %2926 = vmatpush3.msra.mxu1 %v1750_v32 }
 0x1f3   : > { %2927 = vmatprep.subr.mxu1 %v1765_v40 }
 0x1f4   : > { %2928 = vmatpush3.msra.mxu1 %v1749_v58 }
 0x1f5   : > { %2929 = vmatprep.subr.mxu1 %v1764_v35 }
 0x1f6   : > { %2930 = vmatpush3.msra.mxu1 %v1748_v15 }
 0x1f7   : > { %2931 = vmatprep.subr.mxu1 %v1763_v3 }
 0x1f8   : > { %2932 = vmatpush3.msra.mxu1 %v1747_v46 }
 0x1f9   : > { %2971 = vmatprep.subr.mxu1 %v1842_v48 }
 0x242   : > { %v2776_v36 = vpop.f32.mrf.mxu0 }
 0x244   : > { %v2777_v0 = vpop.f32.mrf.mxu0 }
 0x245   : > { %v2778_v45 = vadd.f32 %v2777_v0, %v2776_v36 }
 0x259   : > { %v2741_v20 = vpop.f32.mrf.mxu1 }
 0x25b   : > { %v2742_v61 = vpop.f32.mrf.mxu1 }
 0x25c   : > { %v2743_v63 = vadd.f32 %v2742_v61, %v2741_v20 }
 0x25e   : > { %v1432_v16 = vadd.f32 %v2743_v63, %v2536_v59 }
 0x260   : > { %v1502_v4 = vadd.f32 %v2778_v45, %v1432_v16 }
 0x263   : > { %v2846_v49 = vpop.f32.mrf.mxu0 }
 0x265   : > { %v2847_v5 = vpop.f32.mrf.mxu0 }
 0x266   : > { %v2848_v62 = vadd.f32 %v2847_v5, %v2846_v49 }
 0x279   : > { %v2811_v43 = vpop.f32.mrf.mxu1 }
 0x27b   : > { %v2812_v1 = vpop.f32.mrf.mxu1 }
 0x27c   : > { %v2813_v2 = vadd.f32 %v2812_v1, %v2811_v43 }
 0x27e   : > { %v1572_v56 = vadd.f32 %v2813_v2, %v1502_v4 }
 0x280   : > { %v1642_v42 = vadd.f32 %v2848_v62, %v1572_v56 }
 0x299   : > { %v1711_v26 = vpop.f32.mrf.mxu1 }
 0x29a   : > { %v3833_v6 = vadd.f32 %v1711_v26, %v1642_v42 }
 0x29b   : > { %v3092_v7 = vpop.f32.mrf.mxu1 }
 0x29c   : > { %v2537_v39 = vadd.f32 2.2, %v3833_v6  ;;  %v3837_v9 = vadd.f32 1.8, %v3833_v6  ;;  %v2539_v10 = vadd.f32 1.4, %v3833_v6 }
 0x29d   : > { %v3841_v11 = vadd.f32 1.0, %v3833_v6  ;;  %v3844_v12 = vadd.f32 0.6, %v3833_v6  ;;  %vm1877_vm12 = vcmp.ge.f32.partialorder %v3833_v6, -2.2  ;;  %vm1880_vm13 = vcmp.ge.f32.partialorder %v3833_v6, -1.0 }
 0x29e   : > { %vm1878_vm14 = vcmp.ge.f32.partialorder %v3833_v6, -1.8  ;;  %vm1879_vm15 = vcmp.ge.f32.partialorder %v3833_v6, -1.4  ;;  %vm1881_vm0 = vcmp.ge.f32.partialorder %v3833_v6, -0.6  ;;  %vm3854_vm1 = vmxor %vm1880_vm13, %vm3277_vm4 }
 0x29f   : > { %vm1889_vm3 = vmxor %vm1878_vm14, %vm3277_vm4  ;;  %v1922_v41 = vmul.f32 2.5, %v2537_v39  ;;  %v1924_v13 = vmul.f32 -2.5, %v2539_v10  ;;  %v1927_v21 = vmul.f32 2.5, %v3837_v9  ;;  %v1929_v53 = vmul.f32 -2.5, %v3841_v11 }
 0x2a0   : > { %vm1890_vm6 = vmand %vm1877_vm12, %vm1889_vm3  ;;  %v1932_v17 = vmul.f32 2.5, %v2539_v10  ;;  %v1934_v55 = vmul.f32 -2.5, %v3844_v12  ;;  %v1972_v19 = vmul.f32 1.25, %v2537_v39  ;;  %v1974_v52 = vmul.f32 -1.25, %v3841_v11 }
 0x2a1   : > { %v1891_v23 = vsel %vm1890_vm6, 1.0, %v3278_v8  ;;  %vm1892_vm2 = vmxor %vm1879_vm15, %vm3277_vm4  ;;  %v1977_v24 = vmul.f32 1.25, %v3837_v9  ;;  %v1979_v25 = vmul.f32 -1.25, %v3844_v12  ;;  %v2017_v27 = vmul.f32 0.8333333, %v2537_v39 }
 0x2a2   : > { %vm1893_vm8 = vmand %vm1878_vm14, %vm1892_vm2  ;;  %v1923_v28 = vmul.f32 %v1922_v41, %v1891_v23  ;;  %v2019_v29 = vmul.f32 -0.8333333, %v3844_v12  ;;  %v3875_v30 = vadd.f32 0.2, %v3833_v6  ;;  %v3878_v44 = vadd.f32 -0.2, %v3833_v6 }
 0x2a3   : > { %v1894_v31 = vsel %vm1893_vm8, 1.0, %v3278_v8  ;;  %vm1896_vm7 = vmand %vm1879_vm15, %vm3854_vm1  ;;  %vm1882_vm9 = vcmp.ge.f32.partialorder %v3833_v6, -0.2  ;;  %vm1883_vm11 = vcmp.ge.f32.partialorder %v3833_v6, 0.2  ;;  %v1937_v32 = vmul.f32 2.5, %v3841_v11 }
 0x2a4   : > { %v1897_v33 = vsel %vm1896_vm7, 1.0, %v3278_v8  ;;  %vm1898_vm10 = vmxor %vm1881_vm0, %vm3277_vm4  ;;  %v1925_v40 = vmul.f32 %v1924_v13, %v1894_v31  ;;  %v1928_v18 = vmul.f32 %v1927_v21, %v1894_v31  ;;  %v1939_v58 = vmul.f32 -2.5, %v3875_v30 }
 0x2a5   : > { %vm1899_vm12 = vmand %vm1880_vm13, %vm1898_vm10  ;;  %v1930_v14 = vmul.f32 %v1929_v53, %v1897_v33  ;;  %v1933_v35 = vmul.f32 %v1932_v17, %v1897_v33  ;;  %v1942_v22 = vmul.f32 2.5, %v3844_v12  ;;  %v1944_v15 = vmul.f32 -2.5, %v3878_v44 }
 0x2a6   : > { %v1900_v38 = vsel %vm1899_vm12, 1.0, %v3278_v8  ;;  %v1926_v3 = vadd.f32 %v1925_v40, %v1923_v28  ;;  %vm1901_vm14 = vmxor %vm1882_vm9, %vm3277_vm4  ;;  %v1982_v34 = vmul.f32 1.25, %v2539_v10  ;;  %v1984_v46 = vmul.f32 -1.25, %v3875_v30 }
 0x2a7   : > { %v1931_v47 = vadd.f32 %v1930_v14, %v1928_v18  ;;  %v1935_v48 = vmul.f32 %v1934_v55, %v1900_v38  ;;  %vm1902_vm13 = vmand %vm1881_vm0, %vm1901_vm14  ;;  %v1938_v51 = vmul.f32 %v1937_v32, %v1900_v38  ;;  %v1987_v54 = vmul.f32 1.25, %v3841_v11 }
 0x2a8   : > { %v1973_v57 = vmul.f32 %v1972_v19, %v1926_v3  ;;  %v1903_v50 = vsel %vm1902_vm13, 1.0, %v3278_v8  ;;  %vm1904_vm15 = vmxor %vm1883_vm11, %vm3277_vm4  ;;  %v1989_v60 = vmul.f32 -1.25, %v3878_v44  ;;  %v2027_v20 = vmul.f32 0.8333333, %v2539_v10  ;;  %v1826_v3 = vld [vmem:[#allocation6 + $0x378] sm:$0xff] }
 0x2a9   : > { %v1936_v61 = vadd.f32 %v1935_v48, %v1933_v35  ;;  %v1975_v36 = vmul.f32 %v1974_v52, %v1931_v47  ;;  %v1978_v43 = vmul.f32 %v1977_v24, %v1931_v47  ;;  %vm1905_vm1 = vmand %vm1882_vm9, %vm1904_vm15  ;;  %v1940_v63 = vmul.f32 %v1939_v58, %v1903_v50 }
 0x2aa   : > { %v3913_v59 = vsel %vm1905_vm1, 1.0, %v3278_v8  ;;  %v1943_v0 = vmul.f32 %v1942_v22, %v1903_v50  ;;  %v2029_v1 = vmul.f32 -0.8333333, %v3878_v44  ;;  %v2022_v16 = vmul.f32 0.8333333, %v3837_v9 }
 0x2ab   : > { %v1976_v49 = vadd.f32 %v1975_v36, %v1973_v57  ;;  %v1980_v45 = vmul.f32 %v1979_v25, %v1936_v61  ;;  %v1941_v2 = vadd.f32 %v1940_v63, %v1938_v51  ;;  %v1945_v4 = vmul.f32 %v1944_v15, %v3913_v59  ;;  %v1841_v51 = vld [vmem:[#allocation6 + $0x3f0] sm:$0xff] }
 0x2ac   : > { %v1983_v5 = vmul.f32 %v1982_v34, %v1936_v61  ;;  %v2024_v56 = vmul.f32 -0.8333333, %v3875_v30  ;;  %v3920_v62 = vadd.f32 -0.6, %v3833_v6  ;;  %v3923_v42 = vadd.f32 -1.0, %v3833_v6  ;;  %v1825_v63 = vld [vmem:[#allocation6 + $0x370] sm:$0xff] }
 0x2ad   : > { %v1981_v26 = vadd.f32 %v1980_v45, %v1978_v43  ;;  %v2018_v7 = vmul.f32 %v2017_v27, %v1976_v49  ;;  %v3925_v39 = vadd.f32 %v1945_v4, %v1943_v0  ;;  %v1985_v10 = vmul.f32 %v1984_v46, %v1941_v2 }
 0x2ae   : > { %v1988_v9 = vmul.f32 %v1987_v54, %v1941_v2  ;;  %v3928_v37 = vadd.f32 -1.4, %v3833_v6  ;;  %v3931_v41 = vadd.f32 -1.8, %v3833_v6  ;;  %vm1884_vm0 = vcmp.ge.f32.partialorder %v3833_v6, 0.6 }
 0x2af   : > { %v2020_v13 = vmul.f32 %v2019_v29, %v1981_v26  ;;  %v1986_v21 = vadd.f32 %v1985_v10, %v1983_v5  ;;  %v1990_v53 = vmul.f32 %v1989_v60, %v3925_v39  ;;  %v2023_v17 = vmul.f32 %v2022_v16, %v1981_v26  ;;  %vm1907_vm3 = vmxor %vm1884_vm0, %vm3277_vm4  ;;  %v1824_v5 = vld [vmem:[#allocation6 + $0x368] sm:$0xff]  ;;  %v1839_v26 = vld [vmem:[#allocation6 + $0x3e0] sm:$0xff] }
 0x2b0   : > { %vm1885_vm6 = vcmp.ge.f32.partialorder %v3833_v6, 1.0  ;;  %vm1886_vm2 = vcmp.ge.f32.partialorder %v3833_v6, 1.4  ;;  %vm1887_vm8 = vcmp.ge.f32.partialorder %v3833_v6, 1.8  ;;  %vm1908_vm7 = vmand %vm1883_vm11, %vm1907_vm3  ;;  %v1952_v55 = vmul.f32 2.5, %v3878_v44 }
 0x2b1   : > { %v2021_v19 = vadd.f32 %v2020_v13, %v2018_v7  ;;  %v3944_v52 = vadd.f32 %v1990_v53, %v1988_v9  ;;  %v2028_v23 = vmul.f32 %v2027_v20, %v1986_v21  ;;  %v2025_v24 = vmul.f32 %v2024_v56, %v1986_v21  ;;  %vm1910_vm9 = vmxor %vm1885_vm6, %vm3277_vm4  ;;  %v1823_v53 = vld [vmem:[#allocation6 + $0x360] sm:$0xff]  ;;  %v1833_v60 = vld [vmem:[#allocation6 + $0x3b0] sm:$0xff] }
 0x2b2   : > { %vm1888_vm10 = vcmp.ge.f32.partialorder %v3833_v6, 2.2  ;;  %v1909_v25 = vsel %vm1908_vm7, 1.0, %v3278_v8  ;;  %vm1911_vm12 = vmand %vm1884_vm0, %vm1910_vm9  ;;  %v1954_v27 = vmul.f32 -2.5, %v3923_v42  ;;  %v1957_v28 = vmul.f32 2.5, %v3920_v62 }
 0x2b3   : > { %2127 = vmatprep.mubr.f32.mxu0 %v2021_v19  ;;  %v2030_v29 = vmul.f32 %v2029_v1, %v3944_v52  ;;  %v2026_v31 = vadd.f32 %v2025_v24, %v2023_v17  ;;  %v1912_v32 = vsel %vm1911_vm12, 1.0, %v3278_v8  ;;  %vm1913_vm11 = vmxor %vm1886_vm2, %vm3277_vm4  ;;  %v1953_v33 = vmul.f32 %v1952_v55, %v1909_v25  ;;  %v1840_v1 = vld [vmem:[#allocation6 + $0x3e8] sm:$0xff]  ;;  %v1838_v17 = vld [vmem:[#allocation6 + $0x3d8] sm:$0xff] }
 0x2b4   : > { %vm1914_vm14 = vmand %vm1885_vm6, %vm1913_vm11  ;;  %v1955_v40 = vmul.f32 %v1954_v27, %v1912_v32  ;;  %v1958_v18 = vmul.f32 %v1957_v28, %v1912_v32  ;;  %v1959_v58 = vmul.f32 -2.5, %v3928_v37  ;;  %v1962_v14 = vmul.f32 2.5, %v3923_v42  ;;  %v1822_v27 = vld [vmem:[#allocation6 + $0x358] sm:$0xff]  ;;  %v1821_v32 = vld [vmem:[#allocation6 + $0x350] sm:$0xff] }
 0x2b5   : > { %v2031_v35 = vadd.f32 %v2030_v29, %v2028_v23  ;;  %v1915_v22 = vsel %vm1914_vm14, 1.0, %v3278_v8  ;;  %vm1916_vm13 = vmxor %vm1887_vm8, %vm3277_vm4  ;;  %v1964_v15 = vmul.f32 -2.5, %v3931_v41  ;;  %v1967_v38 = vmul.f32 2.5, %v3928_v37 }
 0x2b6   : > { %vm1917_vm15 = vmand %vm1886_vm2, %vm1916_vm13  ;;  %v1956_v34 = vadd.f32 %v1955_v40, %v1953_v33  ;;  %v1960_v46 = vmul.f32 %v1959_v58, %v1915_v22  ;;  %v1963_v47 = vmul.f32 %v1962_v14, %v1915_v22  ;;  %v2002_v48 = vmul.f32 1.25, %v3878_v44  ;;  %v1836_v58 = vld [vmem:[#allocation6 + $0x3c8] sm:$0xff] }
 0x2b7   : > { %2197 = vmatprep.mubr.f32.mxu1 %v2031_v35  ;;  %v1918_v54 = vsel %vm1917_vm15, 1.0, %v3278_v8  ;;  %vm1919_vm1 = vmxor %vm1888_vm10, %vm3277_vm4  ;;  %v2004_v57 = vmul.f32 -1.25, %v3928_v37  ;;  %v2007_v50 = vmul.f32 1.25, %v3920_v62  ;;  %v2009_v0 = vmul.f32 -1.25, %v3931_v41 }
 0x2b8   : > { %2198 = vmatmul.mubr.f32.vlgmr.msra.gmra.mxu1 %v2026_v31  ;;  %vm3981_vm0 = vmand %vm1887_vm8, %vm1919_vm1  ;;  %v1961_v20 = vadd.f32 %v1960_v46, %v1958_v18  ;;  %v1965_v61 = vmul.f32 %v1964_v15, %v1918_v54  ;;  %v3985_v36 = vmul.f32 %v1967_v38, %v1918_v54  ;;  %v2003_v43 = vmul.f32 %v2002_v48, %v1956_v34  ;;  %v1820_v15 = vld [vmem:[#allocation6 + $0x348] sm:$0xff]  ;;  %v1835_v46 = vld [vmem:[#allocation6 + $0x3c0] sm:$0xff] }
 0x2b9   : > { %2972 = vmatpush3.msra.mxu1 %v1826_v3  ;;  %v1860_v16 = vmul.f32 0.5, %v3833_v6  ;;  %v1947_v49 = vmul.f32 2.5, %v3875_v30  ;;  %v1949_v56 = vmul.f32 -2.5, %v3920_v62  ;;  %v2047_v13 = vmul.f32 0.8333333, %v3878_v44  ;;  %v1837_v44 = vld [vmem:[#allocation6 + $0x3d0] sm:$0xff] }
 0x2ba   : > { %2973 = vmatprep.subr.mxu1 %v1841_v51  ;;  %v1966_v45 = vadd.f32 %v1965_v61, %v1963_v47  ;;  %v2005_v2 = vmul.f32 %v2004_v57, %v1961_v20  ;;  %v2008_v4 = vmul.f32 %v2007_v50, %v1961_v20  ;;  %v2049_v23 = vmul.f32 -0.8333333, %v3931_v41  ;;  %v1834_v48 = vld [vmem:[#allocation6 + $0x3b8] sm:$0xff] }
 0x2bb   : > { %2974 = vmatpush3.msra.mxu1 %v1825_v63  ;;  %3176 = vtanh.f32 %v1860_v16  ;;  %v1948_v7 = vmul.f32 %v1947_v49, %v3913_v59  ;;  %v1950_v21 = vmul.f32 %v1949_v56, %v1909_v25  ;;  %v1992_v59 = vmul.f32 1.25, %v3844_v12  ;;  %v1818_v20 = vld [vmem:[#allocation6 + $0x338] sm:$0xff]  ;;  %v1817_v16 = vld [vmem:[#allocation6 + $0x330] sm:$0xff]  ;;  %v1816_v56 = vld [vmem:[#allocation6 + $0x328] sm:$0xff] }
 0x2bc   : > { %v3992_v10 = vadd.f32 %v2005_v2, %v2003_v43  ;;  %v2010_v9 = vmul.f32 %v2009_v0, %v1966_v45  ;;  %2975 = vmatprep.subr.mxu1 %v1840_v1  ;;  %v1994_v28 = vmul.f32 -1.25, %v3920_v62  ;;  %v1999_v29 = vmul.f32 -1.25, %v3923_v42 }
 0x2bd   : > { %2976 = vmatpush3.msra.mxu1 %v1824_v5  ;;  %v1951_v24 = vadd.f32 %v1950_v21, %v1948_v7  ;;  %v1997_v31 = vmul.f32 1.25, %v3875_v30  ;;  %v2548_v33 = vadd.f32 -2.2, %v3833_v6  ;;  %v1993_v41 = vmul.f32 %v1992_v59, %v3925_v39  ;;  %v1829_v59 = vld [vmem:[#allocation6 + $0x390] sm:$0xff] }
 0x2be   : > { %v2011_v55 = vadd.f32 %v2010_v9, %v2008_v4  ;;  %v2048_v19 = vmul.f32 %v2047_v13, %v3992_v10  ;;  %2977 = vmatprep.subr.mxu1 %v1839_v26  ;;  %v2000_v18 = vmul.f32 %v1999_v29, %v1956_v34  ;;  %v2012_v14 = vmul.f32 1.25, %v3923_v42  ;;  %v1819_v34 = vld [vmem:[#allocation6 + $0x340] sm:$0xff]  ;;  %v1794_v13 = vld [vmem:[#allocation6 + $0x278] sm:$0xff] }
 0x2bf   : > { %2978 = vmatpush3.msra.mxu1 %v1823_v53  ;;  %v1995_v40 = vmul.f32 %v1994_v28, %v1951_v24  ;;  %v1998_v22 = vmul.f32 %v1997_v31, %v1951_v24  ;;  %v1921_v38 = vsel %vm3981_vm0, 1.0, %v3278_v8  ;;  %v1969_v3 = vmul.f32 -2.5, %v2548_v33  ;;  %v1809_v53 = vld [vmem:[#allocation6 + $0x2f0] sm:$0xff]  ;;  %v1792_v28 = vld [vmem:[#allocation6 + $0x268] sm:$0xff] }
 0x2c0   : > { %v2050_v25 = vmul.f32 %v2049_v23, %v2011_v55  ;;  %2979 = vmatprep.subr.mxu1 %v1838_v17  ;;  %v2013_v47 = vmul.f32 %v2012_v14, %v1966_v45  ;;  %v2052_v39 = vmul.f32 0.8333333, %v3920_v62  ;;  %v2014_v43 = vmul.f32 -1.25, %v2548_v33  ;;  %v1832_v45 = vld [vmem:[#allocation6 + $0x3a8] sm:$0xff]  ;;  %v1814_v23 = vld [vmem:[#allocation6 + $0x318] sm:$0xff] }
 0x2c1   : > { %2980 = vmatpush3.msra.mxu1 %v1822_v27  ;;  %v1970_v51 = vmul.f32 %v1969_v3, %v1921_v38  ;;  %v4008_v57 = vadd.f32 %v1995_v40, %v1993_v41  ;;  %v2001_v50 = vadd.f32 %v2000_v18, %v1998_v22  ;;  %v2037_v0 = vmul.f32 0.8333333, %v3844_v12  ;;  %v1815_v12 = vld [vmem:[#allocation6 + $0x320] sm:$0xff]  ;;  %v1808_v27 = vld [vmem:[#allocation6 + $0x2e8] sm:$0xff]  ;;  %v1806_v18 = vld [vmem:[#allocation6 + $0x2d8] sm:$0xff] }
 0x2c2   : > { %v2051_v35 = vadd.f32 %v2050_v25, %v2048_v19  ;;  %2981 = vmatprep.subr.mxu1 %v1837_v44  ;;  %v2053_v54 = vmul.f32 %v2052_v39, %v2011_v55  ;;  %v2039_v1 = vmul.f32 -0.8333333, %v3923_v42  ;;  %v2054_v9 = vmul.f32 -0.8333333, %v2548_v33  ;;  %v1830_v55 = vld [vmem:[#allocation6 + $0x398] sm:$0xff]  ;;  %v1793_v19 = vld [vmem:[#allocation6 + $0x270] sm:$0xff] }
 0x2c3   : > { %2982 = vmatpush3.msra.mxu1 %v1821_v32  ;;  %v1971_v61 = vadd.f32 %v1970_v51, %v3985_v36  ;;  %v2038_v4 = vmul.f32 %v2037_v0, %v4008_v57  ;;  %v1831_v36 = vld [vmem:[#allocation6 + $0x3a0] sm:$0xff]  ;;  %v2042_v29 = vmul.f32 0.8333333, %v3875_v30  ;;  %v2044_v44 = vmul.f32 -0.8333333, %v3928_v37  ;;  %v1828_v31 = vld [vmem:[#allocation6 + $0x388] sm:$0xff] }
 0x2c4   : > { %2337 = vmatprep.mubr.f32.mxu1 %v2051_v35  ;;  %2983 = vmatprep.subr.mxu1 %v1836_v58  ;;  %v2040_v5 = vmul.f32 %v2039_v1, %v2001_v50  ;;  %v1807_v25 = vld [vmem:[#allocation6 + $0x2e0] sm:$0xff]  ;;  %v1812_v33 = vld [vmem:[#allocation6 + $0x308] sm:$0xff]  ;;  %v1790_v14 = vld [vmem:[#allocation6 + $0x258] sm:$0xff]  ;;  %v2034_v0 = vmul.f32 -0.8333333, %v3920_v62 }
 0x2c5   : > { %2984 = vmatpush3.msra.mxu1 %v1820_v15  ;;  %v2015_v2 = vmul.f32 %v2014_v43, %v1971_v61  ;;  %v1791_v32 = vld [vmem:[#allocation6 + $0x260] sm:$0xff]  ;;  %v2043_v41 = vmul.f32 %v2042_v29, %v2001_v50  ;;  %v2045_v40 = vmul.f32 %v2044_v44, %v3992_v10  ;;  %v1805_v37 = vld [vmem:[#allocation6 + $0x2d0] sm:$0xff]  ;;  %v1804_v15 = vld [vmem:[#allocation6 + $0x2c8] sm:$0xff] }
 0x2c6   : > { %2985 = vmatprep.subr.mxu1 %v1835_v46  ;;  %v2041_v17 = vadd.f32 %v2040_v5, %v2038_v4  ;;  %v1827_v58 = vld [vmem:[#allocation6 + $0x380] sm:$0xff]  ;;  %v1789_v35 = vld [vmem:[#allocation6 + $0x250] sm:$0xff]  ;;  %v1788_v10 = vld [vmem:[#allocation6 + $0x248] sm:$0xff] }
 0x2c7   : > { %2986 = vmatpush3.msra.mxu1 %v1819_v34  ;;  %v2016_v7 = vadd.f32 %v2015_v2, %v2013_v47  ;;  %v1811_v30 = vld [vmem:[#allocation6 + $0x300] sm:$0xff]  ;;  %v2046_v22 = vadd.f32 %v2045_v40, %v2043_v41  ;;  %v1802_v46 = vld [vmem:[#allocation6 + $0x2b8] sm:$0xff]  ;;  %v1801_v39 = vld [vmem:[#allocation6 + $0x2b0] sm:$0xff] }
 0x2c8   : > { %v3177_v63 = vpop.eup %3176  ;;  %2987 = vmatprep.subr.mxu1 %v1834_v48  ;;  %v1803_v38 = vld [vmem:[#allocation6 + $0x2c0] sm:$0xff]  ;;  %v1786_v47 = vld [vmem:[#allocation6 + $0x238] sm:$0xff]  ;;  %v1785_v34 = vld [vmem:[#allocation6 + $0x230] sm:$0xff] }
 0x2c9   : > { %v1862_v49 = vmul.f32 0.5, %v3177_v63  ;;  %2988 = vmatpush3.msra.mxu1 %v1818_v20  ;;  %v2055_v21 = vmul.f32 %v2054_v9, %v2016_v7  ;;  %v1787_v3 = vld [vmem:[#allocation6 + $0x240] sm:$0xff]  ;;  %v1800_v48 = vld [vmem:[#allocation6 + $0x2a8] sm:$0xff]  ;;  %v1798_v20 = vld [vmem:[#allocation6 + $0x298] sm:$0xff]  ;;  %v2032_v63 = vmul.f32 0.8333333, %v3841_v11 }
 0x2ca   : > { %2989 = vmatprep.subr.mxu1 %v1833_v60  ;;  %v1784_v51 = vld [vmem:[#allocation6 + $0x228] sm:$0xff]  ;;  %v1783_v50 = vld [vmem:[#allocation6 + $0x220] sm:$0xff]  ;;  %v1782_v60 = vld [vmem:[#allocation6 + $0x218] sm:$0xff] }
 0x2cb   : > { %v1863_v26 = vadd.f32 0.5, %v1862_v49  ;;  %2990 = vmatpush3.msra.mxu1 %v1817_v16  ;;  %v4015_v24 = vadd.f32 %v2055_v21, %v2053_v54  ;;  %v1799_v54 = vld [vmem:[#allocation6 + $0x2a0] sm:$0xff]  ;;  %v1797_v61 = vld [vmem:[#allocation6 + $0x290] sm:$0xff]  ;;  %v1796_v1 = vld [vmem:[#allocation6 + $0x288] sm:$0xff]  ;;  %v2033_v49 = vmul.f32 %v2032_v63, %v3944_v52 }
 0x2cc   : > { %2991 = vmatprep.subr.mxu1 %v1832_v45  ;;  %v1781_v43 = vld [vmem:[#allocation6 + $0x210] sm:$0xff]  ;;  %v1780_v16 = vld [vmem:[#allocation6 + $0x208] sm:$0xff]  ;;  %v2035_v45 = vmul.f32 %v2034_v0, %v4008_v57  ;;  %v1795_v2 = vld [vmem:[#allocation6 + $0x280] sm:$0xff] }
 0x2cd   : > { %v1864_v42 = vmul.f32 %v1863_v26, %v3833_v6  ;;  %2992 = vmatpush3.msra.mxu1 %v1816_v56  ;;  %v1813_v6 = vld [vmem:[#allocation6 + $0x310] sm:$0xff]  ;;  %v1779_v4 = vld [vmem:[#allocation6 + $0x200] sm:$0xff]  ;;  %v1858_v56 = vld [vmem:[#allocation6 + $0x478] sm:$0xff] }
 0x2ce   : > { %2993 = vmatprep.subr.mxu1 %v1831_v36  ;;  %v2036_v5 = vadd.f32 %v2035_v45, %v2033_v49  ;;  %v1857_v11 = vld [vmem:[#allocation6 + $0x470] sm:$0xff]  ;;  %v1856_v62 = vld [vmem:[#allocation6 + $0x468] sm:$0xff]  ;;  %v1855_v52 = vld [vmem:[#allocation6 + $0x460] sm:$0xff] }
 0x2cf   : > { %2128 = vmatmul.mubr.f32.vlgmr.msra.gmra.mxu0 %v1864_v42  ;;  %2994 = vmatpush3.msra.mxu1 %v1815_v12  ;;  %v1854_v57 = vld [vmem:[#allocation6 + $0x458] sm:$0xff]  ;;  %v1853_v26 = vld [vmem:[#allocation6 + $0x450] sm:$0xff]  ;;  %v1852_v36 = vld [vmem:[#allocation6 + $0x448] sm:$0xff] }
 0x2d0   : > { %2937 = vmatpush3.msra.mxu0 %v1794_v13  ;;  %2267 = vmatprep.mubr.f32.mxu0 %v2041_v17  ;;  %v1851_v7 = vld [vmem:[#allocation6 + $0x440] sm:$0xff]  ;;  %v1850_v9 = vld [vmem:[#allocation6 + $0x438] sm:$0xff]  ;;  %v1849_v12 = vld [vmem:[#allocation6 + $0x430] sm:$0xff] }
 0x2d1   : > { %2938 = vmatprep.subr.mxu0 %v1809_v53  ;;  %2995 = vmatprep.subr.mxu1 %v1830_v55  ;;  %v1848_v42 = vld [vmem:[#allocation6 + $0x428] sm:$0xff]  ;;  %v1847_v13 = vld [vmem:[#allocation6 + $0x420] sm:$0xff]  ;;  %v1846_v21 = vld [vmem:[#allocation6 + $0x418] sm:$0xff] }
 0x2d2   : > { %2939 = vmatpush3.msra.mxu0 %v1793_v19  ;;  %2996 = vmatpush3.msra.mxu1 %v1814_v23  ;;  %v1845_v53 = vld [vmem:[#allocation6 + $0x410] sm:$0xff]  ;;  %v1844_v17 = vld [vmem:[#allocation6 + $0x408] sm:$0xff]  ;;  %v1843_v55 = vld [vmem:[#allocation6 + $0x400] sm:$0xff] }
 0x2d3   : > { %2940 = vmatprep.subr.mxu0 %v1808_v27  ;;  %2997 = vmatprep.subr.mxu1 %v1829_v59 }
 0x2d4   : > { %2941 = vmatpush3.msra.mxu0 %v1792_v28  ;;  %2998 = vmatpush3.msra.mxu1 %v1813_v6  ;;  %v2549_v6 = vld [vmem:[%s4060_s6] ss:$0 sm:$0xff] }
 0x2d5   : > { %2942 = vmatprep.subr.mxu0 %v1807_v25  ;;  %2999 = vmatprep.subr.mxu1 %v1828_v31 }
 0x2d6   : > { %2943 = vmatpush3.msra.mxu0 %v1791_v32  ;;  %3000 = vmatpush3.msra.mxu1 %v1812_v33 }
 0x2d7   : > { %2944 = vmatprep.subr.mxu0 %v1806_v18  ;;  %3001 = vmatprep.subr.mxu1 %v1827_v58 }
 0x2d8   : > { %2945 = vmatpush3.msra.mxu0 %v1790_v14  ;;  %3002 = vmatpush3.msra.mxu1 %v1811_v30 }
 0x2d9   : > { %2946 = vmatprep.subr.mxu0 %v1805_v37  ;;  %2338 = vmatmul.mubr.f32.vlgmr.msra.gmra.mxu1 %v2046_v22 }
 0x2da   : > { %2947 = vmatpush3.msra.mxu0 %v1789_v35 }
 0x2db   : > { %2948 = vmatprep.subr.mxu0 %v1804_v15 }
 0x2dc   : > { %2949 = vmatpush3.msra.mxu0 %v1788_v10 }
 0x2dd   : > { %2950 = vmatprep.subr.mxu0 %v1803_v38 }
 0x2de   : > { %2951 = vmatpush3.msra.mxu0 %v1787_v3 }
 0x2df   : > { %2952 = vmatprep.subr.mxu0 %v1802_v46 }
 0x2e0   : > { %2953 = vmatpush3.msra.mxu0 %v1786_v47 }
 0x2e1   : > { %2954 = vmatprep.subr.mxu0 %v1801_v39 }
 0x2e2   : > { %2955 = vmatpush3.msra.mxu0 %v1785_v34 }
 0x2e3   : > { %2956 = vmatprep.subr.mxu0 %v1800_v48 }
 0x2e4   : > { %2957 = vmatpush3.msra.mxu0 %v1784_v51 }
 0x2e5   : > { %2958 = vmatprep.subr.mxu0 %v1799_v54 }
 0x2e6   : > { %2959 = vmatpush3.msra.mxu0 %v1783_v50 }
 0x2e7   : > { %2960 = vmatprep.subr.mxu0 %v1798_v20 }
 0x2e8   : > { %2961 = vmatpush3.msra.mxu0 %v1782_v60 }
 0x2e9   : > { %2962 = vmatprep.subr.mxu0 %v1797_v61 }
 0x2ea   : > { %2963 = vmatpush3.msra.mxu0 %v1781_v43 }
 0x2eb   : > { %2964 = vmatprep.subr.mxu0 %v1796_v1 }
 0x2ec   : > { %2965 = vmatpush3.msra.mxu0 %v1780_v16 }
 0x2ed   : > { %2966 = vmatprep.subr.mxu0 %v1795_v2 }
 0x2ee   : > { %2967 = vmatpush3.msra.mxu0 %v1779_v4 }
 0x2ef   : > { %2268 = vmatmul.mubr.f32.vlgmr.msra.gmra.mxu0 %v2036_v5  ;;  %3093 = vmatprep.subr.mxu0 %v3278_v8 }
 0x2f0   : > { %3094 = vmatpush3.msra.mxu0 %v1858_v56  ;;  %3125 = vmatprep.mubr.msk.f32.mxu0 %vm3279_vm5, %v3278_v8 }
 0x2f1   : > { %3095 = vmatprep.subr.mxu0 %v3278_v8 }
 0x2f2   : > { %3096 = vmatpush3.msra.mxu0 %v1857_v11 }
 0x2f3   : > { %3097 = vmatprep.subr.mxu0 %v3278_v8 }
 0x2f4   : > { %3098 = vmatpush3.msra.mxu0 %v1856_v62 }
 0x2f5   : > { %3099 = vmatprep.subr.mxu0 %v3278_v8 }
 0x2f6   : > { %3100 = vmatpush3.msra.mxu0 %v1855_v52 }
 0x2f7   : > { %3101 = vmatprep.subr.mxu0 %v3278_v8 }
 0x2f8   : > { %3102 = vmatpush3.msra.mxu0 %v1854_v57 }
 0x2f9   : > { %3103 = vmatprep.subr.mxu0 %v3278_v8 }
 0x2fa   : > { %3104 = vmatpush3.msra.mxu0 %v1853_v26 }
 0x2fb   : > { %3105 = vmatprep.subr.mxu0 %v3278_v8 }
 0x2fc   : > { %3106 = vmatpush3.msra.mxu0 %v1852_v36 }
 0x2fd   : > { %3107 = vmatprep.subr.mxu0 %v3278_v8 }
 0x2fe   : > { %3108 = vmatpush3.msra.mxu0 %v1851_v7 }
 0x2ff   : > { %3109 = vmatprep.subr.mxu0 %v3278_v8 }
 0x300   : > { %3110 = vmatpush3.msra.mxu0 %v1850_v9 }
 0x301   : > { %3111 = vmatprep.subr.mxu0 %v3278_v8 }
 0x302   : > { %3112 = vmatpush3.msra.mxu0 %v1849_v12 }
 0x303   : > { %3113 = vmatprep.subr.mxu0 %v3278_v8 }
 0x304   : > { %3114 = vmatpush3.msra.mxu0 %v1848_v42 }
 0x305   : > { %3115 = vmatprep.subr.mxu0 %v3278_v8 }
 0x306   : > { %3116 = vmatpush3.msra.mxu0 %v1847_v13 }
 0x307   : > { %3117 = vmatprep.subr.mxu0 %v3278_v8 }
 0x308   : > { %3118 = vmatpush3.msra.mxu0 %v1846_v21 }
 0x309   : > { %3119 = vmatprep.subr.mxu0 %v3278_v8 }
 0x30a   : > { %3120 = vmatpush3.msra.mxu0 %v1845_v53 }
 0x30b   : > { %3121 = vmatprep.subr.mxu0 %v3278_v8 }
 0x30c   : > { %3122 = vmatpush3.msra.mxu0 %v1844_v17 }
 0x30d   : > { %3123 = vmatprep.subr.mxu0 %v3278_v8 }
 0x30e   : > { %3124 = vmatpush3.msra.mxu0 %v1843_v55 }
 0x30f   : > { %3126 = vmatmul.mubr.f32.vlgmr.msra.gmra.mxu0 %v4015_v24 }
 0x378   : > { %v2933_v27 = vpop.f32.mrf.mxu1 }
 0x37a   : > { %v2934_v29 = vpop.f32.mrf.mxu1 }
 0x37b   : > { %v2935_v32 = vadd.f32 %v2934_v29, %v2933_v27 }
 0x38f   : > { %v2898_v19 = vpop.f32.mrf.mxu0 }
 0x391   : > { %v2899_v23 = vpop.f32.mrf.mxu0 }
 0x392   : > { %v2900_v28 = vadd.f32 %v2899_v23, %v2898_v19 }
 0x394   : > { %v2130_v25 = vadd.f32 %v2900_v28, %v2549_v6 }
 0x396   : > { %v2200_v8 = vadd.f32 %v2935_v32, %v2130_v25 }
 0x399   : > { %v3003_v31 = vpop.f32.mrf.mxu1 }
 0x39b   : > { %v3004_v41 = vpop.f32.mrf.mxu1 }
 0x39c   : > { %v3005_v24 = vadd.f32 %v3004_v41, %v3003_v31 }
 0x3af   : > { %v2968_v59 = vpop.f32.mrf.mxu0 }
 0x3b1   : > { %v2969_v44 = vpop.f32.mrf.mxu0 }
 0x3b2   : > { %v2970_v33 = vadd.f32 %v2969_v44, %v2968_v59 }
 0x3b4   : > { %v2270_v40 = vadd.f32 %v2970_v33, %v2200_v8 }
 0x3b6   : > { %v2340_v18 = vadd.f32 %v3005_v24, %v2270_v40 }
 0x3cf   : > { %v2409_v58 = vpop.f32.mrf.mxu0 }
 0x3d0   : > { %v2410_v14 = vadd.f32 %v2409_v58, %v2340_v18 }
 0x3d1   : > { %v3127_v30 = vpop.f32.mrf.mxu0 }
 0x3d2   : > { %2413 = vst [vmem:[%s317_s13] sm:$0xff] %v2410_v14 }
 0x3d3 PF: > { %s19_s24 = sadd.s32 1, %s3270_s24  }
 0x3d4   : > { %p16_p3 = scmp.ge.s32.totalorder %s19_s24, 4  }
 0x3d6   :  { %18 = sbr.rel (!%p16_p3) target bundleno = 2 (0x2), region = 91 }
 0x3db   :  { %2433 = vsyncpa [#allocation3], 1 }
 0x3dc   :  { %2435 = vsyncpa [#allocation3 + $0x1], 1 }
 0x3dd   :  { %2436 = vsyncpa [#allocation5], 1 }

</bundles_post_ra>
